<compile_context>
chip_gen: v7x
topology: tpu7x:2x2x1
jax: 0.10.0
libtpu: 0.0.40
codegen_flags: <defaults>
</compile_context>

<pallas_src>
import numpy as np
import jax
import jax.numpy as jnp
from jax import lax
from jax.experimental import pallas as pl
from jax.experimental.pallas import tpu as pltpu

EPS = 1e-5
LANE = 128


def _rup(x, m):
    return ((x + m - 1) // m) * m


def _pick_vmem_limit():
    """~3/4 of the chip's VMEM, capped at 96 MiB (96 MiB on v5e/v6e, 48 MiB on v7x)."""
    try:
        cap = int(pltpu.get_tpu_info().vmem_capacity_bytes)
    except Exception:
        cap = 64 * 1024 * 1024          # conservative fallback (safe on every chip)
    return int(min(96 * 1024 * 1024, (3 * cap) // 4))


# ---------------------------------- kernel ------------------------------------
def _make_kernel(H, W, stride, has_down, Cip, Pp, Cop, use_roll):
    s = stride
    Ho, Wo = H // s, W // s
    HW, HWo = H * W, Ho * Wo
    f32, bf16 = jnp.float32, jnp.bfloat16

    def avgpool_sum(z, scr_ref):
        """(HW, C) f32 -> (HWo, C) f32 UNNORMALIZED s*s window sum.
        (The 1/s^2 normalization is folded into the following conv weights.)
        H-direction: leading-dim adds.  W-direction: one store of the half-pooled
        rows, then s strided (HWo)-row reads that are summed."""
        C = z.shape[-1]
        z4 = z.reshape(Ho, s, W, C)
        th = z4[:, 0]
        for a in range(1, s):
            th = th + z4[:, a]                                # (Ho, W, C)
        scr_ref[...] = th.reshape(Ho * W, C)
        u = scr_ref[pl.ds(0, HWo, stride=s), :]
        for b in range(1, s):
            u = u + scr_ref[pl.ds(b, HWo, stride=s), :]       # u[q] = sum_b th[q*s+b]
        return u

    def shift_rows(v, d):
        """out[p] = v[p + d] for d in {-1, +1}; rows that run past either end carry
        garbage/wrapped data and are always zeroed by the caller's column mask."""
        if use_roll:
            return pltpu.roll(v, shift=-d, axis=0)            # XLU, frees ld/st slots
        if d > 0:
            return jnp.concatenate(
                [v[d:], jnp.zeros((d, v.shape[1]), v.dtype)], axis=0)
        return jnp.concatenate(
            [jnp.zeros((-d, v.shape[1]), v.dtype), v[:d]], axis=0)

    def kernel(x_ref, w1_ref, b1_ref, w2_ref, b2_ref, ml_ref, mr_ref,
               w3_ref, b3_ref, out_ref, *scr):
        x = x_ref[0]                                          # (HW, Cip) bf16

        # conv1 (1x1, BN1 scale folded into w1) + bias + ReLU
        h1 = jnp.dot(x, w1_ref[...], preferred_element_type=f32)
        h1 = jnp.maximum(h1 + b1_ref[...], 0.0)               # (HW, Pp) f32

        # conv2 (3x3, pad=1, BN2 scale folded): K-blocked accumulation per kernel row
        ml = ml_ref[...]                                      # (HW, 1) keep for dw=-1
        mr = mr_ref[...]                                      # (HW, 1) keep for dw=+1
        zW = jnp.zeros((W, Pp), f32)
        acc = jnp.zeros((HW, Pp), f32)
        for kh in range(3):                                   # dh = kh - 1
            dh = kh - 1
            if dh < 0:
                base = jnp.concatenate([zW, h1[:HW - W]], axis=0)   # aligned (W%8==0)
            elif dh > 0:
                base = jnp.concatenate([h1[W:], zW], axis=0)
            else:
                base = h1
            t_l = shift_rows(base, -1) * ml                   # kw = 0
            t_r = shift_rows(base, +1) * mr                   # kw = 2
            slab = jnp.concatenate(
                [t_l.astype(bf16), base.astype(bf16), t_r.astype(bf16)], axis=1)
            acc = acc + jnp.dot(slab, w2_ref[kh], preferred_element_type=f32)
        h2 = jnp.maximum(acc + b2_ref[...], 0.0)              # (HW, Pp) f32

        # avgpool(stride) -- statically skipped when stride == 1
        h2p = avgpool_sum(h2, scr[0]) if s > 1 else h2        # (HWo, Pp) f32

        # conv3 (+ fused 1x1 downsample) + bias + residual + ReLU
        if has_down:
            if s > 1:
                xi = avgpool_sum(x.astype(f32), scr[1]).astype(bf16)  # (HWo, Cip)
            else:
                xi = x
            rhs = jnp.concatenate([h2p.astype(bf16), xi], axis=1)     # (HWo, Pp+Cip)
            h3 = jnp.dot(rhs, w3_ref[...], preferred_element_type=f32)
            out = jnp.maximum(h3 + b3_ref[...], 0.0)
        else:
            h3 = jnp.dot(h2p.astype(bf16), w3_ref[...], preferred_element_type=f32)
            out = jnp.maximum(h3 + b3_ref[...] + x.astype(f32), 0.0)  # identity add
        out_ref[0] = out.astype(out_ref.dtype)

    return kernel


# --------------------------------- wrapper ------------------------------------
def _fold_bn(stats):
    gamma, beta, mean, var = (jnp.asarray(t, jnp.float32) for t in stats)
    sc = gamma / jnp.sqrt(var + EPS)
    sh = beta - mean * sc
    return sc, sh


def _pad2d(mat, rpad, cpad):
    r, c = mat.shape
    return jnp.zeros((rpad, cpad), jnp.float32).at[:r, :c].set(mat)


def _pad_row(vec, cpad):
    return jnp.zeros((1, cpad), jnp.float32).at[0, :vec.shape[0]].set(vec)


def bottleneck2d_pallas(x_nchw, params, stride):
    f32, bf16 = jnp.float32, jnp.bfloat16
    N, Cin, H, W = x_nchw.shape
    P = params['w1'].shape[0]
    Cout = 4 * P
    s = stride
    assert H % s == 0 and W % s == 0, "H, W must be divisible by stride"
    assert W % 8 == 0, "W must be a multiple of 8 (keeps in-kernel shifts tile-aligned)"
    has_down = params.get('wd') is not None
    if not has_down:
        assert s == 1 and Cin == Cout, \
            "module semantics: downsample exists iff stride > 1 or inplanes != 4*planes"

    Cip, Pp, Cop = _rup(Cin, LANE), _rup(P, LANE), _rup(Cout, LANE)
    Ho, Wo = H // s, W // s
    HW, HWo = H * W, Ho * Wo
    inv_pool = 1.0 / float(s * s)

    # activations: NCHW -> (N, HW, C), channels zero-padded to 128 lanes, stored bf16
    xf = jnp.transpose(x_nchw, (0, 2, 3, 1)).reshape(N, HW, Cin)
    x_p = jnp.zeros((N, HW, Cip), bf16).at[:, :, :Cin].set(xf.astype(bf16))

    # fold BN scales into the conv weights; only biases remain in the kernel epilogues
    sc1, sh1 = _fold_bn(params['bn1'])
    sc2, sh2 = _fold_bn(params['bn2'])
    sc3, sh3 = _fold_bn(params['bn3'])

    w1 = _pad2d(params['w1'].reshape(P, Cin).T * sc1[None, :], Cip, Pp).astype(bf16)
    b1 = _pad_row(sh1, Pp)

    w2 = params['w2']                                         # (co, ci, 3, 3)
    rows = []
    for kh in range(3):
        blocks = [_pad2d(w2[:, :, kh, kw].T * sc2[None, :], Pp, Pp) for kw in range(3)]
        rows.append(jnp.concatenate(blocks, axis=0))          # (3*Pp, Pp), kw-major
    w2s = jnp.stack(rows, axis=0).astype(bf16)                # (3, 3*Pp, Pp)
    b2 = _pad_row(sh2, Pp)

    # conv3 (and the downsample conv, fused along K); avgpool 1/s^2 folded in
    w3u = params['w3'].reshape(Cout, P).T * (sc3 * inv_pool)[None, :]      # (P, Cout)
    if has_down:
        scd, shd = _fold_bn(params['bnd'])
        wdu = params['wd'].reshape(Cout, Cin).T * (scd * inv_pool)[None, :]  # (Cin, Cout)
        w3 = jnp.concatenate([_pad2d(w3u, Pp, Cop), _pad2d(wdu, Cip, Cop)],
                             axis=0).astype(bf16)             # (Pp+Cip, Cop)
        b3 = _pad_row(sh3 + shd, Cop)
    else:
        w3 = _pad2d(w3u, Pp, Cop).astype(bf16)                # (Pp, Cop)
        b3 = _pad_row(sh3, Cop)

    # column masks for the dw = -1 / +1 taps of the 3x3 conv (precomputed, f32)
    col = jnp.arange(HW, dtype=jnp.int32) % W
    mask_l = (col != 0).astype(f32).reshape(HW, 1)
    mask_r = (col != (W - 1)).astype(f32).reshape(HW, 1)

    inputs = [x_p, w1, b1, w2s, b2, mask_l, mask_r, w3, b3]

    scratch = []
    if s > 1:
        scratch.append(pltpu.VMEM((Ho * W, Pp), f32))         # main-branch pool
        if has_down:
            scratch.append(pltpu.VMEM((Ho * W, Cip), f32))    # identity-branch pool

    out_shape = jax.ShapeDtypeStruct((N, HWo, Cop), bf16)
    cparams = pltpu.CompilerParams(dimension_semantics=("parallel",),
                                   vmem_limit_bytes=_pick_vmem_limit())

    def run(optimized):
        def full(a):
            nd = a.ndim
            if optimized:
                # grid-invariant operands: single-buffered (saves VMEM, same DMA)
                return pl.BlockSpec(a.shape, lambda b: (0,) * nd,
                                    pipeline_mode=pl.Buffered(1))
            return pl.BlockSpec(a.shape, lambda b: (0,) * nd)

        in_specs = [pl.BlockSpec((1, HW, Cip), lambda b: (b, 0, 0))] \
            + [full(a) for a in inputs[1:]]
        kernel = _make_kernel(H, W, s, has_down, Cip, Pp, Cop, use_roll=optimized)
        res = pl.pallas_call(
            kernel,
            out_shape=out_shape,
            grid=(N,),
            in_specs=in_specs,
            out_specs=pl.BlockSpec((1, HWo, Cop), lambda b: (b, 0, 0)),
            scratch_shapes=tuple(scratch),
            compiler_params=cparams,
        )(*inputs)
        return jax.block_until_ready(res)

    try:
        out = run(optimized=True)
    except Exception:
        # Conservative fallback: concat-based taps + default double buffering.
        out = run(optimized=False)

    out = out[:, :, :Cout].reshape(N, Ho, Wo, Cout)
    return jnp.transpose(out, (0, 3, 1, 2))                   # NCHW, bf16


# ------------------------------ params & reference ----------------------------
def init_params(key, inplanes, planes, stride):
    cout = 4 * planes
    ks = jax.random.split(key, 8)

    def conv(k, co, ci, kh, kw):
        return 0.1 * jax.random.normal(k, (co, ci, kh, kw), jnp.float32)

    def bn(k, c):
        k1, k2, k3, k4 = jax.random.split(k, 4)
        gamma = jax.random.uniform(k1, (c,), jnp.float32, 0.5, 1.5)
        beta = 0.1 * jax.random.normal(k2, (c,), jnp.float32)
        mean = 0.1 * jax.random.normal(k3, (c,), jnp.float32)
        var = jax.random.uniform(k4, (c,), jnp.float32, 0.5, 1.5)
        return (gamma, beta, mean, var)

    p = dict(
        w1=conv(ks[0], planes, inplanes, 1, 1), bn1=bn(ks[1], planes),
        w2=conv(ks[2], planes, planes, 3, 3),   bn2=bn(ks[3], planes),
        w3=conv(ks[4], cout, planes, 1, 1),     bn3=bn(ks[5], cout),
        wd=None, bnd=None,
    )
    if stride > 1 or inplanes != cout:
        p['wd'] = conv(ks[6], cout, inplanes, 1, 1)
        p['bnd'] = bn(ks[7], cout)
    return p


def bottleneck2d_ref(x, p, stride):
    """Pure-JAX reference mirroring the PyTorch forward (inference-mode BN)."""
    def conv(x, w, pad):
        return jax.lax.conv_general_dilated(
            x, w, (1, 1), [(pad, pad), (pad, pad)],
            dimension_numbers=('NCHW', 'OIHW', 'NCHW'))

    def bn(x, stats):
        gamma, beta, mean, var = stats
        sc = gamma / jnp.sqrt(var + EPS)
        return x * sc[None, :, None, None] + (beta - mean * sc)[None, :, None, None]

    def avgpool(x, s):
        if s == 1:
            return x
        N, C, H, W = x.shape
        return x.reshape(N, C, H // s, s, W // s, s).mean(axis=(3, 5))

    out = jax.nn.relu(bn(conv(x, p['w1'], 0), p['bn1']))
    out = jax.nn.relu(bn(conv(out, p['w2'], 1), p['bn2']))
    out = avgpool(out, stride)
    out = bn(conv(out, p['w3'], 0), p['bn3'])
    identity = x
    if p['wd'] is not None:
        identity = bn(conv(avgpool(x, stride), p['wd'], 0), p['bnd'])
    return jax.nn.relu(out + identity)


# ----------------------------------- main --------------------------------------
if __name__ == "__main__":
    def run_case(key, N, Cin, H, W, planes, stride):
        kx, kp = jax.random.split(key)
        x = jax.random.normal(kx, (N, Cin, H, W), jnp.float32)
        params = init_params(kp, Cin, planes, stride)

        y = jax.block_until_ready(bottleneck2d_pallas(x, params, stride))
        y = y.astype(jnp.float32)
        y_ref = bottleneck2d_ref(x, params, stride)

        assert y.shape == (N, 4 * planes, H // stride, W // stride), y.shape
        # bf16 activations/weights on the MXU with f32 accumulation and bf16 output
        # storage -> relaxed tolerance vs the f32 reference.
        np.testing.assert_allclose(np.asarray(y), np.asarray(y_ref),
                                   atol=1e-1, rtol=1e-1)
        rel_rms = float(jnp.linalg.norm(y - y_ref) /
                        (jnp.linalg.norm(y_ref) + 1e-12))
        assert rel_rms < 4e-2, f"relative RMS error too large: {rel_rms}"

    key = jax.random.PRNGKey(0)
    k1, k2 = jax.random.split(key)
    # stride-2 block with downsample branch (Cin != 4*planes)
    run_case(k1, N=2, Cin=4, H=16, W=16, planes=4, stride=2)
    # stride-1 block without downsample (Cin == 4*planes)
    run_case(k2, N=2, Cin=16, H=16, W=16, planes=4, stride=1)

    print("KERNEL_OK")
</pallas_src>

<mosaic_0001>
module attributes {stable_mosaic.version = 11 : i64} {
  func.func @kernel(%arg0: i32, %arg1: memref<1x256x128xbf16, #tpu.memory_space<vmem>>, %arg2: memref<128x128xbf16, #tpu.memory_space<vmem>>, %arg3: memref<1x128xf32, #tpu.memory_space<vmem>>, %arg4: memref<3x384x128xbf16, #tpu.memory_space<vmem>>, %arg5: memref<1x128xf32, #tpu.memory_space<vmem>>, %arg6: memref<256x1xf32, #tpu.memory_space<vmem>>, %arg7: memref<256x1xf32, #tpu.memory_space<vmem>>, %arg8: memref<256x128xbf16, #tpu.memory_space<vmem>>, %arg9: memref<1x128xf32, #tpu.memory_space<vmem>>, %arg10: memref<1x64x128xbf16, #tpu.memory_space<vmem>>, %arg11: memref<128x128xf32, #tpu.memory_space<vmem>>, %arg12: memref<128x128xf32, #tpu.memory_space<vmem>>) attributes {dimension_semantics = [#tpu.dimension_semantics<parallel>], iteration_bounds = array<i64: 2>, scalar_prefetch = 0 : i64, scratch_operands = 2 : i64, tpu.core_type = #tpu.core_type<tc>, window_params = [{transform_indices = @transform_0, window_bounds = array<i64: 1, 256, 128>}, {pipeline_mode = #tpu.pipeline_mode<synchronous>, transform_indices = @transform_1, window_bounds = array<i64: 128, 128>}, {pipeline_mode = #tpu.pipeline_mode<synchronous>, transform_indices = @transform_2, window_bounds = array<i64: 1, 128>}, {pipeline_mode = #tpu.pipeline_mode<synchronous>, transform_indices = @transform_3, window_bounds = array<i64: 3, 384, 128>}, {pipeline_mode = #tpu.pipeline_mode<synchronous>, transform_indices = @transform_4, window_bounds = array<i64: 1, 128>}, {pipeline_mode = #tpu.pipeline_mode<synchronous>, transform_indices = @transform_5, window_bounds = array<i64: 256, 1>}, {pipeline_mode = #tpu.pipeline_mode<synchronous>, transform_indices = @transform_6, window_bounds = array<i64: 256, 1>}, {pipeline_mode = #tpu.pipeline_mode<synchronous>, transform_indices = @transform_7, window_bounds = array<i64: 256, 128>}, {pipeline_mode = #tpu.pipeline_mode<synchronous>, transform_indices = @transform_8, window_bounds = array<i64: 1, 128>}, {transform_indices = @transform_9, window_bounds = array<i64: 1, 64, 128>}]} {
    %c0 = arith.constant 0 : index
    %c0_0 = arith.constant 0 : index
    %c0_1 = arith.constant 0 : index
    %0 = vector.load %arg1[%c0, %c0_0, %c0_1] : memref<1x256x128xbf16, #tpu.memory_space<vmem>>, vector<1x256x128xbf16>
    %1 = vector.shape_cast %0 : vector<1x256x128xbf16> to vector<256x128xbf16>
    %c0_2 = arith.constant 0 : index
    %c0_3 = arith.constant 0 : index
    %2 = vector.load %arg2[%c0_2, %c0_3] : memref<128x128xbf16, #tpu.memory_space<vmem>>, vector<128x128xbf16>
    %cst = arith.constant dense<0.000000e+00> : vector<256x128xf32>
    %3 = tpu.matmul %1, %2, %cst {dimension_numbers = #tpu.dot_dimension_numbers<[1], [0], [0], [1], [0, 0, 1, 1], [], []>} : vector<256x128xbf16>, vector<128x128xbf16>, vector<256x128xf32> -> vector<256x128xf32>
    %c0_4 = arith.constant 0 : index
    %c0_5 = arith.constant 0 : index
    %4 = vector.load %arg3[%c0_4, %c0_5] : memref<1x128xf32, #tpu.memory_space<vmem>>, vector<1x128xf32>
    %5 = vector.broadcast %4 : vector<1x128xf32> to vector<256x128xf32>
    %6 = arith.addf %3, %5 : vector<256x128xf32>
    %cst_6 = arith.constant 0.000000e+00 : f32
    %7 = vector.broadcast %cst_6 : f32 to vector<256x128xf32>
    %8 = arith.maximumf %6, %7 : vector<256x128xf32>
    %c0_7 = arith.constant 0 : index
    %c0_8 = arith.constant 0 : index
    %9 = vector.load %arg6[%c0_7, %c0_8] : memref<256x1xf32, #tpu.memory_space<vmem>>, vector<256x1xf32>
    %c0_9 = arith.constant 0 : index
    %c0_10 = arith.constant 0 : index
    %10 = vector.load %arg7[%c0_9, %c0_10] : memref<256x1xf32, #tpu.memory_space<vmem>>, vector<256x1xf32>
    %cst_11 = arith.constant 0.000000e+00 : f32
    %11 = vector.broadcast %cst_11 : f32 to vector<16x128xf32>
    %cst_12 = arith.constant 0.000000e+00 : f32
    %12 = vector.broadcast %cst_12 : f32 to vector<256x128xf32>
    %13 = vector.extract_strided_slice %8 {offsets = [0, 0], sizes = [240, 128], strides = [1, 1]} : vector<256x128xf32> to vector<240x128xf32>
    %14 = tpu.concatenate %11, %13 in 0 : vector<16x128xf32>, vector<240x128xf32> -> vector<256x128xf32>
    %cst_13 = arith.constant 0.000000e+00 : f32
    %15 = vector.broadcast %cst_13 : f32 to vector<1x128xf32>
    %16 = vector.extract_strided_slice %14 {offsets = [0, 0], sizes = [255, 128], strides = [1, 1]} : vector<256x128xf32> to vector<255x128xf32>
    %17 = tpu.concatenate %15, %16 in 0 : vector<1x128xf32>, vector<255x128xf32> -> vector<256x128xf32>
    %18 = vector.broadcast %9 : vector<256x1xf32> to vector<256x128xf32>
    %19 = arith.mulf %17, %18 : vector<256x128xf32>
    %20 = vector.extract_strided_slice %14 {offsets = [1, 0], sizes = [255, 128], strides = [1, 1]} : vector<256x128xf32> to vector<255x128xf32>
    %cst_14 = arith.constant 0.000000e+00 : f32
    %21 = vector.broadcast %cst_14 : f32 to vector<1x128xf32>
    %22 = tpu.concatenate %20, %21 in 0 : vector<255x128xf32>, vector<1x128xf32> -> vector<256x128xf32>
    %23 = vector.broadcast %10 : vector<256x1xf32> to vector<256x128xf32>
    %24 = arith.mulf %22, %23 : vector<256x128xf32>
    %25 = arith.truncf %19 : vector<256x128xf32> to vector<256x128xbf16>
    %26 = arith.truncf %14 : vector<256x128xf32> to vector<256x128xbf16>
    %27 = arith.truncf %24 : vector<256x128xf32> to vector<256x128xbf16>
    %28 = tpu.concatenate %25, %26, %27 in 1 : vector<256x128xbf16>, vector<256x128xbf16>, vector<256x128xbf16> -> vector<256x384xbf16>
    %c0_15 = arith.constant 0 : index
    %c0_16 = arith.constant 0 : index
    %c0_17 = arith.constant 0 : index
    %29 = vector.load %arg4[%c0_15, %c0_16, %c0_17] : memref<3x384x128xbf16, #tpu.memory_space<vmem>>, vector<1x384x128xbf16>
    %30 = vector.shape_cast %29 : vector<1x384x128xbf16> to vector<384x128xbf16>
    %cst_18 = arith.constant dense<0.000000e+00> : vector<256x128xf32>
    %31 = tpu.matmul %28, %30, %cst_18 {dimension_numbers = #tpu.dot_dimension_numbers<[1], [0], [0], [1], [0, 0, 1, 1], [], []>} : vector<256x384xbf16>, vector<384x128xbf16>, vector<256x128xf32> -> vector<256x128xf32>
    %32 = arith.addf %12, %31 : vector<256x128xf32>
    %cst_19 = arith.constant 0.000000e+00 : f32
    %33 = vector.broadcast %cst_19 : f32 to vector<1x128xf32>
    %34 = vector.extract_strided_slice %8 {offsets = [0, 0], sizes = [255, 128], strides = [1, 1]} : vector<256x128xf32> to vector<255x128xf32>
    %35 = tpu.concatenate %33, %34 in 0 : vector<1x128xf32>, vector<255x128xf32> -> vector<256x128xf32>
    %36 = vector.broadcast %9 : vector<256x1xf32> to vector<256x128xf32>
    %37 = arith.mulf %35, %36 : vector<256x128xf32>
    %38 = vector.extract_strided_slice %8 {offsets = [1, 0], sizes = [255, 128], strides = [1, 1]} : vector<256x128xf32> to vector<255x128xf32>
    %cst_20 = arith.constant 0.000000e+00 : f32
    %39 = vector.broadcast %cst_20 : f32 to vector<1x128xf32>
    %40 = tpu.concatenate %38, %39 in 0 : vector<255x128xf32>, vector<1x128xf32> -> vector<256x128xf32>
    %41 = vector.broadcast %10 : vector<256x1xf32> to vector<256x128xf32>
    %42 = arith.mulf %40, %41 : vector<256x128xf32>
    %43 = arith.truncf %37 : vector<256x128xf32> to vector<256x128xbf16>
    %44 = arith.truncf %8 : vector<256x128xf32> to vector<256x128xbf16>
    %45 = arith.truncf %42 : vector<256x128xf32> to vector<256x128xbf16>
    %46 = tpu.concatenate %43, %44, %45 in 1 : vector<256x128xbf16>, vector<256x128xbf16>, vector<256x128xbf16> -> vector<256x384xbf16>
    %c1 = arith.constant 1 : index
    %c0_21 = arith.constant 0 : index
    %c0_22 = arith.constant 0 : index
    %47 = vector.load %arg4[%c1, %c0_21, %c0_22] : memref<3x384x128xbf16, #tpu.memory_space<vmem>>, vector<1x384x128xbf16>
    %48 = vector.shape_cast %47 : vector<1x384x128xbf16> to vector<384x128xbf16>
    %cst_23 = arith.constant dense<0.000000e+00> : vector<256x128xf32>
    %49 = tpu.matmul %46, %48, %cst_23 {dimension_numbers = #tpu.dot_dimension_numbers<[1], [0], [0], [1], [0, 0, 1, 1], [], []>} : vector<256x384xbf16>, vector<384x128xbf16>, vector<256x128xf32> -> vector<256x128xf32>
    %50 = arith.addf %32, %49 : vector<256x128xf32>
    %51 = vector.extract_strided_slice %8 {offsets = [16, 0], sizes = [240, 128], strides = [1, 1]} : vector<256x128xf32> to vector<240x128xf32>
    %52 = tpu.concatenate %51, %11 in 0 : vector<240x128xf32>, vector<16x128xf32> -> vector<256x128xf32>
    %cst_24 = arith.constant 0.000000e+00 : f32
    %53 = vector.broadcast %cst_24 : f32 to vector<1x128xf32>
    %54 = vector.extract_strided_slice %52 {offsets = [0, 0], sizes = [255, 128], strides = [1, 1]} : vector<256x128xf32> to vector<255x128xf32>
    %55 = tpu.concatenate %53, %54 in 0 : vector<1x128xf32>, vector<255x128xf32> -> vector<256x128xf32>
    %56 = vector.broadcast %9 : vector<256x1xf32> to vector<256x128xf32>
    %57 = arith.mulf %55, %56 : vector<256x128xf32>
    %58 = vector.extract_strided_slice %52 {offsets = [1, 0], sizes = [255, 128], strides = [1, 1]} : vector<256x128xf32> to vector<255x128xf32>
    %cst_25 = arith.constant 0.000000e+00 : f32
    %59 = vector.broadcast %cst_25 : f32 to vector<1x128xf32>
    %60 = tpu.concatenate %58, %59 in 0 : vector<255x128xf32>, vector<1x128xf32> -> vector<256x128xf32>
    %61 = vector.broadcast %10 : vector<256x1xf32> to vector<256x128xf32>
    %62 = arith.mulf %60, %61 : vector<256x128xf32>
    %63 = arith.truncf %57 : vector<256x128xf32> to vector<256x128xbf16>
    %64 = arith.truncf %52 : vector<256x128xf32> to vector<256x128xbf16>
    %65 = arith.truncf %62 : vector<256x128xf32> to vector<256x128xbf16>
    %66 = tpu.concatenate %63, %64, %65 in 1 : vector<256x128xbf16>, vector<256x128xbf16>, vector<256x128xbf16> -> vector<256x384xbf16>
    %c2 = arith.constant 2 : index
    %c0_26 = arith.constant 0 : index
    %c0_27 = arith.constant 0 : index
    %67 = vector.load %arg4[%c2, %c0_26, %c0_27] : memref<3x384x128xbf16, #tpu.memory_space<vmem>>, vector<1x384x128xbf16>
    %68 = vector.shape_cast %67 : vector<1x384x128xbf16> to vector<384x128xbf16>
    %cst_28 = arith.constant dense<0.000000e+00> : vector<256x128xf32>
    %69 = tpu.matmul %66, %68, %cst_28 {dimension_numbers = #tpu.dot_dimension_numbers<[1], [0], [0], [1], [0, 0, 1, 1], [], []>} : vector<256x384xbf16>, vector<384x128xbf16>, vector<256x128xf32> -> vector<256x128xf32>
    %70 = arith.addf %50, %69 : vector<256x128xf32>
    %c0_29 = arith.constant 0 : index
    %c0_30 = arith.constant 0 : index
    %71 = vector.load %arg5[%c0_29, %c0_30] : memref<1x128xf32, #tpu.memory_space<vmem>>, vector<1x128xf32>
    %72 = vector.broadcast %71 : vector<1x128xf32> to vector<256x128xf32>
    %73 = arith.addf %70, %72 : vector<256x128xf32>
    %cst_31 = arith.constant 0.000000e+00 : f32
    %74 = vector.broadcast %cst_31 : f32 to vector<256x128xf32>
    %75 = arith.maximumf %73, %74 : vector<256x128xf32>
    %76 = vector.shape_cast %75 : vector<256x128xf32> to vector<8x2x16x128xf32>
    %77 = vector.extract_strided_slice %76 {offsets = [0, 0, 0, 0], sizes = [8, 1, 16, 128], strides = [1, 1, 1, 1]} : vector<8x2x16x128xf32> to vector<8x1x16x128xf32>
    %78 = vector.shape_cast %77 : vector<8x1x16x128xf32> to vector<8x16x128xf32>
    %79 = vector.extract_strided_slice %76 {offsets = [0, 1, 0, 0], sizes = [8, 1, 16, 128], strides = [1, 1, 1, 1]} : vector<8x2x16x128xf32> to vector<8x1x16x128xf32>
    %80 = vector.shape_cast %79 : vector<8x1x16x128xf32> to vector<8x16x128xf32>
    %81 = arith.addf %78, %80 : vector<8x16x128xf32>
    %82 = vector.shape_cast %81 : vector<8x16x128xf32> to vector<128x128xf32>
    %c0_32 = arith.constant 0 : index
    %c0_33 = arith.constant 0 : index
    %83 = vector.load %arg11[%c0_32, %c0_33] : memref<128x128xf32, #tpu.memory_space<vmem>>, vector<128x128xf32>
    tpu.vector_store %arg11[%c0_32, %c0_33], %82 {strides = array<i32>} : memref<128x128xf32, #tpu.memory_space<vmem>>, vector<128x128xf32>,
    %c0_34 = arith.constant 0 : index
    %c0_35 = arith.constant 0 : index
    %84 = tpu.strided_load %arg11[%c0_34, %c0_35] {strides = array<i32: 2, 1>} : memref<128x128xf32, #tpu.memory_space<vmem>>, vector<64x128xf32>
    %c1_36 = arith.constant 1 : index
    %c0_37 = arith.constant 0 : index
    %85 = tpu.strided_load %arg11[%c1_36, %c0_37] {strides = array<i32: 2, 1>} : memref<128x128xf32, #tpu.memory_space<vmem>>, vector<64x128xf32>
    %86 = arith.addf %84, %85 : vector<64x128xf32>
    %87 = arith.extf %1 : vector<256x128xbf16> to vector<256x128xf32>
    %88 = vector.shape_cast %87 : vector<256x128xf32> to vector<8x2x16x128xf32>
    %89 = vector.extract_strided_slice %88 {offsets = [0, 0, 0, 0], sizes = [8, 1, 16, 128], strides = [1, 1, 1, 1]} : vector<8x2x16x128xf32> to vector<8x1x16x128xf32>
    %90 = vector.shape_cast %89 : vector<8x1x16x128xf32> to vector<8x16x128xf32>
    %91 = vector.extract_strided_slice %88 {offsets = [0, 1, 0, 0], sizes = [8, 1, 16, 128], strides = [1, 1, 1, 1]} : vector<8x2x16x128xf32> to vector<8x1x16x128xf32>
    %92 = vector.shape_cast %91 : vector<8x1x16x128xf32> to vector<8x16x128xf32>
    %93 = arith.addf %90, %92 : vector<8x16x128xf32>
    %94 = vector.shape_cast %93 : vector<8x16x128xf32> to vector<128x128xf32>
    %c0_38 = arith.constant 0 : index
    %c0_39 = arith.constant 0 : index
    %95 = vector.load %arg12[%c0_38, %c0_39] : memref<128x128xf32, #tpu.memory_space<vmem>>, vector<128x128xf32>
    tpu.vector_store %arg12[%c0_38, %c0_39], %94 {strides = array<i32>} : memref<128x128xf32, #tpu.memory_space<vmem>>, vector<128x128xf32>,
    %c0_40 = arith.constant 0 : index
    %c0_41 = arith.constant 0 : index
    %96 = tpu.strided_load %arg12[%c0_40, %c0_41] {strides = array<i32: 2, 1>} : memref<128x128xf32, #tpu.memory_space<vmem>>, vector<64x128xf32>
    %c1_42 = arith.constant 1 : index
    %c0_43 = arith.constant 0 : index
    %97 = tpu.strided_load %arg12[%c1_42, %c0_43] {strides = array<i32: 2, 1>} : memref<128x128xf32, #tpu.memory_space<vmem>>, vector<64x128xf32>
    %98 = arith.addf %96, %97 : vector<64x128xf32>
    %99 = arith.truncf %98 : vector<64x128xf32> to vector<64x128xbf16>
    %100 = arith.truncf %86 : vector<64x128xf32> to vector<64x128xbf16>
    %101 = tpu.concatenate %100, %99 in 1 : vector<64x128xbf16>, vector<64x128xbf16> -> vector<64x256xbf16>
    %c0_44 = arith.constant 0 : index
    %c0_45 = arith.constant 0 : index
    %102 = vector.load %arg8[%c0_44, %c0_45] : memref<256x128xbf16, #tpu.memory_space<vmem>>, vector<256x128xbf16>
    %cst_46 = arith.constant dense<0.000000e+00> : vector<64x128xf32>
    %103 = tpu.matmul %101, %102, %cst_46 {dimension_numbers = #tpu.dot_dimension_numbers<[1], [0], [0], [1], [0, 0, 1, 1], [], []>} : vector<64x256xbf16>, vector<256x128xbf16>, vector<64x128xf32> -> vector<64x128xf32>
    %c0_47 = arith.constant 0 : index
    %c0_48 = arith.constant 0 : index
    %104 = vector.load %arg9[%c0_47, %c0_48] : memref<1x128xf32, #tpu.memory_space<vmem>>, vector<1x128xf32>
    %105 = vector.broadcast %104 : vector<1x128xf32> to vector<64x128xf32>
    %106 = arith.addf %103, %105 : vector<64x128xf32>
    %cst_49 = arith.constant 0.000000e+00 : f32
    %107 = vector.broadcast %cst_49 : f32 to vector<64x128xf32>
    %108 = arith.maximumf %106, %107 : vector<64x128xf32>
    %109 = arith.truncf %108 : vector<64x128xf32> to vector<64x128xbf16>
    %c0_50 = arith.constant 0 : index
    %c0_51 = arith.constant 0 : index
    %c0_52 = arith.constant 0 : index
    %110 = vector.load %arg10[%c0_50, %c0_51, %c0_52] : memref<1x64x128xbf16, #tpu.memory_space<vmem>>, vector<1x64x128xbf16>
    %111 = vector.shape_cast %110 : vector<1x64x128xbf16> to vector<64x128xbf16>
    %112 = vector.shape_cast %109 : vector<64x128xbf16> to vector<1x64x128xbf16>
    tpu.vector_store %arg10[%c0_50, %c0_51, %c0_52], %112 {strides = array<i32>} : memref<1x64x128xbf16, #tpu.memory_space<vmem>>, vector<1x64x128xbf16>,
    return
  }
  func.func @transform_0(%arg0: i32) -> (i32, i32, i32) {
    %c0_i32 = arith.constant 0 : i32
    %c0_i32_0 = arith.constant 0 : i32
    %c0_i32_1 = arith.constant 0 : i32
    return %arg0, %c0_i32, %c0_i32_0 : i32, i32, i32
  }
  func.func @transform_1(%arg0: i32) -> (i32, i32) {
    %c0_i32 = arith.constant 0 : i32
    %c0_i32_0 = arith.constant 0 : i32
    %c0_i32_1 = arith.constant 0 : i32
    return %c0_i32, %c0_i32_0 : i32, i32
  }
  func.func @transform_2(%arg0: i32) -> (i32, i32) {
    %c0_i32 = arith.constant 0 : i32
    %c0_i32_0 = arith.constant 0 : i32
    %c0_i32_1 = arith.constant 0 : i32
    return %c0_i32, %c0_i32_0 : i32, i32
  }
  func.func @transform_3(%arg0: i32) -> (i32, i32, i32) {
    %c0_i32 = arith.constant 0 : i32
    %c0_i32_0 = arith.constant 0 : i32
    %c0_i32_1 = arith.constant 0 : i32
    %c0_i32_2 = arith.constant 0 : i32
    return %c0_i32, %c0_i32_0, %c0_i32_1 : i32, i32, i32
  }
  func.func @transform_4(%arg0: i32) -> (i32, i32) {
    %c0_i32 = arith.constant 0 : i32
    %c0_i32_0 = arith.constant 0 : i32
    %c0_i32_1 = arith.constant 0 : i32
    return %c0_i32, %c0_i32_0 : i32, i32
  }
  func.func @transform_5(%arg0: i32) -> (i32, i32) {
    %c0_i32 = arith.constant 0 : i32
    %c0_i32_0 = arith.constant 0 : i32
    %c0_i32_1 = arith.constant 0 : i32
    return %c0_i32, %c0_i32_0 : i32, i32
  }
  func.func @transform_6(%arg0: i32) -> (i32, i32) {
    %c0_i32 = arith.constant 0 : i32
    %c0_i32_0 = arith.constant 0 : i32
    %c0_i32_1 = arith.constant 0 : i32
    return %c0_i32, %c0_i32_0 : i32, i32
  }
  func.func @transform_7(%arg0: i32) -> (i32, i32) {
    %c0_i32 = arith.constant 0 : i32
    %c0_i32_0 = arith.constant 0 : i32
    %c0_i32_1 = arith.constant 0 : i32
    return %c0_i32, %c0_i32_0 : i32, i32
  }
  func.func @transform_8(%arg0: i32) -> (i32, i32) {
    %c0_i32 = arith.constant 0 : i32
    %c0_i32_0 = arith.constant 0 : i32
    %c0_i32_1 = arith.constant 0 : i32
    return %c0_i32, %c0_i32_0 : i32, i32
  }
  func.func @transform_9(%arg0: i32) -> (i32, i32, i32) {
    %c0_i32 = arith.constant 0 : i32
    %c0_i32_0 = arith.constant 0 : i32
    %c0_i32_1 = arith.constant 0 : i32
    return %arg0, %c0_i32, %c0_i32_0 : i32, i32, i32
  }
}

</mosaic_0001>

<bundles_post_ra>
// kernel: tpu_custom_call.1
= control target key start
LH: loop header
LB: loop body
LE: loop exit
PB: predicated region body
PF: predicated region fallthrough
CT: control target
= control target key end

     0   :  { %14 = vsyncpa [#allocation5], 0  ;;  %s7447_s0 = inlined_call_operand.vmem [shape: bf16[2,256,128], index: 0, kind: input, shape index: {}]   ;;  %s7448_s1 = inlined_call_operand.vmem [shape: bf16[128,128], index: 1, kind: input, shape index: {}]   ;;  %s7449_s2 = inlined_call_operand.vmem [shape: f32[1,128], index: 2, kind: input, shape index: {}]   ;;  %s7450_s3 = inlined_call_operand.hbm [shape: bf16[3,384,128], index: 3, kind: input, shape index: {}]   ;;  %s7451_s4 = inlined_call_operand.vmem [shape: f32[1,128], index: 4, kind: input, shape index: {}]   ;;  %s7452_s5 = inlined_call_operand.vmem [shape: f32[256,1], index: 5, kind: input, shape index: {}]   ;;  %s7453_s6 = inlined_call_operand.vmem [shape: f32[256,1], index: 6, kind: input, shape index: {}]   ;;  %s7454_s7 = inlined_call_operand.vmem [shape: bf16[256,128], index: 7, kind: input, shape index: {}]   ;;  %s7455_s8 = inlined_call_operand.vmem [shape: f32[1,128], index: 8, kind: input, shape index: {}]   ;;  %s7456_s9 = inlined_call_operand.hbm [shape: bf16[2,64,128], index: 9, kind: output, shape index: {}]  }
   0x1   :  { %15 = vsyncpa [#allocation6], 0 }
   0x2   :  { %17 = vsyncpa [#allocation6 + $0x1], 0  ;;  %s5194_s30 = smov 0   ;;  %s5196_s10 = smov 0  }
   0x3   :  { %s5198_s11 = smov 0   ;;  %s5200_s12 = smov 0  }
   0x4 LB: > { %s5215_s13 = sadd.s32 4294967295, %s5133_s12   ;;  %s3842_s14 = sadd.s32 4294967294, %s5133_s12   ;;  %s5133_s12 = sphi %s5200_s12, %s8271_s12   ;;  %s5129_s11 = sphi %s5198_s11, %s8270_s11   ;;  %s5125_s10 = sphi %s5196_s10, %s8269_s10   ;;  %s5121_s30 = sphi %s5194_s30, %s8268_s30  }
   0x5   : > { %s5219_s15 = sadd.s32 1, %s5133_s12   ;;  %s224_s16 = sadd.s32 1, %s5129_s11 }
   0x6   : > { %s221_s17 = ssub.s32 %s5133_s12, %s5219_s15  ;;  %p234_p0 = scmp.ne.s32.totalorder %s5129_s11, %s5125_s10 }
   0x7   : > { %p222_p1 = scmp.eq.s32.totalorder %s221_s17, 0  ;;  %p235_p2 = scmp.eq.s32.totalorder %s5215_s13, 1 }
   0x8   : > { %p240_p3 = scmp.ne.s32.totalorder %s5125_s10, %s5121_s30  ;;  %p241_p4 = scmp.eq.s32.totalorder %s3842_s14, 1 }
   0x9   : > { %s5230_s18 = scalar_select %p222_p1, %s5129_s11, %s224_s16  }
   0xa   : > { %p5232_p5 = por %p235_p2, %p234_p0  ;;  %p5236_p6 = por %p241_p4, %p240_p3 }
   0xb   : > { %p3843_p7 = scmp.ge.s32.totalorder %s5133_s12, 1  ;;  %p248_p8 = scmp.lt.s32.totalorder %s5133_s12, 3 }
   0xc   : > { %s7741_s19 = scalar_select %p5232_p5, 1, 0 }
   0xd   : > { %s7742_s20 = scalar_select %p5236_p6, 1, 0 }
   0xe   : > { %p7457_p9 = scmp.eq.s32.totalorder %s5215_s13, 0  ;;  %p5243_p10 = pnand %p3843_p7, %p248_p8 }
   0xf   : > { %s5135_s22 = smov [#allocation4]   ;;  %s5039_s27 = scalar_lea.hbm %s7450_s3, 9216 }
  0x10   : > { %s7743_s21 = scalar_select %p5243_p10, 1, 0 }
  0x11   : > { %s266_s23 = sshll.u32 %s5135_s22, 4  ;;  %p4858_p11 = pneg %p5243_p10  ;;  %s267_s23 = int_to_ptr.vmem [resolvable:$true] %s266_s23 }
  0x12   : > { %p5040_p13 = scmp.ne.s32.totalorder %s7450_s3, %s5039_s27  ;;  %p5046_p3 = scmp.lt.u32.totalorder %s5039_s27, %s7450_s3 }
  0x13   : > { %p5251_p12 = pnand %p7457_p9, %p4858_p11 }
  0x15   : > { %p5041_p0 = pneg %p5251_p12 }
  0x17   : > { %p5042_p1 = pnand %p5041_p0, %p5040_p13 }
  0x19   : > { %p5043_p2 = pneg %p5042_p1 }
  0x1b   : > { %p5048_p4 = pnand %p5046_p3, %p5043_p2 }
  0x1d   : > { %5051 = shalt.err (!%p5048_p4)
}
  0x1e   : > { %s5052_s17 = scalar_lea.vmem %s267_s23, 9216  ;;  %p5060_p9 = scmp.lt.s32.totalorder %s267_s23, %s267_s23 }
  0x1f   : > { %p5053_p7 = scmp.ne.s32.totalorder %s267_s23, %s5052_s17  ;;  %p5061_p6 = scmp.lt.s32.totalorder %s5052_s17, %s5052_s17 }
  0x21   : > { %p5055_p8 = pnand %p5053_p7, %p5041_p0  ;;  %p5062_p5 = por %p5061_p6, %p5060_p9 }
  0x23   : > { %p5056_p11 = pneg %p5055_p8 }
  0x25   : > { %p5063_p10 = pnand %p5062_p5, %p5056_p11 }
  0x27   : > { %5066 = shalt.err (!%p5063_p10)
}
  0x28   : > { %s5136_s22 = smov 64   ;;  %s5137_s25 = smov 4  }
  0x29   : > { %4861 = dma.hbm_to_vmem [thread:$0]  (!%p5251_p12), %s7450_s3, 9216, %s267_s23, [#allocation5], %s5136_s22, %s5136_s22, %s5137_s25  }
  0x2a   : > { %p7745_p13 = scmp.ne.s32.totalorder %s7743_s21, 0 }
  0x2c   : > { %305 = sbr.rel (%p7745_p13) target bundleno = 1101 (0x44d), region = 56 }
  0x33   : > { %p7746_p1 = scmp.eq.s32.totalorder %s5215_s13, 0 }
  0x35   : > { %5112 = dma.done.wait (%p7746_p1), [#allocation5], 9216   ;;  %p7747_p0 = pmov %p7746_p1 }
  0x36   : > { %v5138_v0 = vmov 0   ;;  %v741_v1 = vld [vmem:[%s7452_s5 + $0x10] sm:$0xff]  ;;  %v739_v2 = vld [vmem:[%s7452_s5] sm:$0xff]  ;;  %p341_p5 = scmp.lt.s32.totalorder %s5215_s13, 1  ;;  %v742_v4 = vld [vmem:[%s7452_s5 + $0x18] sm:$0xff]  ;;  %vm834_vm0 = vcmask 1040384  }
  0x37   : > { %5114 = vsyncadd (%p7747_p0), [#allocation5], 4294958080  ;;  %4910 = vset.pattern.permute.xlu1 %v5138_v0  ;;  %4909 = vset.pattern.permute.xlu0 %v5138_v0  ;;  %v4911_v3 = vld [vmem:[%s7448_s1] sm:$0xff]   ;;  %v740_v5 = vld [vmem:[%s7452_s5 + $0x8] sm:$0xff]  ;;  %vm1122_vm1 = vcmask 1046528   ;;  %s338_s26 = sand.u32 1, %s5125_s10  }
  0x38   : > { %942 = vperm.xlu1 %4910, %v741_v1   ;;  %932 = vperm.xlu0 %4909, %v739_v2   ;;  %v4912_v6 = vld [vmem:[%s7448_s1 + $0x8] sm:$0xff]   ;;  %s342_s27 = scalar_select %p341_p5, %s5215_s13, 1  ;;  %v743_v8 = vld [vmem:[%s7452_s5 + $0x20] sm:$0xff]  ;;  %v4913_v9 = vld [vmem:[%s7448_s1 + $0x10] sm:$0xff]  }
  0x39   : > { %4484 = vmatprep.subr.bf16.mxu0 %v4911_v3  ;;  %v744_v7 = vld [vmem:[%s7452_s5 + $0x28] sm:$0xff]  ;;  %v746_v10 = vld [vmem:[%s7452_s5 + $0x38] sm:$0xff]  ;;  %v745_v11 = vld [vmem:[%s7452_s5 + $0x30] sm:$0xff]  ;;  %s3848_s28 = sshll.u32 %s338_s26, 5  ;;  %s3988_s24 = sshll.u32 %s5215_s13, 9 }
  0x3a   : > { %4485 = vmatpush3.bf16.msra.mxu0 %v4911_v3  ;;  %s3979_s17 = sshll.u32 %s342_s27, 7  ;;  %v4914_v12 = vld [vmem:[%s7448_s1 + $0x18] sm:$0xff]   ;;  %v748_v13 = vld [vmem:[%s7452_s5 + $0x48] sm:$0xff]  ;;  %v747_v14 = vld [vmem:[%s7452_s5 + $0x40] sm:$0xff]  ;;  %s7401_s21 = scalar_lea.hbm %s7456_s9, %s3988_s24 }
  0x3b   : > { %4486 = vmatprep.subr.bf16.mxu0 %v4912_v6  ;;  %s5318_s14 = scalar_lea.vmem %s7447_s0, %s3979_s17  ;;  %v4915_v15 = vld [vmem:[%s7448_s1 + $0x20] sm:$0xff]   ;;  %v772_v23 = vld [vmem:[%s7453_s6 + $0x8] sm:$0xff]  ;;  %v774_v42 = vld [vmem:[%s7453_s6 + $0x18] sm:$0xff]  ;;  %s7406_s27 = scalar_lea.sflag [#allocation6], %s338_s26 }
  0x3c   : > { %947 = vperm.xlu1 %4910, %v742_v4   ;;  %937 = vperm.xlu0 %4909, %v740_v5   ;;  %v347_v16 = vld [vmem:[%s5318_s14] sm:$0xff]   ;;  %v5331_v17 = vld [vmem:[%s5318_s14 + $0x8] sm:$0xff]   ;;  %v5336_v22 = vld [vmem:[%s5318_s14 + $0x10] sm:$0xff]   ;;  %p8266_p9 = scmp.ne.s32.totalorder %s7741_s19, 0  ;;  %s5141_s13 = smov [#allocation7]  }
  0x3d   : > { %v3395_v18 = vunpack.c.l.bf16 %v347_v16  ;;  %v3396_v19 = vunpack.c.h.bf16 %v347_v16  ;;  %v3397_v20 = vunpack.c.l.bf16 %v5331_v17  ;;  %v3398_v21 = vunpack.c.h.bf16 %v5331_v17  ;;  %v5344_v27 = vld [vmem:[%s5318_s14 + $0x18] sm:$0xff]   ;;  %v771_v28 = vld [vmem:[%s7453_s6] sm:$0xff]  ;;  %v4916_v29 = vld [vmem:[%s7448_s1 + $0x28] sm:$0xff]   ;;  %4500 = vmatprep.mubr.bf16.mxu0 %v347_v16  ;;  %s5071_s22 = sshll.u32 %s5141_s13, 4  ;;  %s5072_s22 = int_to_ptr.vmem [resolvable:$false] %s5071_s22 }
  0x3e   : > { %4487 = vmatpush3.bf16.msra.mxu0 %v4912_v6  ;;  %v3399_v25 = vunpack.c.l.bf16 %v5336_v22  ;;  %v3400_v26 = vunpack.c.h.bf16 %v5336_v22  ;;  %v3401_v31 = vunpack.c.l.bf16 %v5344_v27  ;;  %v3402_v32 = vunpack.c.h.bf16 %v5344_v27  ;;  %v5355_v33 = vld [vmem:[%s5318_s14 + $0x20] sm:$0xff]   ;;  %v5360_v36 = vld [vmem:[%s5318_s14 + $0x28] sm:$0xff]   ;;  %v5365_v41 = vld [vmem:[%s5318_s14 + $0x30] sm:$0xff]   ;;  %s5073_s25 = scalar_lea.vmem %s5072_s22, 1024 }
  0x3f   : > { %4488 = vmatprep.subr.bf16.mxu0 %v4913_v9  ;;  %v3427_v24 = vadd.f32 %v3397_v20, %v3395_v18  ;;  %v3428_v30 = vadd.f32 %v3398_v21, %v3396_v19  ;;  %v3403_v34 = vunpack.c.l.bf16 %v5355_v33  ;;  %v3404_v35 = vunpack.c.h.bf16 %v5355_v33  ;;  %v5373_v45 = vld [vmem:[%s5318_s14 + $0x38] sm:$0xff]   ;;  %v773_v46 = vld [vmem:[%s7453_s6 + $0x10] sm:$0xff]  ;;  %v5384_v52 = vld [vmem:[%s5318_s14 + $0x40] sm:$0xff]  }
  0x40   : > { %957 = vperm.xlu1 %4910, %v744_v7   ;;  %952 = vperm.xlu0 %4909, %v743_v8   ;;  %v3429_v37 = vadd.f32 %v3401_v31, %v3399_v25  ;;  %v3430_v38 = vadd.f32 %v3402_v32, %v3400_v26  ;;  %v3405_v39 = vunpack.c.l.bf16 %v5360_v36  ;;  %v3406_v40 = vunpack.c.h.bf16 %v5360_v36  ;;  %v4917_v47 = vld [vmem:[%s7448_s1 + $0x30] sm:$0xff]   ;;  %v5389_v55 = vld [vmem:[%s5318_s14 + $0x48] sm:$0xff]   ;;  %v750_v61 = vld [vmem:[%s7452_s5 + $0x58] sm:$0xff] }
  0x41   : > { %3443 = vst [vmem:[#allocation3] sm:$0xff] %v3427_v24  ;;  %3444 = vst [vmem:[#allocation3 + $0x8] sm:$0xff] %v3428_v30  ;;  %v3407_v43 = vunpack.c.l.bf16 %v5365_v41  ;;  %v3408_v44 = vunpack.c.h.bf16 %v5365_v41  ;;  %v3409_v50 = vunpack.c.l.bf16 %v5373_v45  ;;  %v3410_v51 = vunpack.c.h.bf16 %v5373_v45  ;;  %v5394_v60 = vld [vmem:[%s5318_s14 + $0x50] sm:$0xff]   ;;  %v5402_v0 = vld [vmem:[%s5318_s14 + $0x58] sm:$0xff]  }
  0x42   : > { %4489 = vmatpush3.bf16.msra.mxu0 %v4913_v9  ;;  %3445 = vst [vmem:[#allocation3 + $0x10] sm:$0xff] %v3429_v37  ;;  %3446 = vst [vmem:[#allocation3 + $0x18] sm:$0xff] %v3430_v38  ;;  %v3431_v48 = vadd.f32 %v3405_v39, %v3403_v34  ;;  %v3432_v49 = vadd.f32 %v3406_v40, %v3404_v35  ;;  %v3411_v53 = vunpack.c.l.bf16 %v5384_v52  ;;  %v3412_v54 = vunpack.c.h.bf16 %v5384_v52  ;;  %v749_v1 = vld [vmem:[%s7452_s5 + $0x50] sm:$0xff]  ;;  %v4918_v2 = vld [vmem:[%s7448_s1 + $0x38] sm:$0xff]  }
  0x43   : > { %4490 = vmatprep.subr.bf16.mxu0 %v4914_v12  ;;  %v3433_v56 = vadd.f32 %v3409_v50, %v3407_v43  ;;  %v3434_v57 = vadd.f32 %v3410_v51, %v3408_v44  ;;  %v3413_v58 = vunpack.c.l.bf16 %v5389_v55  ;;  %v3414_v59 = vunpack.c.h.bf16 %v5389_v55  ;;  %v5413_v7 = vld [vmem:[%s5318_s14 + $0x60] sm:$0xff]   ;;  %v5428_v19 = vld [vmem:[%s5318_s14 + $0x78] sm:$0xff]   ;;  %v776_v20 = vld [vmem:[%s7453_s6 + $0x28] sm:$0xff] }
  0x44   : > { %967 = vperm.xlu1 %4910, %v746_v10   ;;  %962 = vperm.xlu0 %4909, %v745_v11   ;;  %3447 = vst [vmem:[#allocation3 + $0x20] sm:$0xff] %v3431_v48  ;;  %3448 = vst [vmem:[#allocation3 + $0x28] sm:$0xff] %v3432_v49  ;;  %v3415_v62 = vunpack.c.l.bf16 %v5394_v60  ;;  %v3416_v63 = vunpack.c.h.bf16 %v5394_v60  ;;  %v3417_v5 = vunpack.c.l.bf16 %v5402_v0  ;;  %v3418_v6 = vunpack.c.h.bf16 %v5402_v0  ;;  %v5418_v10 = vld [vmem:[%s5318_s14 + $0x68] sm:$0xff]   ;;  %v775_v21 = vld [vmem:[%s7453_s6 + $0x20] sm:$0xff] }
  0x45   : > { %3449 = vst [vmem:[#allocation3 + $0x30] sm:$0xff] %v3433_v56  ;;  %3450 = vst [vmem:[#allocation3 + $0x38] sm:$0xff] %v3434_v57  ;;  %v3435_v3 = vadd.f32 %v3413_v58, %v3411_v53  ;;  %v3436_v4 = vadd.f32 %v3414_v59, %v3412_v54  ;;  %v3419_v8 = vunpack.c.l.bf16 %v5413_v7  ;;  %v3420_v9 = vunpack.c.h.bf16 %v5413_v7  ;;  %v778_v30 = vld [vmem:[%s7453_s6 + $0x38] sm:$0xff]  ;;  %v777_v31 = vld [vmem:[%s7453_s6 + $0x30] sm:$0xff] }
  0x46   : > { %4491 = vmatpush3.bf16.msra.mxu0 %v4914_v12  ;;  %v3437_v11 = vadd.f32 %v3417_v5, %v3415_v62  ;;  %v3438_v12 = vadd.f32 %v3418_v6, %v3416_v63  ;;  %v3425_v25 = vunpack.c.l.bf16 %v5428_v19  ;;  %v3426_v26 = vunpack.c.h.bf16 %v5428_v19  ;;  %v752_v32 = vld [vmem:[%s7452_s5 + $0x68] sm:$0xff]  ;;  %v751_v34 = vld [vmem:[%s7452_s5 + $0x60] sm:$0xff]  ;;  %v782_v37 = vld [vmem:[%s7453_s6 + $0x58] sm:$0xff] }
  0x47   : > { %4492 = vmatprep.subr.bf16.mxu0 %v4915_v15  ;;  %3451 = vst [vmem:[#allocation3 + $0x40] sm:$0xff] %v3435_v3  ;;  %3452 = vst [vmem:[#allocation3 + $0x48] sm:$0xff] %v3436_v4  ;;  %v780_v35 = vld [vmem:[%s7453_s6 + $0x48] sm:$0xff]  ;;  %v754_v38 = vld [vmem:[%s7452_s5 + $0x78] sm:$0xff] }
  0x48   : > { %977 = vperm.xlu1 %4910, %v748_v13   ;;  %972 = vperm.xlu0 %4909, %v747_v14   ;;  %v3421_v13 = vunpack.c.l.bf16 %v5418_v10  ;;  %v3422_v14 = vunpack.c.h.bf16 %v5418_v10  ;;  %3453 = vst [vmem:[#allocation3 + $0x50] sm:$0xff] %v3437_v11  ;;  %3454 = vst [vmem:[#allocation3 + $0x58] sm:$0xff] %v3438_v12  ;;  %v784_v39 = vld [vmem:[%s7453_s6 + $0x68] sm:$0xff]  ;;  %v786_v40 = vld [vmem:[%s7453_s6 + $0x78] sm:$0xff] }
  0x49   : > { %v788_v43 = vld [vmem:[%s7453_s6 + $0x88] sm:$0xff]  ;;  %v787_v44 = vld [vmem:[%s7453_s6 + $0x80] sm:$0xff]  ;;  %v757_v48 = vld [vmem:[%s7452_s5 + $0x90] sm:$0xff] }
  0x4a   : > { %4493 = vmatpush3.bf16.msra.mxu0 %v4915_v15  ;;  %v5423_v15 = vld [vmem:[%s5318_s14 + $0x70] sm:$0xff]   ;;  %v3440_v24 = vadd.f32 %v3422_v14, %v3420_v9  ;;  %v792_v49 = vld [vmem:[%s7453_s6 + $0xa8] sm:$0xff]  ;;  %v791_v50 = vld [vmem:[%s7453_s6 + $0xa0] sm:$0xff]  ;;  %s7389_s14 = scalar_lea.vmem [#allocation7], %s3848_s28 }
  0x4b   : > { %4494 = vmatprep.subr.bf16.mxu0 %v4916_v29  ;;  %v3423_v16 = vunpack.c.l.bf16 %v5423_v15  ;;  %v3424_v18 = vunpack.c.h.bf16 %v5423_v15  ;;  %v794_v51 = vld [vmem:[%s7453_s6 + $0xb8] sm:$0xff]  ;;  %v760_v53 = vld [vmem:[%s7452_s5 + $0xa8] sm:$0xff]  ;;  %v759_v54 = vld [vmem:[%s7452_s5 + $0xa0] sm:$0xff]  ;;  %s3768_s17 = sshll.u32 %s7389_s14, 4  ;;  %s7396_s17 = int_to_ptr.vmem [resolvable:$true] %s3768_s17 }
  0x4c   : > { %1225 = vperm.xlu1 %4910, %v772_v23   ;;  %1220 = vperm.xlu0 %4909, %v771_v28   ;;  %v3439_v23 = vadd.f32 %v3421_v13, %v3419_v8  ;;  %3456 = vst [vmem:[#allocation3 + $0x68] sm:$0xff] %v3440_v24  ;;  %v795_v56 = vld [vmem:[%s7453_s6 + $0xc0] sm:$0xff]  ;;  %v798_v57 = vld [vmem:[%s7453_s6 + $0xd8] sm:$0xff]  ;;  %v797_v58 = vld [vmem:[%s7453_s6 + $0xd0] sm:$0xff]  ;;  %s5067_s16 = scalar_lea.vmem %s7396_s17, 512  ;;  %p5074_p2 = scmp.lt.s32.totalorder %s7396_s17, %s5072_s22 }
  0x4d   : > { %v3441_v28 = vadd.f32 %v3425_v25, %v3423_v16  ;;  %v4935_v59 = vld [vmem:[#allocation4 + $0x100] sm:$0xff]   ;;  %v4937_v63 = vld [vmem:[#allocation4 + $0x108] sm:$0xff]   ;;  %v4940_v4 = vld [vmem:[#allocation4 + $0x110] sm:$0xff]   ;;  %p5068_p6 = scmp.ne.s32.totalorder %s7396_s17, %s5067_s16  ;;  %p5075_p3 = scmp.lt.s32.totalorder %s5073_s25, %s5067_s16 }
  0x4e   : > { %4495 = vmatpush3.bf16.msra.mxu0 %v4916_v29  ;;  %3455 = vst [vmem:[#allocation3 + $0x60] sm:$0xff] %v3439_v23  ;;  %v3442_v29 = vadd.f32 %v3426_v26, %v3424_v18  ;;  %4036 = vmatprep.subr.bf16.mxu1 %v4935_v59  ;;  %v4936_v62 = vld [vmem:[#allocation4 + $0xc0] sm:$0xff]   ;;  %v4939_v3 = vld [vmem:[#allocation4 + $0xc8] sm:$0xff]   ;;  %v802_v5 = vld [vmem:[%s7453_s6 + $0xf8] sm:$0xff] }
  0x4f   : > { %4496 = vmatprep.subr.bf16.mxu0 %v4917_v47  ;;  %3457 = vst [vmem:[#allocation3 + $0x70] sm:$0xff] %v3441_v28  ;;  %4037 = vmatpush3.bf16.msra.mxu1 %v4936_v62  ;;  %v801_v6 = vld [vmem:[%s7453_s6 + $0xf0] sm:$0xff]  ;;  %v4942_v8 = vld [vmem:[#allocation4 + $0x148] sm:$0xff]   ;;  %v4943_v9 = vld [vmem:[#allocation4 + $0x118] sm:$0xff]   ;;  %p5069_p10 = pnand %p5068_p6, %p8266_p9  ;;  %p5076_p4 = por %p5075_p3, %p5074_p2 }
  0x50   : > { %1235 = vperm.xlu1 %4910, %v774_v42   ;;  %1230 = vperm.xlu0 %4909, %v773_v46   ;;  %3458 = vst [vmem:[#allocation3 + $0x78] sm:$0xff] %v3442_v29  ;;  %v756_v42 = vld [vmem:[%s7452_s5 + $0x88] sm:$0xff]  ;;  %v789_v46 = vld [vmem:[%s7453_s6 + $0x90] sm:$0xff]  ;;  %v763_v11 = vld [vmem:[%s7452_s5 + $0xc0] sm:$0xff] }
  0x51   : > { %4038 = vmatprep.subr.bf16.mxu1 %v4937_v63  ;;  %v4944_v12 = vld [vmem:[#allocation4 + $0xd8] sm:$0xff]   ;;  %v4945_v13 = vld [vmem:[#allocation4 + $0x150] sm:$0xff]   ;;  %v4946_v14 = vld [vmem:[#allocation4 + $0x120] sm:$0xff]   ;;  %p5070_p12 = pneg %p5069_p10 }
  0x52   : > { %4497 = vmatpush3.bf16.msra.mxu0 %v4917_v47  ;;  %v758_v47 = vld [vmem:[%s7452_s5 + $0x98] sm:$0xff]  ;;  %v765_v16 = vld [vmem:[%s7452_s5 + $0xd0] sm:$0xff]  ;;  %v4947_v18 = vld [vmem:[#allocation4 + $0xe0] sm:$0xff]  }
  0x53   : > { %4498 = vmatprep.subr.bf16.mxu0 %v4918_v2  ;;  %4039 = vmatpush3.bf16.msra.mxu1 %v4939_v3  ;;  %v4949_v23 = vld [vmem:[#allocation4 + $0x128] sm:$0xff]   ;;  %v770_v25 = vld [vmem:[%s7452_s5 + $0xf8] sm:$0xff]  ;;  %v769_v26 = vld [vmem:[%s7452_s5 + $0xf0] sm:$0xff]  ;;  %p5077_p7 = pnand %p5076_p4, %p5070_p12 }
  0x54   : > { %987 = vperm.xlu1 %4910, %v750_v61   ;;  %982 = vperm.xlu0 %4909, %v749_v1   ;;  %v761_v61 = vld [vmem:[%s7452_s5 + $0xb0] sm:$0xff]  ;;  %v799_v1 = vld [vmem:[%s7453_s6 + $0xe0] sm:$0xff]  ;;  %v4950_v24 = vld [vmem:[#allocation4 + $0xe8] sm:$0xff]  }
  0x55   : > { %4040 = vmatprep.subr.bf16.mxu1 %v4940_v4  ;;  %v4951_v28 = vld [vmem:[#allocation4 + $0x160] sm:$0xff]   ;;  %v4952_v29 = vld [vmem:[#allocation4 + $0x130] sm:$0xff]  }
  0x56   : > { %4499 = vmatpush3.bf16.msra.mxu0 %v4918_v2  ;;  %v4938_v2 = vld [vmem:[#allocation4 + $0x140] sm:$0xff]  }
  0x57   : > { %4532 = vmatprep.subr.bf16.mxu0 %v4938_v2  ;;  %v5662_v4 = vld [vmem:[%s7449_s2] ss:$0 sm:$0xff] }
  0x58   : > { %1245 = vperm.xlu1 %4910, %v776_v20   ;;  %1240 = vperm.xlu0 %4909, %v775_v21   ;;  %v768_v20 = vld [vmem:[%s7452_s5 + $0xe8] sm:$0xff]  ;;  %v767_v21 = vld [vmem:[%s7452_s5 + $0xe0] sm:$0xff] }
  0x59   : > { %4501 = vmatmul.mubr.bf16.vlgmr.msra.gmra.mrb[0].mxu0 %v5331_v17  ;;  %v779_v17 = vld [vmem:[%s7453_s6 + $0x40] sm:$0xff] }
  0x5a   : > { %4504 = vmatprep.mubr.bf16.mxu0 %v5336_v22  ;;  %v781_v22 = vld [vmem:[%s7453_s6 + $0x50] sm:$0xff]  ;;  %4533 = vmatpush3.bf16.msra.mxu0 %v4938_v2 }
  0x5b   : > { %4534 = vmatprep.subr.bf16.mxu0 %v4942_v8 }
  0x5c   : > { %1255 = vperm.xlu1 %4910, %v778_v30   ;;  %1250 = vperm.xlu0 %4909, %v777_v31   ;;  %v4953_v30 = vld [vmem:[#allocation4 + $0xf0] sm:$0xff]   ;;  %v4954_v31 = vld [vmem:[#allocation4 + $0x168] sm:$0xff]  }
  0x5e   : > { %4535 = vmatpush3.bf16.msra.mxu0 %v4942_v8 }
  0x5f   : > { %4536 = vmatprep.subr.bf16.mxu0 %v4945_v13 }
  0x60   : > { %997 = vperm.xlu1 %4910, %v752_v32   ;;  %992 = vperm.xlu0 %4909, %v751_v34   ;;  %v4955_v32 = vld [vmem:[#allocation4 + $0x138] sm:$0xff]  }
  0x61   : > { %4505 = vmatmul.mubr.bf16.gmra.mrb[4].mxu0 %v5344_v27  ;;  %v753_v27 = vld [vmem:[%s7452_s5 + $0x70] sm:$0xff]  ;;  %v4956_v34 = vld [vmem:[#allocation4 + $0xf8] sm:$0xff]  }
  0x62   : > { %4508 = vmatprep.mubr.bf16.mxu0 %v5355_v33  ;;  %v783_v33 = vld [vmem:[%s7453_s6 + $0x60] sm:$0xff]  ;;  %4537 = vmatpush3.bf16.msra.mxu0 %v4945_v13 }
  0x64   : > { %1265 = vperm.xlu1 %4910, %v780_v35   ;;  %1260 = vperm.xlu0 %4909, %v779_v17   ;;  %v4957_v35 = vld [vmem:[#allocation4 + $0x170] sm:$0xff]   ;;  %v4958_v17 = vld [vmem:[#allocation4 + $0x40] sm:$0xff]  }
  0x68   : > { %1275 = vperm.xlu1 %4910, %v782_v37   ;;  %1270 = vperm.xlu0 %4909, %v781_v22   ;;  %v4960_v37 = vld [vmem:[#allocation4 + $0x178] sm:$0xff]  }
  0x69   : > { %4509 = vmatmul.mubr.bf16.gmra.mrb[8].mxu0 %v5360_v36  ;;  %v785_v36 = vld [vmem:[%s7453_s6 + $0x70] sm:$0xff] }
  0x6a   : > { %4512 = vmatprep.mubr.bf16.mxu0 %v5365_v41  ;;  %v755_v41 = vld [vmem:[%s7452_s5 + $0x80] sm:$0xff] }
  0x6c   : > { %1007 = vperm.xlu1 %4910, %v754_v38   ;;  %1002 = vperm.xlu0 %4909, %v753_v27  }
  0x70   : > { %1285 = vperm.xlu1 %4910, %v784_v39   ;;  %1280 = vperm.xlu0 %4909, %v783_v33  }
  0x71   : > { %4513 = vmatmul.mubr.bf16.gmra.mrb[12].mxu0 %v5373_v45  ;;  %v790_v45 = vld [vmem:[%s7453_s6 + $0x98] sm:$0xff] }
  0x72   : > { %4516 = vmatprep.mubr.bf16.mxu0 %v5384_v52  ;;  %v793_v52 = vld [vmem:[%s7453_s6 + $0xb0] sm:$0xff] }
  0x74   : > { %1295 = vperm.xlu1 %4910, %v786_v40   ;;  %1290 = vperm.xlu0 %4909, %v785_v36  }
  0x78   : > { %1017 = vperm.xlu1 %4910, %v756_v42   ;;  %1012 = vperm.xlu0 %4909, %v755_v41  }
  0x79   : > { %4517 = vmatmul.mubr.bf16.gmra.mrb[16].mxu0 %v5389_v55  ;;  %v796_v55 = vld [vmem:[%s7453_s6 + $0xc8] sm:$0xff] }
  0x7a   : > { %4520 = vmatprep.mubr.bf16.mxu0 %v5394_v60  ;;  %v762_v60 = vld [vmem:[%s7452_s5 + $0xb8] sm:$0xff] }
  0x7c   : > { %1305 = vperm.xlu1 %4910, %v788_v43   ;;  %1300 = vperm.xlu0 %4909, %v787_v44  }
  0x80   : > { %1315 = vperm.xlu1 %4910, %v790_v45   ;;  %1310 = vperm.xlu0 %4909, %v789_v46  }
  0x81   : > { %4521 = vmatmul.mubr.bf16.gmra.mrb[20].mxu0 %v5402_v0  ;;  %v800_v0 = vld [vmem:[%s7453_s6 + $0xe8] sm:$0xff] }
  0x82   : > { %4524 = vmatprep.mubr.bf16.mxu0 %v5413_v7  ;;  %v4941_v7 = vld [vmem:[#allocation4 + $0xd0] sm:$0xff]  }
  0x83   : > { %4041 = vmatpush3.bf16.msra.mxu1 %v4941_v7 }
  0x84   : > { %1027 = vperm.xlu1 %4910, %v758_v47   ;;  %1022 = vperm.xlu0 %4909, %v757_v48  }
  0x85   : > { %4042 = vmatprep.subr.bf16.mxu1 %v4943_v9 }
  0x87   : > { %4043 = vmatpush3.bf16.msra.mxu1 %v4944_v12  ;;  %v7460_v12 = vmov 0.0  }
  0x88   : > { %1325 = vperm.xlu1 %4910, %v792_v49   ;;  %1320 = vperm.xlu0 %4909, %v791_v50   ;;  %v5671_v13 = vrot.slane %v7460_v12, 7 }
  0x89   : > { %4525 = vmatmul.mubr.bf16.gmra.mrb[24].mxu0 %v5418_v10  ;;  %v764_v10 = vld [vmem:[%s7452_s5 + $0xc8] sm:$0xff]  ;;  %4044 = vmatprep.subr.bf16.mxu1 %v4946_v14 }
  0x8a   : > { %4528 = vmatprep.mubr.bf16.mxu0 %v5423_v15  ;;  %v766_v15 = vld [vmem:[%s7452_s5 + $0xd8] sm:$0xff]  ;;  %7778 = vst [vmem:[#allocation40_spill] sm:$0xff] %v5671_v13 }
  0x8b   : > { %4045 = vmatpush3.bf16.msra.mxu1 %v4947_v18 }
  0x8c   : > { %1335 = vperm.xlu1 %4910, %v794_v51   ;;  %1330 = vperm.xlu0 %4909, %v793_v52  }
  0x8d   : > { %4046 = vmatprep.subr.bf16.mxu1 %v4949_v23 }
  0x8f   : > { %4047 = vmatpush3.bf16.msra.mxu1 %v4950_v24 }
  0x90   : > { %1037 = vperm.xlu1 %4910, %v760_v53   ;;  %1032 = vperm.xlu0 %4909, %v759_v54  }
  0x91   : > { %4529 = vmatmul.mubr.bf16.gmra.mrb[28].mxu0 %v5428_v19  ;;  %v4948_v19 = vld [vmem:[#allocation4 + $0x158] sm:$0xff]   ;;  %4048 = vmatprep.subr.bf16.mxu1 %v4952_v29 }
  0x92   : > { %4538 = vmatprep.subr.bf16.mxu0 %v4948_v19 }
  0x93   : > { %4539 = vmatpush3.bf16.msra.mxu0 %v4948_v19  ;;  %4049 = vmatpush3.bf16.msra.mxu1 %v4953_v30 }
  0x94   : > { %1345 = vperm.xlu1 %4910, %v796_v55   ;;  %1340 = vperm.xlu0 %4909, %v795_v56  }
  0x95   : > { %4540 = vmatprep.subr.bf16.mxu0 %v4951_v28  ;;  %4050 = vmatprep.subr.bf16.mxu1 %v4955_v32 }
  0x97   : > { %4541 = vmatpush3.bf16.msra.mxu0 %v4951_v28  ;;  %4051 = vmatpush3.bf16.msra.mxu1 %v4956_v34 }
  0x98   : > { %1355 = vperm.xlu1 %4910, %v798_v57   ;;  %1350 = vperm.xlu0 %4909, %v797_v58  }
  0x99   : > { %4542 = vmatprep.subr.bf16.mxu0 %v4954_v31  ;;  %4676 = vmatprep.subr.bf16.mxu1 %v4958_v17 }
  0x9b   : > { %4543 = vmatpush3.bf16.msra.mxu0 %v4954_v31 }
  0x9c   : > { %1047 = vperm.xlu1 %4910, %v762_v60   ;;  %1042 = vperm.xlu0 %4909, %v761_v61  }
  0x9d   : > { %4544 = vmatprep.subr.bf16.mxu0 %v4957_v35 }
  0x9f   : > { %4545 = vmatpush3.bf16.msra.mxu0 %v4957_v35 }
  0xa0   : > { %1365 = vperm.xlu1 %4910, %v800_v0   ;;  %1360 = vperm.xlu0 %4909, %v799_v1  }
  0xa1   : > { %4546 = vmatprep.subr.bf16.mxu0 %v4960_v37 }
  0xa3   : > { %4547 = vmatpush3.bf16.msra.mxu0 %v4960_v37 }
  0xa4   : > { %1375 = vperm.xlu1 %4910, %v802_v5   ;;  %1370 = vperm.xlu0 %4909, %v801_v6  }
  0xa5   : > { %4172 = vmatprep.subr.bf16.mxu0 %v4958_v17 }
  0xa8   : > { %1057 = vperm.xlu1 %4910, %v764_v10   ;;  %1052 = vperm.xlu0 %4909, %v763_v11  }
  0xac   : > { %1067 = vperm.xlu1 %4910, %v766_v15   ;;  %1062 = vperm.xlu0 %4909, %v765_v16  }
  0xb0   : > { %1077 = vperm.xlu1 %4910, %v768_v20   ;;  %1072 = vperm.xlu0 %4909, %v767_v21  }
  0xb4   : > { %1087 = vperm.xlu1 %4910, %v770_v25   ;;  %1082 = vperm.xlu0 %4909, %v769_v26   ;;  %v929_v25 = vsel %vm834_vm0, 0.0, %v5671_v13 }
  0xb7   : > { %v5591_v22 = vpop.permute.xlu1 %942  ;;  %v5593_v38 = vpop.permute.xlu0 %932 }
  0xb8   : > { %7748 = vst [vmem:[#allocation10_spill] sm:$0xff] %v5591_v22  ;;  %7749 = vst [vmem:[#allocation11_spill] sm:$0xff] %v5593_v38 }
  0xbb   : > { %v5595_v27 = vpop.permute.xlu1 %947  ;;  %v5597_v39 = vpop.permute.xlu0 %937 }
  0xbc   : > { %7750 = vst [vmem:[#allocation12_spill] sm:$0xff] %v5595_v27  ;;  %7751 = vst [vmem:[#allocation13_spill] sm:$0xff] %v5597_v39 }
  0xbf   : > { %v5599_v33 = vpop.permute.xlu1 %957  ;;  %v5601_v40 = vpop.permute.xlu0 %952 }
  0xc0   : > { %7752 = vst [vmem:[#allocation14_spill] sm:$0xff] %v5599_v33  ;;  %7753 = vst [vmem:[#allocation15_spill] sm:$0xff] %v5601_v40 }
  0xc3   : > { %v5603_v36 = vpop.permute.xlu1 %967  ;;  %v5605_v42 = vpop.permute.xlu0 %962 }
  0xc4   : > { %7754 = vst [vmem:[#allocation16_spill] sm:$0xff] %v5603_v36  ;;  %7755 = vst [vmem:[#allocation17_spill] sm:$0xff] %v5605_v42 }
  0xc7   : > { %v5607_v41 = vpop.permute.xlu1 %977  ;;  %v5609_v43 = vpop.permute.xlu0 %972 }
  0xc8   : > { %7756 = vst [vmem:[#allocation18_spill] sm:$0xff] %v5607_v41  ;;  %7757 = vst [vmem:[#allocation19_spill] sm:$0xff] %v5609_v43 }
  0xcb   : > { %v5611_v44 = vpop.permute.xlu1 %1225  ;;  %v5613_v45 = vpop.permute.xlu0 %1220 }
  0xcc   : > { %7758 = vst [vmem:[#allocation20_spill] sm:$0xff] %v5611_v44  ;;  %7759 = vst [vmem:[#allocation21_spill] sm:$0xff] %v5613_v45 }
  0xcf   : > { %v5615_v46 = vpop.permute.xlu1 %1235  ;;  %v5617_v47 = vpop.permute.xlu0 %1230 }
  0xd0   : > { %7760 = vst [vmem:[#allocation22_spill] sm:$0xff] %v5615_v46  ;;  %7761 = vst [vmem:[#allocation23_spill] sm:$0xff] %v5617_v47 }
  0xd3   : > { %v5619_v48 = vpop.permute.xlu1 %987  ;;  %v5621_v49 = vpop.permute.xlu0 %982 }
  0xd7   : > { %v5623_v50 = vpop.permute.xlu1 %1245  ;;  %v5625_v51 = vpop.permute.xlu0 %1240 }
  0xd8   : > { %7762 = vst [vmem:[#allocation24_spill] sm:$0xff] %v5623_v50  ;;  %7763 = vst [vmem:[#allocation25_spill] sm:$0xff] %v5625_v51 }
  0xdb   : > { %v5627_v52 = vpop.permute.xlu1 %1255  ;;  %v5629_v53 = vpop.permute.xlu0 %1250 }
  0xdc   : > { %7764 = vst [vmem:[#allocation26_spill] sm:$0xff] %v5627_v52  ;;  %7765 = vst [vmem:[#allocation27_spill] sm:$0xff] %v5629_v53 }
  0xdf   : > { %v5631_v54 = vpop.permute.xlu1 %997  ;;  %v5633_v55 = vpop.permute.xlu0 %992 }
  0xe3   : > { %v5635_v56 = vpop.permute.xlu1 %1265  ;;  %v5637_v57 = vpop.permute.xlu0 %1260 }
  0xe4   : > { %7766 = vst [vmem:[#allocation28_spill] sm:$0xff] %v5635_v56  ;;  %7767 = vst [vmem:[#allocation29_spill] sm:$0xff] %v5637_v57 }
  0xe7   : > { %v5639_v58 = vpop.permute.xlu1 %1275  ;;  %v5641_v59 = vpop.permute.xlu0 %1270 }
  0xe8   : > { %7768 = vst [vmem:[#allocation30_spill] sm:$0xff] %v5639_v58  ;;  %7769 = vst [vmem:[#allocation31_spill] sm:$0xff] %v5641_v59 }
  0xeb   : > { %v5643_v60 = vpop.permute.xlu1 %1007  ;;  %v5645_v61 = vpop.permute.xlu0 %1002 }
  0xef   : > { %v5647_v62 = vpop.permute.xlu1 %1285  ;;  %v5649_v63 = vpop.permute.xlu0 %1280 }
  0xf0   : > { %7770 = vst [vmem:[#allocation32_spill] sm:$0xff] %v5647_v62  ;;  %7771 = vst [vmem:[#allocation33_spill] sm:$0xff] %v5649_v63 }
  0xf3   : > { %v5651_v0 = vpop.permute.xlu1 %1295  ;;  %v5653_v1 = vpop.permute.xlu0 %1290 }
  0xf4   : > { %7772 = vst [vmem:[#allocation34_spill] sm:$0xff] %v5651_v0  ;;  %7773 = vst [vmem:[#allocation35_spill] sm:$0xff] %v5653_v1 }
  0xf7   : > { %v5655_v2 = vpop.permute.xlu1 %1017  ;;  %v5657_v3 = vpop.permute.xlu0 %1012 }
  0xf8   : > { %7774 = vst [vmem:[#allocation36_spill] sm:$0xff] %v5655_v2  ;;  %7775 = vst [vmem:[#allocation37_spill] sm:$0xff] %v5657_v3  ;;  %v4963_v3 = vld [vmem:[#allocation4 + $0x50] sm:$0xff]  }
  0xfb   : > { %v5664_v6 = vpop.permute.xlu1 %1305  ;;  %v5667_v9 = vpop.permute.xlu0 %1300 }
  0xfc   : > { %7776 = vst [vmem:[#allocation38_spill] sm:$0xff] %v5664_v6  ;;  %7777 = vst [vmem:[#allocation39_spill] sm:$0xff] %v5667_v9 }
  0xff   : > { %v5682_v23 = vpop.permute.xlu1 %1315  ;;  %v5686_v26 = vpop.permute.xlu0 %1310 }
 0x100   : > { %7781 = vst [vmem:[#allocation43_spill] sm:$0xff] %v5682_v23  ;;  %7782 = vst [vmem:[#allocation44_spill] sm:$0xff] %v5686_v26 }
 0x103   : > { %v5725_v2 = vpop.permute.xlu1 %1027 }
 0x104   : > { %7790 = vst [vmem:[#allocation51_spill] sm:$0xff] %v5725_v2 }
 0x12c   : > { %v4502_v5 = vpop.f32.mrb[0].mxu0 }
 0x12d   : > { %v589_v7 = vadd.f32 %v4502_v5, %v5662_v4  ;;  %v580_v8 = vpop.f32.mrb[1].mxu0 }
 0x12e   : > { %v581_v10 = vadd.f32 %v5662_v4, %v580_v8  ;;  %v4503_v11 = vpop.f32.mrb[2].mxu0 }
 0x12f   : > { %v709_v14 = vmax.f32 %v589_v7, 0.0  ;;  %v592_v16 = vadd.f32 %v4503_v11, %v5662_v4  ;;  %v583_v18 = vpop.f32.mrb[3].mxu0 }
 0x130   : > { %v5673_v15 = vmax.f32 %v581_v10, 0.0  ;;  %v584_v19 = vadd.f32 %v5662_v4, %v583_v18 }
 0x131   : > { %v5680_v21 = vmax.f32 %v592_v16, 0.0  ;;  %v1129_v28 = vrot.slane %v709_v14, 1 }
 0x132   : > { %7779 = vst [vmem:[#allocation41_spill] sm:$0xff] %v5673_v15  ;;  %v5678_v20 = vrot.slane %v5673_v15, 7  ;;  %v708_v24 = vmax.f32 %v584_v19, 0.0 }
 0x133   : > { %v1131_v29 = vrot.slane %v5680_v21, 1  ;;  %v5700_v10 = vpack.c.bf16 %v5680_v21, %v709_v14 }
 0x134   : > { %7780 = vst [vmem:[#allocation42_spill] sm:$0xff] %v5678_v20  ;;  %v4506_v30 = vpop.f32.mrb[4].mxu0  ;;  %v1515_v31 = vsel %vm834_vm0, 0.0, %v5678_v20  ;;  %v839_v32 = vrot.slane %v708_v24, 7  ;;  %v1127_v34 = vrot.slane %v708_v24, 1  ;;  %v5692_v17 = vpack.c.bf16 %v708_v24, %v5673_v15 }
 0x135   : > { %v596_v35 = vpop.f32.mrb[5].mxu0  ;;  %v5696_v5 = vsel %vm1122_vm1, %v1129_v28, %v1131_v29  ;;  %7785 = vst [vmem:[#allocation47_spill] sm:$0xff] %v5700_v10  ;;  %v605_v11 = vadd.f32 %v4506_v30, %v5662_v4  ;;  %v1516_v24 = vmul.f32 %v1515_v31, %v5593_v38  ;;  %v7787_v30 = vrot.slane %v5673_v15, 1 }
 0x136   : > { %7783 = vst [vmem:[#allocation45_spill] sm:$0xff] %v5692_v17  ;;  %7784 = vst [vmem:[#allocation46_spill] sm:$0xff] %v5696_v5  ;;  %v597_v7 = vadd.f32 %v5662_v4, %v596_v35  ;;  %v4507_v8 = vpop.f32.mrb[6].mxu0  ;;  %1846 = vmatprep.mubr.bf16.mxu1 %v5692_v17  ;;  %v5707_v19 = vsel %vm834_vm0, %v5678_v20, %v839_v32  ;;  %v5719_v17 = vmul.f32 %v5593_v38, %v929_v25 }
 0x137   : > { %v608_v16 = vadd.f32 %v4507_v8, %v5662_v4  ;;  %v599_v18 = vpop.f32.mrb[7].mxu0  ;;  %7786 = vst [vmem:[#allocation48_spill] sm:$0xff] %v5707_v19  ;;  %v1517_v37 = vmul.f32 %v5597_v39, %v5707_v19  ;;  %v1128_v8 = vsel %vm1122_vm1, %v7787_v30, %v1127_v34  ;;  %v5723_v20 = vmul.f32 %v5597_v39, %v5671_v13 }
 0x138   : > { %v5710_v12 = vmax.f32 %v597_v7, 0.0  ;;  %v600_v35 = vadd.f32 %v5662_v4, %v599_v18  ;;  %7788 = vst [vmem:[#allocation49_spill] sm:$0xff] %v5719_v17  ;;  %v5727_v31 = vrot.slane %v709_v14, 7  ;;  %v1130_v7 = vsel %vm1122_vm1, %v1127_v34, %v1129_v28  ;;  %v5730_v18 = vpop.permute.xlu0 %1022  ;;  %v4959_v28 = vld [vmem:[#allocation4] sm:$0xff]  }
 0x139   : > { %7789 = vst [vmem:[#allocation50_spill] sm:$0xff] %v5723_v20  ;;  %7792 = vst [vmem:[#allocation53_spill] sm:$0xff] %v5730_v18  ;;  %v1588_v25 = vpack.c.bf16 %v1517_v37, %v1516_v24  ;;  %v1558_v38 = vmul.f32 %v5617_v47, %v5696_v5  ;;  %v5738_v39 = vmax.f32 %v605_v11, 0.0  ;;  %v5741_v13 = vmul.f32 %v5617_v47, %v1128_v8 }
 0x13a   : > { %7791 = vst [vmem:[#allocation52_spill] sm:$0xff] %v5727_v31  ;;  %v1133_v15 = vrot.slane %v5710_v12, 1  ;;  %v5734_v30 = vmax.f32 %v600_v35, 0.0  ;;  %v5744_v14 = vmul.f32 %v5615_v46, %v1130_v7  ;;  %v5749_v19 = vmax.f32 %v608_v16, 0.0  ;;  %v4961_v16 = vld [vmem:[#allocation4 + $0x48] sm:$0xff]  }
 0x13b   : > { %7793 = vst [vmem:[#allocation54_spill] sm:$0xff] %v5741_v13  ;;  %1847 = vmatmul.mubr.bf16.vlgmr.msra.gmra.mrb[0].mxu1 %v1588_v25  ;;  %v1556_v37 = vmul.f32 %v5613_v45, %v1128_v8  ;;  %v1557_v5 = vmul.f32 %v5611_v44, %v1130_v7  ;;  %v5763_v8 = vsel %vm834_vm0, %v839_v32, %v5727_v31  ;;  %v1137_v13 = vrot.slane %v5738_v39, 1  ;;  %v4962_v32 = vld [vmem:[#allocation4 + $0x8] sm:$0xff]  }
 0x13c   : > { %7794 = vst [vmem:[#allocation55_spill] sm:$0xff] %v5744_v14  ;;  %v5747_v34 = vsel %vm1122_vm1, %v1131_v29, %v1133_v15  ;;  %v1135_v35 = vrot.slane %v5734_v30, 1  ;;  %v4510_v24 = vpop.f32.mrb[8].mxu0  ;;  %4684 = vmatpush3.bf16.msra.mxu1 %v4959_v28  ;;  %1854 = vmatprep.mubr.bf16.mxu1 %v5700_v10  ;;  %v5779_v44 = vpop.permute.xlu0 %1320  ;;  %v7809_v20 = vrot.slane %v5734_v30, 7 }
 0x13d   : > { %7795 = vst [vmem:[#allocation56_spill] sm:$0xff] %v5747_v34  ;;  %v1559_v11 = vmul.f32 %v5615_v46, %v5747_v34  ;;  %v621_v29 = vadd.f32 %v4510_v24, %v5662_v4  ;;  %v612_v2 = vpop.f32.mrb[9].mxu0  ;;  %v7796_v46 = vrot.slane %v5680_v21, 7  ;;  %v5774_v24 = vpop.permute.xlu1 %1325  ;;  %v1605_v14 = vpack.c.bf16 %v1557_v5, %v1556_v37  ;;  %4677 = vmatprep.subr.bf16.mxu1 %v4961_v16 }
 0x13e   : > { %v613_v25 = vadd.f32 %v5662_v4, %v612_v2  ;;  %v4511_v18 = vpop.f32.mrb[10].mxu0  ;;  %v5772_v7 = vsel %vm1122_vm1, %v1133_v15, %v1135_v35  ;;  %7799 = vst [vmem:[#allocation59_spill] sm:$0xff] %v5774_v24  ;;  %7800 = vst [vmem:[#allocation60_spill] sm:$0xff] %v5779_v44  ;;  %v1518_v15 = vmul.f32 %v5591_v22, %v5763_v8  ;;  %v1139_v5 = vrot.slane %v5749_v19, 1 }
 0x13f   : > { %v5769_v47 = vsel %vm834_vm0, %v5727_v31, %v7796_v46  ;;  %7798 = vst [vmem:[#allocation58_spill] sm:$0xff] %v5772_v7  ;;  %v5777_v2 = vmax.f32 %v621_v29, 0.0  ;;  %v615_v34 = vpop.f32.mrb[11].mxu0  ;;  %v1606_v45 = vpack.c.bf16 %v1559_v11, %v1558_v38  ;;  %4548 = vmatprep.mubr.bf16.mxu0 %v1605_v14  ;;  %v624_v38 = vadd.f32 %v4511_v18, %v5662_v4 }
 0x140   : > { %7797 = vst [vmem:[#allocation57_spill] sm:$0xff] %v5769_v47  ;;  %v5781_v10 = vmax.f32 %v613_v25, 0.0  ;;  %v616_v46 = vadd.f32 %v5662_v4, %v615_v34  ;;  %v1519_v31 = vmul.f32 %v5595_v27, %v5769_v47  ;;  %4685 = vmatpush3.bf16.msra.mxu1 %v4962_v32  ;;  %v845_v34 = vrot.slane %v5710_v12, 7  ;;  %v4964_v27 = vld [vmem:[#allocation4 + $0x10] sm:$0xff]  }
 0x141   : > { %4549 = vmatmul.mubr.bf16.vlgmr.msra.gmra.mrb[32].mxu0 %v1606_v45  ;;  %4678 = vmatprep.subr.bf16.mxu1 %v4963_v3  ;;  %v5795_v25 = vsel %vm1122_vm1, %v1135_v35, %v1137_v13  ;;  %v1560_v22 = vmul.f32 %v5625_v51, %v5772_v7  ;;  %v4965_v35 = vld [vmem:[#allocation4 + $0x58] sm:$0xff]   ;;  %v5807_v47 = vmax.f32 %v624_v38, 0.0  ;;  %v5812_v18 = vpack.c.bf16 %v5734_v30, %v5710_v12 }
 0x142   : > { %v1141_v37 = vrot.slane %v5781_v10, 1  ;;  %v5791_v11 = vmax.f32 %v616_v46, 0.0  ;;  %v1589_v29 = vpack.c.bf16 %v1519_v31, %v1518_v15  ;;  %7801 = vst [vmem:[#allocation61_spill] sm:$0xff] %v5795_v25  ;;  %4173 = vmatpush3.bf16.msra.mxu0 %v4959_v28  ;;  %v1145_v46 = vrot.slane %v5777_v2, 1  ;;  %v5805_v15 = vpop.permute.xlu1 %1335 }
 0x143   : > { %v1561_v45 = vmul.f32 %v5623_v50, %v5795_v25  ;;  %4174 = vmatprep.subr.bf16.mxu0 %v4961_v16  ;;  %7802 = vst [vmem:[#allocation62_spill] sm:$0xff] %v5805_v15  ;;  %7803 = vst [vmem:[#allocation63_spill] sm:$0xff] %v5812_v18  ;;  %v5815_v7 = vsel %vm1122_vm1, %v1137_v13, %v1139_v5 }
 0x144   : > { %1855 = vmatmul.mubr.bf16.gmra.mrb[4].mxu1 %v1589_v29  ;;  %v4514_v31 = vpop.f32.mrb[12].mxu0  ;;  %7804 = vst [vmem:[#allocation64_spill] sm:$0xff] %v5815_v7  ;;  %v5817_v29 = vpop.permute.xlu0 %1330  ;;  %v1143_v16 = vrot.slane %v5791_v11, 1  ;;  %v5822_v50 = vsel %vm1122_vm1, %v1139_v5, %v1141_v37  ;;  %v1562_v13 = vmul.f32 %v5629_v53, %v5815_v7  ;;  %v4966_v5 = vld [vmem:[#allocation4 + $0x18] sm:$0xff]   ;;  %v5843_v7 = vsel %vm834_vm0, %v845_v34, %v7809_v20 }
 0x145   : > { %v637_v28 = vadd.f32 %v4514_v31, %v5662_v4  ;;  %v628_v14 = vpop.f32.mrb[13].mxu0  ;;  %4686 = vmatpush3.bf16.msra.mxu1 %v4964_v27  ;;  %7805 = vst [vmem:[#allocation65_spill] sm:$0xff] %v5817_v29  ;;  %v1607_v25 = vpack.c.bf16 %v1561_v45, %v1560_v22  ;;  %7806 = vst [vmem:[#allocation66_spill] sm:$0xff] %v5822_v50  ;;  %1862 = vmatprep.mubr.bf16.mxu1 %v5812_v18  ;;  %v7807_v22 = vrot.slane %v5680_v21, 7 }
 0x146   : > { %v629_v51 = vadd.f32 %v5662_v4, %v628_v14  ;;  %v4515_v38 = vpop.f32.mrb[14].mxu0  ;;  %4679 = vmatprep.subr.bf16.mxu1 %v4965_v35  ;;  %v1563_v17 = vmul.f32 %v5627_v52, %v5822_v50  ;;  %4175 = vmatpush3.bf16.msra.mxu0 %v4962_v32  ;;  %7810 = vst [vmem:[#allocation68_spill] sm:$0xff] %v5843_v7  ;;  %v4967_v50 = vld [vmem:[#allocation4 + $0x60] sm:$0xff]   ;;  %v849_v21 = vrot.slane %v5738_v39, 7  ;;  %v5854_v20 = vpop.permute.xlu1 %1037 }
 0x147   : > { %v5824_v31 = vmax.f32 %v637_v28, 0.0  ;;  %v631_v12 = vpop.f32.mrb[15].mxu0  ;;  %v5834_v14 = vsel %vm834_vm0, %v7807_v22, %v845_v34  ;;  %4552 = vmatprep.mubr.bf16.mxu0 %v1607_v25  ;;  %v640_v28 = vadd.f32 %v4515_v38, %v5662_v4  ;;  %4176 = vmatprep.subr.bf16.mxu0 %v4963_v3  ;;  %v1147_v22 = vrot.slane %v5807_v47, 1  ;;  %7811 = vst [vmem:[#allocation69_spill] sm:$0xff] %v5854_v20 }
 0x148   : > { %7808 = vst [vmem:[#allocation67_spill] sm:$0xff] %v5834_v14  ;;  %v5836_v45 = vmax.f32 %v629_v51, 0.0  ;;  %v632_v18 = vadd.f32 %v5662_v4, %v631_v12  ;;  %v1608_v32 = vpack.c.bf16 %v1563_v17, %v1562_v13  ;;  %v1520_v38 = vmul.f32 %v5601_v40, %v5834_v14  ;;  %v5864_v13 = vpop.permute.xlu0 %1032 }
 0x149   : > { %4687 = vmatpush3.bf16.msra.mxu1 %v4966_v5  ;;  %v1521_v12 = vmul.f32 %v5599_v33, %v5843_v7  ;;  %v5859_v17 = vsel %vm1122_vm1, %v1141_v37, %v1143_v16  ;;  %7814 = vst [vmem:[#allocation72_spill] sm:$0xff] %v5864_v13  ;;  %v5866_v51 = vmax.f32 %v640_v28, 0.0  ;;  %v5879_v28 = vsel %vm1122_vm1, %v1145_v46, %v1147_v22 }
 0x14a   : > { %v5848_v25 = vmax.f32 %v632_v18, 0.0  ;;  %4680 = vmatprep.subr.bf16.mxu1 %v4967_v50  ;;  %4553 = vmatmul.mubr.bf16.gmra.mrb[36].mxu0 %v1608_v32  ;;  %7812 = vst [vmem:[#allocation70_spill] sm:$0xff] %v5859_v17  ;;  %v5862_v18 = vsel %vm1122_vm1, %v1143_v16, %v1145_v46  ;;  %v1564_v14 = vmul.f32 %v5637_v57, %v5859_v17  ;;  %7816 = vst [vmem:[#allocation74_spill] sm:$0xff] %v5879_v28  ;;  %v4969_v46 = vld [vmem:[#allocation4 + $0x68] sm:$0xff]  }
 0x14b   : > { %7813 = vst [vmem:[#allocation71_spill] sm:$0xff] %v5862_v18  ;;  %v1590_v53 = vpack.c.bf16 %v1521_v12, %v1520_v38  ;;  %4177 = vmatpush3.bf16.msra.mxu0 %v4964_v27  ;;  %v1565_v32 = vmul.f32 %v5635_v56, %v5862_v18  ;;  %v5876_v16 = vpack.c.bf16 %v5749_v19, %v5738_v39  ;;  %v4968_v38 = vld [vmem:[#allocation4 + $0x20] sm:$0xff]   ;;  %v7817_v27 = vrot.slane %v5836_v45, 1 }
 0x14c   : > { %v1151_v52 = vrot.slane %v5848_v25, 1  ;;  %v4518_v3 = vpop.f32.mrb[16].mxu0  ;;  %4178 = vmatprep.subr.bf16.mxu0 %v4965_v35  ;;  %v7819_v39 = vrot.slane %v5734_v30, 7  ;;  %v7858_v7 = vrot.slane %v5807_v47, 7 }
 0x14d   : > { %v653_v37 = vadd.f32 %v4518_v3, %v5662_v4  ;;  %7815 = vst [vmem:[#allocation73_spill] sm:$0xff] %v5876_v16  ;;  %v644_v34 = vpop.f32.mrb[17].mxu0  ;;  %1863 = vmatmul.mubr.bf16.gmra.mrb[8].mxu1 %v1590_v53  ;;  %v5885_v18 = vsel %vm1122_vm1, %v1147_v22, %v7817_v27  ;;  %v1566_v3 = vmul.f32 %v5641_v59, %v5879_v28 }
 0x14e   : > { %v645_v12 = vadd.f32 %v5662_v4, %v644_v34  ;;  %v4519_v17 = vpop.f32.mrb[18].mxu0  ;;  %7818 = vst [vmem:[#allocation75_spill] sm:$0xff] %v5885_v18  ;;  %v5892_v57 = vsel %vm834_vm0, %v7819_v39, %v849_v21  ;;  %v1609_v35 = vpack.c.bf16 %v1565_v32, %v1564_v14  ;;  %1870 = vmatprep.mubr.bf16.mxu1 %v5876_v16  ;;  %v7821_v39 = vrot.slane %v5749_v19, 7  ;;  %v4971_v32 = vld [vmem:[#allocation4 + $0x70] sm:$0xff]  }
 0x14f   : > { %7820 = vst [vmem:[#allocation76_spill] sm:$0xff] %v5892_v57  ;;  %v5894_v56 = vmax.f32 %v653_v37, 0.0  ;;  %v656_v53 = vadd.f32 %v4519_v17, %v5662_v4  ;;  %v647_v34 = vpop.f32.mrb[19].mxu0  ;;  %v1567_v22 = vmul.f32 %v5639_v58, %v5885_v18  ;;  %4688 = vmatpush3.bf16.msra.mxu1 %v4968_v38  ;;  %v1522_v14 = vmul.f32 %v5605_v42, %v5892_v57  ;;  %v5910_v17 = vpop.permute.xlu1 %1345  ;;  %v4970_v18 = vld [vmem:[#allocation4 + $0x28] sm:$0xff]  }
 0x150   : > { %v5900_v27 = vmax.f32 %v645_v12, 0.0  ;;  %v648_v30 = vadd.f32 %v5662_v4, %v647_v34  ;;  %v5906_v28 = vsel %vm834_vm0, %v849_v21, %v7821_v39  ;;  %4179 = vmatpush3.bf16.msra.mxu0 %v4966_v5  ;;  %4681 = vmatprep.subr.bf16.mxu1 %v4969_v46  ;;  %7823 = vst [vmem:[#allocation78_spill] sm:$0xff] %v5910_v17  ;;  %v853_v37 = vrot.slane %v5781_v10, 7  ;;  %v5915_v58 = vpop.permute.xlu0 %1340 }
 0x151   : > { %7822 = vst [vmem:[#allocation77_spill] sm:$0xff] %v5906_v28  ;;  %v1155_v12 = vrot.slane %v5866_v51, 1  ;;  %4556 = vmatprep.mubr.bf16.mxu0 %v1609_v35  ;;  %v1610_v34 = vpack.c.bf16 %v1567_v22, %v1566_v3  ;;  %4180 = vmatprep.subr.bf16.mxu0 %v4967_v50  ;;  %7824 = vst [vmem:[#allocation79_spill] sm:$0xff] %v5915_v58  ;;  %v1523_v59 = vmul.f32 %v5603_v36, %v5906_v28 }
 0x152   : > { %v1157_v39 = vrot.slane %v5900_v27, 1  ;;  %v5919_v5 = vmax.f32 %v648_v30, 0.0  ;;  %v7825_v50 = vrot.slane %v5836_v45, 1  ;;  %v7827_v35 = vrot.slane %v5824_v31, 1 }
 0x153   : > { %4557 = vmatmul.mubr.bf16.gmra.mrb[40].mxu0 %v1610_v34  ;;  %4689 = vmatpush3.bf16.msra.mxu1 %v4970_v18  ;;  %v5936_v21 = vmax.f32 %v656_v53, 0.0  ;;  %v1591_v28 = vpack.c.bf16 %v1523_v59, %v1522_v14  ;;  %v7830_v53 = vrot.slane %v5824_v31, 1  ;;  %v4972_v14 = vld [vmem:[#allocation4 + $0x30] sm:$0xff]  }
 0x154   : > { %v5928_v3 = vsel %vm1122_vm1, %v7825_v50, %v1151_v52  ;;  %v5933_v22 = vsel %vm1122_vm1, %v1151_v52, %v7827_v35  ;;  %v4522_v34 = vpop.f32.mrb[20].mxu0  ;;  %4181 = vmatpush3.bf16.msra.mxu0 %v4968_v38  ;;  %4682 = vmatprep.subr.bf16.mxu1 %v4971_v32  ;;  %v5945_v52 = vpack.c.bf16 %v5791_v11, %v5781_v10  ;;  %v1159_v38 = vrot.slane %v5919_v5, 1 }
 0x155   : > { %7826 = vst [vmem:[#allocation80_spill] sm:$0xff] %v5928_v3  ;;  %7828 = vst [vmem:[#allocation81_spill] sm:$0xff] %v5933_v22  ;;  %v1568_v16 = vmul.f32 %v5649_v63, %v5928_v3  ;;  %v1569_v50 = vmul.f32 %v5647_v62, %v5933_v22  ;;  %v669_v57 = vadd.f32 %v4522_v34, %v5662_v4  ;;  %v660_v35 = vpop.f32.mrb[21].mxu0  ;;  %4182 = vmatprep.subr.bf16.mxu0 %v4969_v46  ;;  %v4973_v63 = vld [vmem:[#allocation4 + $0x78] sm:$0xff]   ;;  %v5962_v62 = vpop.permute.xlu1 %1355 }
 0x156   : > { %7829 = vst [vmem:[#allocation82_spill] sm:$0xff] %v5945_v52  ;;  %v5950_v59 = vsel %vm1122_vm1, %v7830_v53, %v1155_v12  ;;  %1871 = vmatmul.mubr.bf16.gmra.mrb[12].mxu1 %v1591_v28  ;;  %v661_v30 = vadd.f32 %v5662_v4, %v660_v35  ;;  %v4523_v22 = vpop.f32.mrb[22].mxu0  ;;  %v5955_v34 = vsel %vm1122_vm1, %v1155_v12, %v1157_v39  ;;  %v7833_v10 = vrot.slane %v5749_v19, 7  ;;  %v5971_v19 = vpop.permute.xlu0 %1350 }
 0x157   : > { %7831 = vst [vmem:[#allocation83_spill] sm:$0xff] %v5950_v59  ;;  %7832 = vst [vmem:[#allocation84_spill] sm:$0xff] %v5955_v34  ;;  %v1611_v53 = vpack.c.bf16 %v1569_v50, %v1568_v16  ;;  %v5964_v46 = vmax.f32 %v669_v57, 0.0  ;;  %1878 = vmatprep.mubr.bf16.mxu1 %v5945_v52  ;;  %v663_v28 = vpop.f32.mrb[23].mxu0  ;;  %v1570_v35 = vmul.f32 %v5653_v1, %v5950_v59  ;;  %4690 = vmatpush3.bf16.msra.mxu1 %v4972_v14  ;;  %v4978_v59 = vld [vmem:[#allocation4 + $0x1c0] sm:$0xff]  }
 0x158   : > { %v5960_v3 = vsel %vm834_vm0, %v7833_v10, %v853_v37  ;;  %7834 = vst [vmem:[#allocation85_spill] sm:$0xff] %v5962_v62  ;;  %v1571_v12 = vmul.f32 %v5651_v0, %v5955_v34  ;;  %7835 = vst [vmem:[#allocation86_spill] sm:$0xff] %v5971_v19  ;;  %v5973_v10 = vmax.f32 %v661_v30, 0.0  ;;  %v672_v42 = vadd.f32 %v4523_v22, %v5662_v4  ;;  %v4974_v22 = vld [vmem:[#allocation4 + $0x38] sm:$0xff]  }
 0x159   : > { %v664_v16 = vadd.f32 %v5662_v4, %v663_v28  ;;  %v7836_v57 = vrot.slane %v5791_v11, 7  ;;  %4183 = vmatpush3.bf16.msra.mxu0 %v4970_v18  ;;  %4683 = vmatprep.subr.bf16.mxu1 %v4973_v63  ;;  %v1163_v0 = vrot.slane %v5936_v21, 1 }
 0x15a   : > { %4560 = vmatprep.mubr.bf16.mxu0 %v1611_v53  ;;  %v1612_v30 = vpack.c.bf16 %v1571_v12, %v1570_v35  ;;  %4184 = vmatprep.subr.bf16.mxu0 %v4971_v32  ;;  %v1165_v28 = vrot.slane %v5973_v10, 1  ;;  %v5995_v53 = vsel %vm1122_vm1, %v1157_v39, %v1159_v38  ;;  %v7838_v32 = vrot.slane %v5894_v56, 1 }
 0x15b   : > { %v5980_v50 = vsel %vm834_vm0, %v853_v37, %v7836_v57  ;;  %v5986_v52 = vmax.f32 %v664_v16, 0.0  ;;  %v1524_v37 = vmul.f32 %v5609_v43, %v5960_v3  ;;  %7837 = vst [vmem:[#allocation87_spill] sm:$0xff] %v5995_v53  ;;  %4691 = vmatpush3.bf16.msra.mxu1 %v4974_v22  ;;  %v6002_v12 = vmax.f32 %v672_v42, 0.0 }
 0x15c   : > { %v1525_v18 = vmul.f32 %v5607_v41, %v5980_v50  ;;  %4561 = vmatmul.mubr.bf16.gmra.mrb[44].mxu0 %v1612_v30  ;;  %v6000_v35 = vsel %vm1122_vm1, %v1159_v38, %v7838_v32  ;;  %v1572_v57 = vmul.f32 %v5667_v9, %v5995_v53  ;;  %v4526_v41 = vpop.f32.mrb[24].mxu0  ;;  %4308 = vmatprep.subr.bf16.mxu1 %v4978_v59  ;;  %v6007_v30 = vpop.permute.xlu1 %1047  ;;  %v7845_v9 = vrot.slane %v5777_v2, 7 }
 0x15d   : > { %7839 = vst [vmem:[#allocation88_spill] sm:$0xff] %v6000_v35  ;;  %v1167_v16 = vrot.slane %v5986_v52, 1  ;;  %4185 = vmatpush3.bf16.msra.mxu0 %v4972_v14  ;;  %7840 = vst [vmem:[#allocation89_spill] sm:$0xff] %v6007_v30  ;;  %v1573_v39 = vmul.f32 %v5664_v6, %v6000_v35  ;;  %v685_v38 = vadd.f32 %v4526_v41, %v5662_v4  ;;  %v676_v32 = vpop.f32.mrb[25].mxu0  ;;  %v6021_v14 = vld [vmem:[#allocation4 + $0x80] sm:$0xff]   ;;  %v6023_v59 = vpop.permute.xlu0 %1042 }
 0x15e   : > { %v1592_v1 = vpack.c.bf16 %v1525_v18, %v1524_v37  ;;  %v6014_v42 = vpack.c.bf16 %v5807_v47, %v5777_v2  ;;  %v7842_v37 = vrot.slane %v5894_v56, 1  ;;  %4186 = vmatprep.subr.bf16.mxu0 %v4973_v63  ;;  %v677_v34 = vadd.f32 %v5662_v4, %v676_v32  ;;  %v4527_v35 = vpop.f32.mrb[26].mxu0 }
 0x15f   : > { %v6027_v41 = vsel %vm1122_vm1, %v1163_v0, %v1165_v28  ;;  %v1613_v6 = vpack.c.bf16 %v1573_v39, %v1572_v57  ;;  %v6038_v43 = vmax.f32 %v685_v38, 0.0  ;;  %v679_v32 = vpop.f32.mrb[27].mxu0 }
 0x160   : > { %7841 = vst [vmem:[#allocation90_spill] sm:$0xff] %v6014_v42  ;;  %v6019_v18 = vsel %vm1122_vm1, %v7842_v37, %v1163_v0  ;;  %1879 = vmatmul.mubr.bf16.gmra.mrb[16].mxu1 %v1592_v1  ;;  %7844 = vst [vmem:[#allocation92_spill] sm:$0xff] %v6027_v41  ;;  %v7846_v37 = vrot.slane %v5791_v11, 7  ;;  %v688_v1 = vadd.f32 %v4527_v35, %v5662_v4  ;;  %v6044_v36 = vmax.f32 %v677_v34, 0.0 }
 0x161   : > { %7843 = vst [vmem:[#allocation91_spill] sm:$0xff] %v6019_v18  ;;  %v1574_v53 = vmul.f32 %v5686_v26, %v6019_v18  ;;  %1886 = vmatprep.mubr.bf16.mxu1 %v6014_v42  ;;  %v1575_v0 = vmul.f32 %v5682_v23, %v6027_v41  ;;  %v680_v18 = vadd.f32 %v5662_v4, %v679_v32  ;;  %v7847_v11 = vrot.slane %v5807_v47, 7 }
 0x162   : > { %v6036_v63 = vsel %vm834_vm0, %v7846_v37, %v7845_v9  ;;  %4187 = vmatpush3.bf16.msra.mxu0 %v4974_v22  ;;  %v1171_v34 = vrot.slane %v6002_v12, 1  ;;  %4564 = vmatprep.mubr.bf16.mxu0 %v1613_v6  ;;  %v1173_v2 = vrot.slane %v6044_v36, 1  ;;  %v6066_v22 = vpop.permute.xlu1 %1365  ;;  %v1177_v38 = vrot.slane %v6038_v43, 1 }
 0x163   : > { %v6052_v57 = vsel %vm834_vm0, %v7845_v9, %v7847_v11  ;;  %v1526_v39 = vmul.f32 %v5621_v49, %v6036_v63  ;;  %v1614_v37 = vpack.c.bf16 %v1575_v0, %v1574_v53  ;;  %4580 = vmatprep.subr.bf16.mxu0 %v6021_v14  ;;  %v6062_v11 = vmax.f32 %v680_v18, 0.0  ;;  %7848 = vst [vmem:[#allocation93_spill] sm:$0xff] %v6066_v22  ;;  %v6078_v18 = vpop.permute.xlu0 %1360 }
 0x164   : > { %v1527_v9 = vmul.f32 %v5619_v48, %v6052_v57  ;;  %v6071_v6 = vsel %vm1122_vm1, %v1165_v28, %v1167_v16  ;;  %v7850_v53 = vrot.slane %v5964_v46, 1  ;;  %7852 = vst [vmem:[#allocation96_spill] sm:$0xff] %v6078_v18  ;;  %v6080_v32 = vmax.f32 %v688_v1, 0.0  ;;  %v4530_v23 = vpop.f32.mrb[28].mxu0 }
 0x165   : > { %4565 = vmatmul.mubr.bf16.gmra.mrb[48].mxu0 %v1614_v37  ;;  %7849 = vst [vmem:[#allocation94_spill] sm:$0xff] %v6071_v6  ;;  %v1175_v41 = vrot.slane %v6062_v11, 1  ;;  %v1576_v35 = vmul.f32 %v5779_v44, %v6071_v6  ;;  %v701_v37 = vadd.f32 %v4530_v23, %v5662_v4  ;;  %v7854_v1 = vrot.slane %v5964_v46, 1 }
 0x166   : > { %v6076_v0 = vsel %vm1122_vm1, %v1167_v16, %v7850_v53  ;;  %v1593_v42 = vpack.c.bf16 %v1527_v9, %v1526_v39  ;;  %v6090_v16 = vpack.c.bf16 %v5848_v25, %v5836_v45  ;;  %v692_v53 = vpop.f32.mrb[29].mxu0  ;;  %v6099_v44 = vsel %vm1122_vm1, %v1171_v34, %v1173_v2 }
 0x167   : > { %7851 = vst [vmem:[#allocation95_spill] sm:$0xff] %v6076_v0  ;;  %v1577_v28 = vmul.f32 %v5774_v24, %v6076_v0  ;;  %v6095_v26 = vsel %vm1122_vm1, %v7854_v1, %v1171_v34  ;;  %v693_v39 = vadd.f32 %v5662_v4, %v692_v53  ;;  %v4531_v9 = vpop.f32.mrb[30].mxu0  ;;  %7856 = vst [vmem:[#allocation99_spill] sm:$0xff] %v6099_v44  ;;  %v7857_v24 = vrot.slane %v5836_v45, 7 }
 0x168   : > { %7853 = vst [vmem:[#allocation97_spill] sm:$0xff] %v6090_v16  ;;  %7855 = vst [vmem:[#allocation98_spill] sm:$0xff] %v6095_v26  ;;  %1887 = vmatmul.mubr.bf16.gmra.mrb[20].mxu1 %v1593_v42  ;;  %v1578_v23 = vmul.f32 %v5817_v29, %v6095_v26  ;;  %v6110_v1 = vmax.f32 %v701_v37, 0.0  ;;  %v704_v42 = vadd.f32 %v4531_v9, %v5662_v4  ;;  %v695_v53 = vpop.f32.mrb[31].mxu0  ;;  %v1179_v37 = vrot.slane %v6080_v32, 1  ;;  %v6131_v26 = vpop.permute.xlu1 %1375 }
 0x169   : > { %v6108_v0 = vsel %vm834_vm0, %v7858_v7, %v7857_v24  ;;  %v1615_v6 = vpack.c.bf16 %v1577_v28, %v1576_v35  ;;  %1894 = vmatprep.mubr.bf16.mxu1 %v6090_v16  ;;  %v1579_v34 = vmul.f32 %v5805_v15, %v6099_v44  ;;  %v6117_v29 = vmax.f32 %v693_v39, 0.0  ;;  %7861 = vst [vmem:[#allocation101_spill] sm:$0xff] %v6131_v26  ;;  %v6133_v39 = vpop.permute.xlu0 %1370 }
 0x16a   : > { %v696_v47 = vadd.f32 %v5662_v4, %v695_v53  ;;  %v7859_v7 = vrot.slane %v5848_v25, 7  ;;  %v6129_v9 = vmax.f32 %v704_v42, 0.0  ;;  %7862 = vst [vmem:[#allocation102_spill] sm:$0xff] %v6133_v39  ;;  %v1528_v45 = vmul.f32 %v5633_v55, %v6108_v0 }
 0x16b   : > { %4568 = vmatprep.mubr.bf16.mxu0 %v1615_v6  ;;  %v1616_v16 = vpack.c.bf16 %v1579_v34, %v1578_v23  ;;  %v1181_v4 = vrot.slane %v6117_v29, 1  ;;  %v1548_v6 = vrot.slane %v6110_v1, 1  ;;  %v6145_v23 = vsel %vm1122_vm1, %v1173_v2, %v1175_v41 }
 0x16c   : > { %v6125_v35 = vsel %vm834_vm0, %v7857_v24, %v7859_v7  ;;  %7860 = vst [vmem:[#allocation100_spill] sm:$0xff] %v6129_v9  ;;  %v6136_v53 = vmax.f32 %v696_v47, 0.0  ;;  %7863 = vst [vmem:[#allocation103_spill] sm:$0xff] %v6145_v23  ;;  %v6148_v42 = vsel %vm1122_vm1, %v1175_v41, %v1177_v38  ;;  %v6151_v34 = vrot.slane %v6129_v9, 1 }
 0x16d   : > { %v1529_v7 = vmul.f32 %v5631_v54, %v6125_v35  ;;  %4569 = vmatmul.mubr.bf16.gmra.mrb[52].mxu0 %v1616_v16  ;;  %7864 = vst [vmem:[#allocation104_spill] sm:$0xff] %v6148_v42  ;;  %v1580_v44 = vmul.f32 %v5915_v58, %v6145_v23  ;;  %v1581_v24 = vmul.f32 %v5910_v17, %v6148_v42  ;;  %v7870_v23 = vrot.slane %v5824_v31, 7 }
 0x16e   : > { %7865 = vst [vmem:[#allocation105_spill] sm:$0xff] %v6151_v34  ;;  %v6154_v47 = vrot.slane %v6136_v53, 1  ;;  %v6162_v2 = vpack.c.bf16 %v5866_v51, %v5824_v31  ;;  %v6165_v41 = vsel %vm1122_vm1, %v1177_v38, %v1179_v37  ;;  %v6168_v16 = vsel %vm1122_vm1, %v1179_v37, %v1181_v4 }
 0x16f   : > { %v1594_v28 = vpack.c.bf16 %v1529_v7, %v1528_v45  ;;  %7868 = vst [vmem:[#allocation108_spill] sm:$0xff] %v6165_v41  ;;  %7869 = vst [vmem:[#allocation109_spill] sm:$0xff] %v6168_v16  ;;  %v1582_v45 = vmul.f32 %v5971_v19, %v6165_v41  ;;  %v1583_v7 = vmul.f32 %v5962_v62, %v6168_v16  ;;  %v7871_v42 = vrot.slane %v5848_v25, 7  ;;  %v7898_v62 = vld [vmem:[#allocation51_spill] sm:$0xff] }
 0x170   : > { %7866 = vst [vmem:[#allocation106_spill] sm:$0xff] %v6154_v47  ;;  %7867 = vst [vmem:[#allocation107_spill] sm:$0xff] %v6162_v2  ;;  %v7872_v38 = vrot.slane %v5866_v51, 7  ;;  %v7873_v58 = vmov %v7870_v23  ;;  %v6195_v25 = vsel %vm1122_vm1, %v1181_v4, %v6154_v47  ;;  %v7901_v15 = vrot.slane %v5986_v52, 7 }
 0x171   : > { %1895 = vmatmul.mubr.bf16.gmra.mrb[24].mxu1 %v1594_v28  ;;  %v6179_v17 = vsel %vm834_vm0, %v7871_v42, %v7870_v23  ;;  %v1617_v28 = vpack.c.bf16 %v1581_v24, %v1580_v44  ;;  %7874 = vst [vmem:[#allocation110_spill] sm:$0xff] %v6195_v25  ;;  %v6197_v23 = vpop.permute.xlu1 %1057  ;;  %v6199_v42 = vpop.permute.xlu0 %1052  ;;  %v1618_v31 = vpack.c.bf16 %v1583_v7, %v1582_v45  ;;  %v1555_v45 = vsel %vm1122_vm1, %v6151_v34, 0.0 }
 0x172   : > { %v6186_v37 = vsel %vm834_vm0, %v7873_v58, %v7872_v38  ;;  %1902 = vmatprep.mubr.bf16.mxu1 %v6162_v2  ;;  %v1530_v16 = vmul.f32 %v5645_v61, %v6179_v17  ;;  %7875 = vst [vmem:[#allocation111_spill] sm:$0xff] %v6197_v23  ;;  %7876 = vst [vmem:[#allocation112_spill] sm:$0xff] %v6199_v42  ;;  %v6203_v44 = vsel %vm1122_vm1, %v6154_v47, %v1548_v6 }
 0x173   : > { %v1531_v41 = vmul.f32 %v5643_v60, %v6186_v37  ;;  %7877 = vst [vmem:[#allocation113_spill] sm:$0xff] %v6203_v44  ;;  %v1584_v58 = vmul.f32 %v6078_v18, %v6195_v25  ;;  %v6209_v24 = vpack.c.bf16 %v5919_v5, %v5900_v27  ;;  %4572 = vmatprep.mubr.bf16.mxu0 %v1617_v28  ;;  %v7880_v18 = vrot.slane %v5900_v27, 7 }
 0x174   : > { %v1585_v4 = vmul.f32 %v6203_v44, %v6066_v22  ;;  %v6215_v2 = vsel %vm1122_vm1, %v1548_v6, %v6151_v34  ;;  %v1587_v25 = vmul.f32 %v1555_v45, %v6131_v26  ;;  %v7881_v28 = vrot.slane %v5866_v51, 7  ;;  %v7886_v45 = vld [vmem:[#allocation36_spill] sm:$0xff] }
 0x175   : > { %7878 = vst [vmem:[#allocation114_spill] sm:$0xff] %v6209_v24  ;;  %v1595_v38 = vpack.c.bf16 %v1531_v41, %v1530_v16  ;;  %7879 = vst [vmem:[#allocation115_spill] sm:$0xff] %v6215_v2  ;;  %v1586_v7 = vmul.f32 %v6215_v2, %v6133_v39  ;;  %v7882_v16 = vrot.slane %v5919_v5, 7  ;;  %v7883_v6 = vmov %v7880_v18  ;;  %4573 = vmatmul.mubr.bf16.gmra.mrb[56].mxu0 %v1618_v31  ;;  %v7885_v2 = vld [vmem:[#allocation37_spill] sm:$0xff]  ;;  %v6268_v22 = vpop.permute.xlu1 %1067 }
 0x176   : > { %v6227_v41 = vsel %vm834_vm0, %v7881_v28, %v7880_v18  ;;  %v1619_v34 = vpack.c.bf16 %v1585_v4, %v1584_v58  ;;  %v6242_v51 = vpack.c.bf16 %v5936_v21, %v5894_v56  ;;  %v7888_v28 = vrot.slane %v5894_v56, 7  ;;  %7896 = vst [vmem:[#allocation119_spill] sm:$0xff] %v6268_v22  ;;  %v6270_v56 = vpop.permute.xlu0 %1062 }
 0x177   : > { %v6234_v44 = vsel %vm834_vm0, %v7883_v6, %v7882_v16  ;;  %v1532_v39 = vmul.f32 %v7885_v2, %v6227_v41  ;;  %v1620_v18 = vpack.c.bf16 %v1587_v25, %v1586_v7  ;;  %v7889_v27 = vmov %v7882_v16  ;;  %7897 = vst [vmem:[#allocation120_spill] sm:$0xff] %v6270_v56 }
 0x178   : > { %7884 = vst [vmem:[#allocation116_spill] sm:$0xff] %v6234_v44  ;;  %v1533_v26 = vmul.f32 %v7886_v45, %v6234_v44  ;;  %7887 = vst [vmem:[#allocation37_spill] sm:$0xff] %v6242_v51  ;;  %v6249_v16 = vsel %vm834_vm0, %v7889_v27, %v7888_v28  ;;  %v7891_v31 = vrot.slane %v5936_v21, 7  ;;  %v7892_v58 = vmov %v7888_v28  ;;  %4576 = vmatprep.mubr.bf16.mxu0 %v1619_v34  ;;  %v7895_v28 = vld [vmem:[#allocation53_spill] sm:$0xff] }
 0x179   : > { %7890 = vst [vmem:[#allocation36_spill] sm:$0xff] %v6249_v16  ;;  %v6260_v6 = vpack.c.bf16 %v5986_v52, %v5973_v10  ;;  %v883_v25 = vrot.slane %v6002_v12, 7  ;;  %v889_v7 = vrot.slane %v6038_v43, 7  ;;  %v6266_v27 = vmul.f32 %v7895_v28, %v6249_v16  ;;  %1903 = vmatmul.mubr.bf16.gmra.mrb[28].mxu1 %v1595_v38 }
 0x17a   : > { %v6256_v4 = vsel %vm834_vm0, %v7892_v58, %v7891_v31  ;;  %v1596_v5 = vpack.c.bf16 %v1533_v26, %v1532_v39  ;;  %v885_v31 = vrot.slane %v6044_v36, 7  ;;  %v891_v58 = vrot.slane %v6080_v32, 7  ;;  %1910 = vmatprep.mubr.bf16.mxu1 %v6209_v24 }
 0x17b   : > { %7893 = vst [vmem:[#allocation117_spill] sm:$0xff] %v6256_v4  ;;  %7894 = vst [vmem:[#allocation118_spill] sm:$0xff] %v6260_v6  ;;  %v6276_v19 = vmul.f32 %v7898_v62, %v6256_v4  ;;  %v7899_v34 = vrot.slane %v5973_v10, 7  ;;  %v7900_v26 = vrot.slane %v5936_v21, 7  ;;  %v887_v47 = vrot.slane %v6062_v11, 7 }
 0x17c   : > { %v6300_v21 = vpack.c.bf16 %v6002_v12, %v5964_v46  ;;  %v6310_v10 = vmul.f32 %v5601_v40, %v5763_v8  ;;  %v1508_v24 = vrot.slane %v6110_v1, 7  ;;  %v7906_v12 = vrot.slane %v5964_v46, 7  ;;  %v6355_v40 = vpop.permute.xlu0 %1072 }
 0x17d   : > { %v6283_v39 = vsel %vm834_vm0, %v7900_v26, %v7899_v34  ;;  %v7902_v6 = vmov %v7899_v34  ;;  %v6331_v8 = vpack.c.bf16 %v6062_v11, %v6044_v36  ;;  %4577 = vmatmul.mubr.bf16.gmra.mrb[60].mxu0 %v1620_v18  ;;  %v6348_v36 = vsel %vm834_vm0, %v883_v25, %v885_v31  ;;  %7913 = vst [vmem:[#allocation126_spill] sm:$0xff] %v6355_v40 }
 0x17e   : > { %v6292_v38 = vsel %vm834_vm0, %v7902_v6, %v7901_v15  ;;  %v6296_v62 = vmul.f32 %v5864_v13, %v6283_v39  ;;  %7903 = vst [vmem:[#allocation121_spill] sm:$0xff] %v6300_v21  ;;  %7904 = vst [vmem:[#allocation122_spill] sm:$0xff] %v6310_v10  ;;  %v7905_v15 = vld [vmem:[#allocation57_spill] sm:$0xff]  ;;  %v7907_v21 = vrot.slane %v5986_v52, 7  ;;  %v7908_v44 = vmov %v7906_v12 }
 0x17f   : > { %v6306_v26 = vmul.f32 %v5854_v20, %v6292_v38  ;;  %v6314_v6 = vmul.f32 %v5599_v33, %v7905_v15  ;;  %v6327_v28 = vsel %vm834_vm0, %v7908_v44, %v883_v25  ;;  %7909 = vst [vmem:[#allocation57_spill] sm:$0xff] %v6331_v8  ;;  %v893_v44 = vrot.slane %v6117_v29, 7 }
 0x180   : > { %v6322_v34 = vsel %vm834_vm0, %v7907_v21, %v7906_v12  ;;  %v6343_v46 = vmul.f32 %v6007_v30, %v6327_v28  ;;  %v895_v21 = vrot.slane %v6136_v53, 7  ;;  %v6351_v11 = vsel %vm834_vm0, %v885_v31, %v887_v47  ;;  %v6353_v12 = vpop.permute.xlu1 %1077 }
 0x181   : > { %v6339_v52 = vmul.f32 %v6023_v59, %v6322_v34  ;;  %7912 = vst [vmem:[#allocation125_spill] sm:$0xff] %v6353_v12  ;;  %v7644_v33 = vmov 0.0|0.0   ;;  %v6362_v10 = vmul.f32 %v6199_v42, %v6348_v36  ;;  %v6366_v18 = vmul.f32 %v6197_v23, %v6351_v11  ;;  %1911 = vmatmul.mubr.bf16.gmra.mrb[32].mxu1 %v1596_v5 }
 0x182   : > { %7911 = vst [vmem:[#allocation124_spill] sm:$0xff] %v6343_v46  ;;  %2312 = vmatprep.mubr.bf16.mxu0 %v7644_v33  ;;  %v6370_v25 = vpack.c.bf16 %v6080_v32, %v6038_v43  ;;  %v6375_v33 = vmul.f32 %v5864_v13, %v6249_v16  ;;  %v6379_v8 = vmul.f32 %v5854_v20, %v6256_v4  ;;  %v7922_v20 = vld [vmem:[#allocation42_spill] sm:$0xff]  ;;  %v7937_v4 = vrot.slane %v6129_v9, 7 }
 0x183   : > { %7910 = vst [vmem:[#allocation123_spill] sm:$0xff] %v6339_v52  ;;  %7914 = vst [vmem:[#allocation127_spill] sm:$0xff] %v6362_v10  ;;  %v6382_v52 = vsel %vm834_vm0, %v887_v47, %v889_v7  ;;  %v6387_v43 = vsel %vm834_vm0, %v889_v7, %v891_v58  ;;  %v6395_v31 = vpack.c.bf16 %v6136_v53, %v6117_v29  ;;  %1918 = vmatprep.mubr.bf16.mxu1 %v6242_v51  ;;  %v7923_v47 = vld [vmem:[#allocation40_spill] sm:$0xff] }
 0x184   : > { %7915 = vst [vmem:[#allocation128_spill] sm:$0xff] %v6370_v25  ;;  %7916 = vst [vmem:[#allocation129_spill] sm:$0xff] %v6375_v33  ;;  %v6391_v32 = vmul.f32 %v6270_v56, %v6382_v52  ;;  %v838_v5 = vsel %vm834_vm0, %v7923_v47, %v7922_v20  ;;  %v6403_v46 = vmul.f32 %v6268_v22, %v6387_v43  ;;  %v7948_v10 = vld [vmem:[#allocation48_spill] sm:$0xff] }
 0x185   : > { %7917 = vst [vmem:[#allocation130_spill] sm:$0xff] %v6379_v8  ;;  %7918 = vst [vmem:[#allocation131_spill] sm:$0xff] %v6382_v52  ;;  %v6407_v7 = vmul.f32 %v5621_v49, %v5960_v3  ;;  %v6411_v13 = vmul.f32 %v5619_v48, %v5980_v50  ;;  %v6414_v29 = vsel %vm834_vm0, %v891_v58, %v893_v44  ;;  %v7957_v8 = vld [vmem:[#allocation51_spill] sm:$0xff] }
 0x186   : > { %7919 = vst [vmem:[#allocation132_spill] sm:$0xff] %v6387_v43  ;;  %7920 = vst [vmem:[#allocation133_spill] sm:$0xff] %v6391_v32  ;;  %v6417_v53 = vsel %vm834_vm0, %v893_v44, %v895_v21  ;;  %v6421_v20 = vpack.c.bf16 %v6129_v9, %v6110_v1  ;;  %v6425_v51 = vmul.f32 %v5633_v55, %v6036_v63  ;;  %v6439_v1 = vpop.permute.xlu1 %1087  ;;  %v7940_v32 = vld [vmem:[#allocation50_spill] sm:$0xff] }
 0x187   : > { %7921 = vst [vmem:[#allocation134_spill] sm:$0xff] %v6395_v31  ;;  %7924 = vst [vmem:[#allocation42_spill] sm:$0xff] %v6403_v46  ;;  %v4976_v31 = vld [vmem:[#allocation4 + $0x88] sm:$0xff]   ;;  %v6433_v58 = vmul.f32 %v6355_v40, %v6414_v29  ;;  %v6437_v44 = vmul.f32 %v6353_v12, %v6417_v53  ;;  %v6445_v16 = vmul.f32 %v5631_v54, %v6052_v57  ;;  %v7941_v46 = vld [vmem:[#allocation49_spill] sm:$0xff] }
 0x188   : > { %7925 = vst [vmem:[#allocation135_spill] sm:$0xff] %v6407_v7  ;;  %7926 = vst [vmem:[#allocation136_spill] sm:$0xff] %v6411_v13  ;;  %v6448_v47 = vsel %vm834_vm0, %v895_v21, %v1508_v24  ;;  %v6453_v7 = vsel %vm834_vm0, %v1508_v24, %v7937_v4  ;;  %v6457_v13 = vmul.f32 %v5645_v61, %v6108_v0  ;;  %v7946_v4 = vld [vmem:[#allocation45_spill] sm:$0xff] }
 0x189   : > { %7927 = vst [vmem:[#allocation137_spill] sm:$0xff] %v6414_v29  ;;  %7928 = vst [vmem:[#allocation138_spill] sm:$0xff] %v6417_v53  ;;  %v7942_v25 = vpack.c.bf16 %v7940_v32, %v7941_v46  ;;  %v6470_v9 = vmul.f32 %v6453_v7, %v6439_v1  ;;  %v6474_v24 = vmul.f32 %v5643_v60, %v6125_v35 }
 0x18a   : > { %7929 = vst [vmem:[#allocation139_spill] sm:$0xff] %v6421_v20  ;;  %7930 = vst [vmem:[#allocation140_spill] sm:$0xff] %v6425_v51  ;;  %v6441_v20 = vpop.permute.xlu0 %1082  ;;  %v6484_v32 = vmul.f32 %v7885_v2, %v6179_v17  ;;  %v6494_v46 = vmul.f32 %v7886_v45, %v6186_v37  ;;  %v6501_v33 = vmul.f32 %v6023_v59, %v6283_v39 }
 0x18b   : > { %7931 = vst [vmem:[#allocation141_spill] sm:$0xff] %v6433_v58  ;;  %7932 = vst [vmem:[#allocation142_spill] sm:$0xff] %v6437_v44  ;;  %2313 = vmatmul.mubr.bf16.vlgmr.msra.gmra.mrb[64].mxu0 %v7942_v25  ;;  %v6466_v21 = vmul.f32 %v6448_v47, %v6441_v20  ;;  %v7949_v58 = vld [vmem:[#allocation12_spill] sm:$0xff]  ;;  %v7951_v25 = vpack.c.bf16 %v6276_v19, %v6266_v27  ;;  %v7960_v19 = vld [vmem:[#allocation10_spill] sm:$0xff] }
 0x18c   : > { %7933 = vst [vmem:[#allocation143_spill] sm:$0xff] %v6439_v1  ;;  %7934 = vst [vmem:[#allocation144_spill] sm:$0xff] %v6441_v20  ;;  %2320 = vmatprep.mubr.bf16.mxu0 %v7946_v4  ;;  %4581 = vmatpush3.bf16.msra.mxu0 %v6021_v14  ;;  %v1093_v44 = vmul.f32 %v7949_v58, %v7948_v10  ;;  %v6505_v10 = vmul.f32 %v6007_v30, %v6292_v38  ;;  %v7954_v4 = vld [vmem:[#allocation53_spill] sm:$0xff]  ;;  %v7956_v14 = vld [vmem:[#allocation116_spill] sm:$0xff] }
 0x18d   : > { %7935 = vst [vmem:[#allocation145_spill] sm:$0xff] %v6445_v16  ;;  %7936 = vst [vmem:[#allocation146_spill] sm:$0xff] %v6448_v47  ;;  %4582 = vmatprep.subr.bf16.mxu0 %v4976_v31  ;;  %1919 = vmatmul.mubr.bf16.gmra.mrb[36].mxu1 %v7951_v25  ;;  %v6509_v58 = vmul.f32 %v7954_v4, %v6227_v41  ;;  %v1092_v27 = vmul.f32 %v7960_v19, %v838_v5  ;;  %v4980_v5 = vld [vmem:[#allocation4 + $0x98] sm:$0xff]  }
 0x18e   : > { %7938 = vst [vmem:[#allocation147_spill] sm:$0xff] %v6453_v7  ;;  %7939 = vst [vmem:[#allocation148_spill] sm:$0xff] %v6457_v13  ;;  %v4977_v7 = vld [vmem:[#allocation4 + $0x90] sm:$0xff]   ;;  %v6513_v13 = vmul.f32 %v7957_v8, %v7956_v14  ;;  %v6535_v19 = vmul.f32 %v6270_v56, %v6348_v36  ;;  %v6551_v25 = vmul.f32 %v6353_v12, %v6387_v43  ;;  %v7996_v12 = vld [vmem:[#allocation86_spill] sm:$0xff] }
 0x18f   : > { %7943 = vst [vmem:[#allocation50_spill] sm:$0xff] %v6466_v21  ;;  %7944 = vst [vmem:[#allocation49_spill] sm:$0xff] %v6470_v9  ;;  %v6521_v21 = vmul.f32 %v6199_v42, %v6322_v34  ;;  %v6525_v9 = vmul.f32 %v6197_v23, %v6327_v28  ;;  %v1411_v16 = vpack.c.bf16 %v1093_v44, %v1092_v27  ;;  %v7971_v44 = vld [vmem:[#allocation11_spill] sm:$0xff]  ;;  %v8004_v56 = vld [vmem:[#allocation17_spill] sm:$0xff] }
 0x190   : > { %7945 = vst [vmem:[#allocation149_spill] sm:$0xff] %v6474_v24  ;;  %7947 = vst [vmem:[#allocation45_spill] sm:$0xff] %v6484_v32  ;;  %v7959_v24 = vld [vmem:[#allocation118_spill] sm:$0xff]  ;;  %4583 = vmatpush3.bf16.msra.mxu0 %v4976_v31  ;;  %v6539_v32 = vmul.f32 %v6268_v22, %v6351_v11  ;;  %v7965_v31 = vld [vmem:[#allocation52_spill] sm:$0xff]  ;;  %v6547_v27 = vmul.f32 %v6355_v40, %v6382_v52 }
 0x191   : > { %7950 = vst [vmem:[#allocation48_spill] sm:$0xff] %v6494_v46  ;;  %7952 = vst [vmem:[#allocation150_spill] sm:$0xff] %v6501_v33  ;;  %1926 = vmatprep.mubr.bf16.mxu1 %v7959_v24  ;;  %4584 = vmatprep.subr.bf16.mxu0 %v4977_v7  ;;  %v2605_v51 = vsel %vm834_vm0, 0.0, %v7965_v31  ;;  %v7968_v24 = vld [vmem:[#allocation13_spill] sm:$0xff]  ;;  %v7980_v31 = vld [vmem:[#allocation122_spill] sm:$0xff] }
 0x192   : > { %7953 = vst [vmem:[#allocation151_spill] sm:$0xff] %v6505_v10  ;;  %7955 = vst [vmem:[#allocation53_spill] sm:$0xff] %v6509_v58  ;;  %v6568_v58 = vmul.f32 %v6441_v20, %v6414_v29  ;;  %v7995_v20 = vld [vmem:[#allocation103_spill] sm:$0xff]  ;;  %v7999_v40 = vld [vmem:[#allocation85_spill] sm:$0xff] }
 0x193   : > { %7958 = vst [vmem:[#allocation116_spill] sm:$0xff] %v6513_v13  ;;  %7961 = vst [vmem:[#allocation51_spill] sm:$0xff] %v6521_v21  ;;  %2321 = vmatmul.mubr.bf16.gmra.mrb[68].mxu0 %v1411_v16  ;;  %v6555_v21 = vmul.f32 %v7968_v24, %v7905_v15  ;;  %v4982_v16 = vld [vmem:[#allocation4 + $0xa0] sm:$0xff]   ;;  %v6572_v15 = vmul.f32 %v6439_v1, %v6417_v53  ;;  %v7982_v1 = vld [vmem:[#allocation95_spill] sm:$0xff]  ;;  %v6609_v47 = vmul.f32 %v7996_v12, %v7995_v20 }
 0x194   : > { %7962 = vst [vmem:[#allocation152_spill] sm:$0xff] %v6525_v9  ;;  %7963 = vst [vmem:[#allocation153_spill] sm:$0xff] %v6535_v19  ;;  %v7970_v9 = vld [vmem:[#allocation47_spill] sm:$0xff]  ;;  %4585 = vmatpush3.bf16.msra.mxu0 %v4977_v7  ;;  %v6561_v19 = vmul.f32 %v2605_v51, %v7971_v44  ;;  %v7976_v7 = vld [vmem:[#allocation121_spill] sm:$0xff] }
 0x195   : > { %7964 = vst [vmem:[#allocation154_spill] sm:$0xff] %v6539_v32  ;;  %7966 = vst [vmem:[#allocation52_spill] sm:$0xff] %v6547_v27  ;;  %2328 = vmatprep.mubr.bf16.mxu0 %v7970_v9  ;;  %4586 = vmatprep.subr.bf16.mxu0 %v4980_v5  ;;  %v7973_v32 = vpack.c.bf16 %v6306_v26, %v6296_v62  ;;  %v4984_v62 = vld [vmem:[#allocation4 + $0xa8] sm:$0xff]   ;;  %v7977_v26 = vld [vmem:[#allocation94_spill] sm:$0xff]  ;;  %v7981_v9 = vpack.c.bf16 %v6314_v6, %v7980_v31 }
 0x196   : > { %7967 = vst [vmem:[#allocation155_spill] sm:$0xff] %v6551_v25  ;;  %7969 = vst [vmem:[#allocation13_spill] sm:$0xff] %v6555_v21  ;;  %v7983_v27 = vld [vmem:[#allocation62_spill] sm:$0xff]  ;;  %v7986_v13 = vld [vmem:[#allocation79_spill] sm:$0xff] }
 0x197   : > { %7972 = vst [vmem:[#allocation11_spill] sm:$0xff] %v6561_v19  ;;  %1927 = vmatmul.mubr.bf16.gmra.mrb[40].mxu1 %v7973_v32  ;;  %7974 = vst [vmem:[#allocation156_spill] sm:$0xff] %v6568_v58  ;;  %v7978_v32 = vld [vmem:[#allocation65_spill] sm:$0xff]  ;;  %v6588_v25 = vmul.f32 %v7983_v27, %v7982_v1  ;;  %v7988_v58 = vld [vmem:[#allocation99_spill] sm:$0xff] }
 0x198   : > { %7975 = vst [vmem:[#allocation157_spill] sm:$0xff] %v6572_v15  ;;  %1934 = vmatprep.mubr.bf16.mxu1 %v7976_v7  ;;  %4587 = vmatpush3.bf16.msra.mxu0 %v4980_v5  ;;  %v6581_v44 = vmul.f32 %v7978_v32, %v7977_v26  ;;  %v7985_v5 = vld [vmem:[#allocation98_spill] sm:$0xff]  ;;  %v7991_v21 = vld [vmem:[#allocation63_spill] sm:$0xff]  ;;  %v7992_v15 = vld [vmem:[#allocation68_spill] sm:$0xff] }
 0x199   : > { %4588 = vmatprep.subr.bf16.mxu0 %v4982_v16  ;;  %7984 = vst [vmem:[#allocation65_spill] sm:$0xff] %v6588_v25  ;;  %v6592_v24 = vmul.f32 %v7986_v13, %v7985_v5  ;;  %v7989_v51 = vld [vmem:[#allocation78_spill] sm:$0xff]  ;;  %v7993_v7 = vld [vmem:[#allocation16_spill] sm:$0xff]  ;;  %7997 = vst [vmem:[#allocation62_spill] sm:$0xff] %v6609_v47  ;;  %v6630_v25 = vmul.f32 %v8004_v56, %v5960_v3 }
 0x19a   : > { %7979 = vst [vmem:[#allocation94_spill] sm:$0xff] %v6581_v44  ;;  %v6596_v19 = vmul.f32 %v7989_v51, %v7988_v58  ;;  %v1097_v33 = vmul.f32 %v7993_v7, %v7992_v15  ;;  %v7994_v6 = vld [vmem:[#allocation106_spill] sm:$0xff]  ;;  %v4987_v31 = vld [vmem:[#allocation4 + $0xb0] sm:$0xff]   ;;  %v8001_v15 = vld [vmem:[#allocation123_spill] sm:$0xff] }
 0x19b   : > { %2329 = vmatmul.mubr.bf16.gmra.mrb[72].mxu0 %v7981_v9  ;;  %7987 = vst [vmem:[#allocation122_spill] sm:$0xff] %v6592_v24  ;;  %v1217_v9 = vsel %vm1122_vm1, %v7994_v6, 0.0  ;;  %v8003_v6 = vld [vmem:[#allocation67_spill] sm:$0xff]  ;;  %v8005_v23 = vld [vmem:[#allocation108_spill] sm:$0xff]  ;;  %v8007_v46 = vld [vmem:[#allocation109_spill] sm:$0xff] }
 0x19c   : > { %7990 = vst [vmem:[#allocation95_spill] sm:$0xff] %v6596_v19  ;;  %2336 = vmatprep.mubr.bf16.mxu0 %v7991_v21  ;;  %4589 = vmatpush3.bf16.msra.mxu0 %v4982_v16  ;;  %v7998_v21 = vld [vmem:[#allocation104_spill] sm:$0xff]  ;;  %v1096_v29 = vmul.f32 %v8004_v56, %v8003_v6  ;;  %v8008_v24 = vld [vmem:[#allocation93_spill] sm:$0xff]  ;;  %v8011_v6 = vld [vmem:[#allocation102_spill] sm:$0xff] }
 0x19d   : > { %4590 = vmatprep.subr.bf16.mxu0 %v4984_v62  ;;  %v6613_v22 = vmul.f32 %v7999_v40, %v7998_v21  ;;  %v8000_v16 = vld [vmem:[#allocation124_spill] sm:$0xff]  ;;  %v6626_v19 = vmul.f32 %v8008_v24, %v8007_v46  ;;  %v8009_v43 = vld [vmem:[#allocation57_spill] sm:$0xff]  ;;  %v8013_v56 = vld [vmem:[#allocation19_spill] sm:$0xff] }
 0x19e   : > { %v8002_v53 = vpack.c.bf16 %v8000_v16, %v8001_v15  ;;  %v8006_v10 = vld [vmem:[#allocation96_spill] sm:$0xff]  ;;  %v6637_v15 = vmul.f32 %v7993_v7, %v5980_v50  ;;  %v8010_v16 = vld [vmem:[#allocation110_spill] sm:$0xff]  ;;  %v8012_v52 = vld [vmem:[#allocation101_spill] sm:$0xff] }
 0x19f   : > { %v6622_v44 = vmul.f32 %v8006_v10, %v8005_v23  ;;  %v6641_v42 = vmul.f32 %v8011_v6, %v8010_v16  ;;  %v6644_v30 = vmul.f32 %v8012_v52, %v1217_v9  ;;  %v4989_v47 = vld [vmem:[#allocation4 + $0xb8] sm:$0xff]   ;;  %v8014_v9 = vld [vmem:[#allocation18_spill] sm:$0xff]  ;;  %v8016_v50 = vld [vmem:[#allocation76_spill] sm:$0xff] }
 0x1a0   : > { %1935 = vmatmul.mubr.bf16.gmra.mrb[44].mxu1 %v8002_v53  ;;  %4591 = vmatpush3.bf16.msra.mxu0 %v4984_v62  ;;  %v1413_v53 = vpack.c.bf16 %v1097_v33, %v1096_v29  ;;  %v6658_v6 = vmul.f32 %v8014_v9, %v6052_v57  ;;  %v6668_v33 = vmul.f32 %v5619_v48, %v6125_v35  ;;  %v8015_v29 = vld [vmem:[#allocation73_spill] sm:$0xff]  ;;  %v6675_v3 = vld [vmem:[#allocation4 + $0x200] sm:$0xff]   ;;  %v8019_v35 = vld [vmem:[#allocation127_spill] sm:$0xff] }
 0x1a1   : > { %1942 = vmatprep.mubr.bf16.mxu1 %v8009_v43  ;;  %v6650_v43 = vmul.f32 %v8013_v56, %v6036_v63  ;;  %4592 = vmatprep.subr.bf16.mxu0 %v4987_v31  ;;  %v6664_v63 = vmul.f32 %v5621_v49, %v6108_v0  ;;  %v1098_v7 = vmul.f32 %v8013_v56, %v8016_v50  ;;  %v8017_v57 = vld [vmem:[#allocation77_spill] sm:$0xff]  ;;  %v8021_v56 = vld [vmem:[#allocation128_spill] sm:$0xff] }
 0x1a2   : > { %v6681_v0 = vmul.f32 %v5633_v55, %v6179_v17  ;;  %v6685_v48 = vmul.f32 %v5631_v54, %v6186_v37  ;;  %v6695_v49 = vmul.f32 %v5645_v61, %v6227_v41  ;;  %v6699_v55 = vmul.f32 %v5643_v60, %v7956_v14  ;;  %v8024_v37 = vld [vmem:[#allocation36_spill] sm:$0xff]  ;;  %v8030_v60 = vld [vmem:[#allocation43_spill] sm:$0xff] }
 0x1a3   : > { %2337 = vmatmul.mubr.bf16.gmra.mrb[76].mxu0 %v1413_v53  ;;  %v1099_v53 = vmul.f32 %v8014_v9, %v8017_v57  ;;  %v8028_v61 = vld [vmem:[#allocation44_spill] sm:$0xff]  ;;  %v8032_v14 = vmov 0.0   ;;  %v8073_v17 = vld [vmem:[#allocation119_spill] sm:$0xff] }
 0x1a4   : > { %2344 = vmatprep.mubr.bf16.mxu0 %v8015_v29  ;;  %4593 = vmatpush3.bf16.msra.mxu0 %v4987_v31  ;;  %8018 = vst [vmem:[#allocation98_spill] sm:$0xff] %v6681_v0  ;;  %v8020_v31 = vpack.c.bf16 %v6366_v18, %v8019_v35  ;;  %8022 = vst [vmem:[#allocation79_spill] sm:$0xff] %v6695_v49  ;;  %v6706_v18 = vmul.f32 %v7885_v2, %v8024_v37  ;;  %v8026_v35 = vld [vmem:[#allocation117_spill] sm:$0xff]  ;;  %v8036_v37 = vld [vmem:[#allocation59_spill] sm:$0xff] }
 0x1a5   : > { %4594 = vmatprep.subr.bf16.mxu0 %v4989_v47  ;;  %8023 = vst [vmem:[#allocation99_spill] sm:$0xff] %v6699_v55  ;;  %v1414_v54 = vpack.c.bf16 %v1099_v53, %v1098_v7  ;;  %v6714_v41 = vmul.f32 %v8028_v61, %v7977_v26  ;;  %v6721_v7 = vrot.slane %v8032_v14, 1  ;;  %v8034_v53 = vld [vmem:[#allocation60_spill] sm:$0xff]  ;;  %v6733_v26 = vmul.f32 %v7954_v4, %v6283_v39  ;;  %v8162_v55 = vld [vmem:[#allocation157_spill] sm:$0xff] }
 0x1a6   : > { %8025 = vst [vmem:[#allocation78_spill] sm:$0xff] %v6706_v18  ;;  %v6725_v2 = vmul.f32 %v8034_v53, %v7985_v5  ;;  %v6742_v5 = vmul.f32 %v7957_v8, %v6292_v38  ;;  %v6752_v4 = vmul.f32 %v7983_v27, %v7998_v21  ;;  %v6756_v14 = vmul.f32 %v7986_v13, %v8005_v23  ;;  %v8045_v38 = vld [vmem:[#allocation42_spill] sm:$0xff]  ;;  %v8046_v8 = vld [vmem:[#allocation133_spill] sm:$0xff]  ;;  %v8175_v0 = vld [vmem:[#allocation92_spill] sm:$0xff] }
 0x1a7   : > { %8029 = vst [vmem:[#allocation106_spill] sm:$0xff] %v6714_v41  ;;  %8033 = vst [vmem:[#allocation86_spill] sm:$0xff] %v6721_v7  ;;  %v8050_v21 = vld [vmem:[#allocation69_spill] sm:$0xff]  ;;  %v6777_v13 = vmul.f32 %v7996_v12, %v8010_v16  ;;  %v8053_v23 = vld [vmem:[#allocation134_spill] sm:$0xff] }
 0x1a8   : > { %1943 = vmatmul.mubr.bf16.gmra.mrb[48].mxu1 %v8020_v31  ;;  %4595 = vmatpush3.bf16.msra.mxu0 %v4989_v47  ;;  %v6710_v31 = vmul.f32 %v7886_v45, %v8026_v35  ;;  %v6718_v47 = vmul.f32 %v8030_v60, %v7982_v1  ;;  %8035 = vst [vmem:[#allocation104_spill] sm:$0xff] %v6725_v2  ;;  %8038 = vst [vmem:[#allocation124_spill] sm:$0xff] %v6733_v26  ;;  %v8039_v35 = vld [vmem:[#allocation82_spill] sm:$0xff]  ;;  %v8057_v16 = vld [vmem:[#allocation115_spill] sm:$0xff] }
 0x1a9   : > { %1950 = vmatprep.mubr.bf16.mxu1 %v8021_v56  ;;  %4628 = vmatprep.subr.bf16.mxu0 %v6675_v3  ;;  %v6729_v45 = vmul.f32 %v8036_v37, %v7988_v58  ;;  %8040 = vst [vmem:[#allocation123_spill] sm:$0xff] %v6742_v5  ;;  %v6746_v58 = vmul.f32 %v7978_v32, %v7995_v20  ;;  %8042 = vst [vmem:[#allocation108_spill] sm:$0xff] %v6752_v4  ;;  %v8048_v32 = vld [vmem:[#allocation72_spill] sm:$0xff]  ;;  %v8139_v4 = vld [vmem:[#allocation26_spill] sm:$0xff] }
 0x1aa   : > { %8027 = vst [vmem:[#allocation16_spill] sm:$0xff] %v6710_v31  ;;  %8031 = vst [vmem:[#allocation103_spill] sm:$0xff] %v6718_v47  ;;  %v8047_v1 = vpack.c.bf16 %v8045_v38, %v8046_v8  ;;  %v6769_v39 = vmul.f32 %v8048_v32, %v6322_v34  ;;  %v6773_v27 = vmul.f32 %v8050_v21, %v6327_v28  ;;  %v8056_v38 = vld [vmem:[#allocation105_spill] sm:$0xff]  ;;  %v8064_v12 = vld [vmem:[#allocation112_spill] sm:$0xff] }
 0x1ab   : > { %2345 = vmatmul.mubr.bf16.gmra.mrb[80].mxu0 %v1414_v54  ;;  %8037 = vst [vmem:[#allocation85_spill] sm:$0xff] %v6729_v45  ;;  %8041 = vst [vmem:[#allocation17_spill] sm:$0xff] %v6746_v58  ;;  %v6760_v54 = vmul.f32 %v7989_v51, %v8007_v46  ;;  %v2638_v28 = vsel %vm1122_vm1, %v8056_v38, %v6721_v7  ;;  %v6795_v8 = vmul.f32 %v8057_v16, %v8006_v10  ;;  %v8063_v51 = vld [vmem:[#allocation131_spill] sm:$0xff]  ;;  %v8066_v10 = vld [vmem:[#allocation132_spill] sm:$0xff] }
 0x1ac   : > { %2352 = vmatprep.mubr.bf16.mxu0 %v8039_v35  ;;  %8043 = vst [vmem:[#allocation96_spill] sm:$0xff] %v6756_v14  ;;  %8049 = vst [vmem:[#allocation93_spill] sm:$0xff] %v6769_v39  ;;  %v6798_v32 = vmul.f32 %v2638_v28, %v8008_v24  ;;  %v6802_v21 = vmul.f32 %v6023_v59, %v6348_v36  ;;  %v6812_v46 = vmul.f32 %v8064_v12, %v8063_v51  ;;  %v8067_v16 = vld [vmem:[#allocation111_spill] sm:$0xff]  ;;  %v8069_v59 = vld [vmem:[#allocation137_spill] sm:$0xff] }
 0x1ad   : > { %8044 = vst [vmem:[#allocation109_spill] sm:$0xff] %v6760_v54  ;;  %8051 = vst [vmem:[#allocation110_spill] sm:$0xff] %v6773_v27  ;;  %v6816_v20 = vmul.f32 %v8067_v16, %v8066_v10  ;;  %v8070_v36 = vld [vmem:[#allocation120_spill] sm:$0xff]  ;;  %v8079_v12 = vld [vmem:[#allocation135_spill] sm:$0xff] }
 0x1ae   : > { %8052 = vst [vmem:[#allocation19_spill] sm:$0xff] %v6777_v13  ;;  %8058 = vst [vmem:[#allocation73_spill] sm:$0xff] %v6795_v8  ;;  %v6822_v28 = vmul.f32 %v8070_v36, %v8069_v59  ;;  %v8078_v51 = vld [vmem:[#allocation136_spill] sm:$0xff]  ;;  %v8081_v59 = vld [vmem:[#allocation125_spill] sm:$0xff] }
 0x1af   : > { %8059 = vst [vmem:[#allocation76_spill] sm:$0xff] %v6798_v32  ;;  %8060 = vst [vmem:[#allocation77_spill] sm:$0xff] %v6802_v21  ;;  %v8080_v52 = vpack.c.bf16 %v8078_v51, %v8079_v12  ;;  %v8082_v36 = vld [vmem:[#allocation147_spill] sm:$0xff]  ;;  %v8088_v51 = vld [vmem:[#allocation144_spill] sm:$0xff] }
 0x1b0   : > { %1951 = vmatmul.mubr.bf16.gmra.mrb[52].mxu1 %v8047_v1  ;;  %v8054_v1 = vld [vmem:[#allocation113_spill] sm:$0xff]  ;;  %8065 = vst [vmem:[#allocation36_spill] sm:$0xff] %v6812_v46  ;;  %8068 = vst [vmem:[#allocation117_spill] sm:$0xff] %v6816_v20  ;;  %v6841_v24 = vmul.f32 %v8082_v36, %v8081_v59  ;;  %v8090_v10 = vld [vmem:[#allocation142_spill] sm:$0xff] }
 0x1b1   : > { %1958 = vmatprep.mubr.bf16.mxu1 %v8053_v23  ;;  %v6786_v34 = vmul.f32 %v8054_v1, %v7999_v40  ;;  %v8061_v1 = vld [vmem:[#allocation89_spill] sm:$0xff]  ;;  %8071 = vst [vmem:[#allocation44_spill] sm:$0xff] %v6822_v28  ;;  %v8072_v40 = vld [vmem:[#allocation138_spill] sm:$0xff]  ;;  %v8093_v36 = vld [vmem:[#allocation139_spill] sm:$0xff] }
 0x1b2   : > { %v6808_v38 = vmul.f32 %v8061_v1, %v6351_v11  ;;  %v6826_v9 = vmul.f32 %v8073_v17, %v8072_v40  ;;  %v8075_v11 = vld [vmem:[#allocation126_spill] sm:$0xff]  ;;  %8083 = vst [vmem:[#allocation59_spill] sm:$0xff] %v6841_v24  ;;  %v8084_v17 = vld [vmem:[#allocation40_spill] sm:$0xff]  ;;  %v8091_v46 = vld [vmem:[#allocation141_spill] sm:$0xff] }
 0x1b3   : > { %8055 = vst [vmem:[#allocation18_spill] sm:$0xff] %v6786_v34  ;;  %v8076_v1 = vld [vmem:[#allocation146_spill] sm:$0xff]  ;;  %2353 = vmatmul.mubr.bf16.gmra.mrb[84].mxu0 %v8080_v52  ;;  %v8085_v40 = vld [vmem:[#allocation100_spill] sm:$0xff]  ;;  %v8092_v59 = vpack.c.bf16 %v8090_v10, %v8091_v46  ;;  %v8098_v21 = vld [vmem:[#allocation49_spill] sm:$0xff] }
 0x1b4   : > { %8062 = vst [vmem:[#allocation127_spill] sm:$0xff] %v6808_v38  ;;  %8074 = vst [vmem:[#allocation43_spill] sm:$0xff] %v6826_v9  ;;  %v6830_v62 = vmul.f32 %v8076_v1, %v8075_v11  ;;  %v8086_v8 = vrot.slane %v8085_v40, 7  ;;  %v8087_v1 = vld [vmem:[#allocation90_spill] sm:$0xff]  ;;  %v8094_v40 = vld [vmem:[#allocation145_spill] sm:$0xff] }
 0x1b5   : > { %2360 = vmatprep.mubr.bf16.mxu0 %v8087_v1  ;;  %v8095_v20 = vld [vmem:[#allocation140_spill] sm:$0xff]  ;;  %v8099_v52 = vld [vmem:[#allocation50_spill] sm:$0xff]  ;;  %v8105_v10 = vld [vmem:[#allocation107_spill] sm:$0xff] }
 0x1b6   : > { %8077 = vst [vmem:[#allocation60_spill] sm:$0xff] %v6830_v62  ;;  %v2602_v11 = vsel %vm834_vm0, %v8086_v8, %v8084_v17  ;;  %v8096_v8 = vpack.c.bf16 %v8094_v40, %v8095_v20  ;;  %v8097_v17 = vld [vmem:[#allocation97_spill] sm:$0xff]  ;;  %v8100_v28 = vpack.c.bf16 %v8098_v21, %v8099_v52  ;;  %v8103_v16 = vld [vmem:[#allocation148_spill] sm:$0xff]  ;;  %v4979_v46 = vld [vmem:[#allocation4 + $0x180] sm:$0xff]  }
 0x1b7   : > { %v6851_v12 = vmul.f32 %v2602_v11, %v8088_v51  ;;  %v8101_v11 = vld [vmem:[#allocation37_spill] sm:$0xff]  ;;  %v8106_v62 = vld [vmem:[#allocation130_spill] sm:$0xff]  ;;  %v4985_v21 = vld [vmem:[#allocation4 + $0x1d0] sm:$0xff]  }
 0x1b8   : > { %1959 = vmatmul.mubr.bf16.gmra.mrb[56].mxu1 %v8092_v59  ;;  %v8102_v51 = vld [vmem:[#allocation149_spill] sm:$0xff]  ;;  %v4981_v59 = vld [vmem:[#allocation4 + $0x1c8] sm:$0xff]   ;;  %v8109_v40 = vld [vmem:[#allocation118_spill] sm:$0xff] }
 0x1b9   : > { %8089 = vst [vmem:[#allocation82_spill] sm:$0xff] %v6851_v12  ;;  %1966 = vmatprep.mubr.bf16.mxu1 %v8093_v36  ;;  %v8104_v12 = vpack.c.bf16 %v8102_v51, %v8103_v16  ;;  %v8107_v24 = vld [vmem:[#allocation129_spill] sm:$0xff]  ;;  %v4986_v16 = vld [vmem:[#allocation4 + $0x190] sm:$0xff]   ;;  %v8115_v38 = vld [vmem:[#allocation114_spill] sm:$0xff] }
 0x1ba   : > { %v8108_v20 = vpack.c.bf16 %v8106_v62, %v8107_v24  ;;  %v8111_v52 = vld [vmem:[#allocation45_spill] sm:$0xff]  ;;  %v8116_v24 = vld [vmem:[#allocation151_spill] sm:$0xff]  ;;  %v4992_v39 = vld [vmem:[#allocation4 + $0x1a0] sm:$0xff]  }
 0x1bb   : > { %2361 = vmatmul.mubr.bf16.gmra.mrb[88].mxu0 %v8096_v8  ;;  %v4983_v8 = vld [vmem:[#allocation4 + $0x188] sm:$0xff]   ;;  %v4988_v62 = vld [vmem:[#allocation4 + $0x1d8] sm:$0xff]   ;;  %v8129_v27 = vld [vmem:[#allocation24_spill] sm:$0xff] }
 0x1bc   : > { %2368 = vmatprep.mubr.bf16.mxu0 %v8097_v17  ;;  %v8120_v13 = vld [vmem:[#allocation121_spill] sm:$0xff]  ;;  %v8143_v26 = vld [vmem:[#allocation66_spill] sm:$0xff]  ;;  %v8149_v41 = vld [vmem:[#allocation71_spill] sm:$0xff] }
 0x1bd   : > { %v8123_v34 = vld [vmem:[#allocation53_spill] sm:$0xff]  ;;  %v8150_v47 = vld [vmem:[#allocation30_spill] sm:$0xff]  ;;  %v5004_v31 = vld [vmem:[#allocation4 + $0x228] sm:$0xff]  }
 0x1be   : > { %v8138_v58 = vld [vmem:[#allocation61_spill] sm:$0xff] }
 0x1bf   : > { %v5002_v45 = vld [vmem:[#allocation4 + $0x218] sm:$0xff]  }
 0x1c0   : > { %1967 = vmatmul.mubr.bf16.gmra.mrb[60].mxu1 %v8100_v28  ;;  %v8110_v28 = vld [vmem:[#allocation48_spill] sm:$0xff] }
 0x1c1   : > { %2392 = vmatprep.mubr.bf16.mxu1 %v8101_v11  ;;  %v8112_v36 = vpack.c.bf16 %v8110_v28, %v8111_v52  ;;  %v4991_v52 = vld [vmem:[#allocation4 + $0x1e0] sm:$0xff]  }
 0x1c2   : > { %v8161_v11 = vld [vmem:[#allocation34_spill] sm:$0xff] }
 0x1c3   : > { %2369 = vmatmul.mubr.bf16.gmra.mrb[92].mxu0 %v8104_v12  ;;  %v8113_v12 = vld [vmem:[#allocation41_spill] sm:$0xff] }
 0x1c4   : > { %2376 = vmatprep.mubr.bf16.mxu0 %v8105_v10  ;;  %v8114_v51 = vrot.slane %v8113_v12, 1 }
 0x1c6   : > { %v1126_v9 = vsel %vm1122_vm1, %v6721_v7, %v8114_v51  ;;  %v8122_v51 = vld [vmem:[#allocation116_spill] sm:$0xff] }
 0x1c8   : > { %2393 = vmatmul.mubr.bf16.vlgmr.msra.gmra.mrb[64].mxu1 %v8108_v20 }
 0x1c9   : > { %4309 = vmatpush3.bf16.msra.mxu1 %v4979_v46  ;;  %2400 = vmatprep.mubr.bf16.mxu1 %v8109_v40  ;;  %v8117_v46 = vld [vmem:[#allocation150_spill] sm:$0xff]  ;;  %v8152_v40 = vld [vmem:[#allocation52_spill] sm:$0xff] }
 0x1ca   : > { %4310 = vmatprep.subr.bf16.mxu1 %v4981_v59  ;;  %v8118_v20 = vpack.c.bf16 %v8116_v24, %v8117_v46  ;;  %v8119_v59 = vld [vmem:[#allocation20_spill] sm:$0xff]  ;;  %v4993_v24 = vld [vmem:[#allocation4 + $0x1e8] sm:$0xff]  }
 0x1cb   : > { %2377 = vmatmul.mubr.bf16.gmra.mrb[96].mxu0 %v8112_v36  ;;  %v1379_v32 = vmul.f32 %v8119_v59, %v1126_v9  ;;  %v4990_v36 = vld [vmem:[#allocation4 + $0x198] sm:$0xff]   ;;  %v8125_v9 = vld [vmem:[#allocation152_spill] sm:$0xff]  ;;  %v8126_v46 = vld [vmem:[#allocation51_spill] sm:$0xff] }
 0x1cc   : > { %2384 = vmatprep.mubr.bf16.mxu0 %v8115_v38  ;;  %v8163_v38 = vld [vmem:[#allocation156_spill] sm:$0xff] }
 0x1cd   : > { %4311 = vmatpush3.bf16.msra.mxu1 %v4983_v8  ;;  %v8121_v8 = vld [vmem:[#allocation21_spill] sm:$0xff] }
 0x1ce   : > { %4312 = vmatprep.subr.bf16.mxu1 %v4985_v21  ;;  %v1378_v28 = vmul.f32 %v8121_v8, %v6721_v7  ;;  %v8124_v21 = vpack.c.bf16 %v8122_v51, %v8123_v34  ;;  %v8130_v7 = vld [vmem:[#allocation57_spill] sm:$0xff] }
 0x1d0   : > { %2401 = vmatmul.mubr.bf16.gmra.mrb[68].mxu1 %v8118_v20  ;;  %v1442_v12 = vpack.c.bf16 %v1379_v32, %v1378_v28  ;;  %v8127_v20 = vpack.c.bf16 %v8125_v9, %v8126_v46  ;;  %v4994_v32 = vld [vmem:[#allocation4 + $0x1a8] sm:$0xff]   ;;  %v8132_v28 = vld [vmem:[#allocation25_spill] sm:$0xff]  ;;  %v4996_v9 = vld [vmem:[#allocation4 + $0x1b0] sm:$0xff]  }
 0x1d1   : > { %2408 = vmatprep.mubr.bf16.mxu1 %v8120_v13  ;;  %4313 = vmatpush3.bf16.msra.mxu1 %v4986_v16  ;;  %v8128_v16 = vld [vmem:[#allocation56_spill] sm:$0xff]  ;;  %v4997_v46 = vld [vmem:[#allocation4 + $0x1f8] sm:$0xff]   ;;  %v1385_v13 = vmul.f32 %v8139_v4, %v8138_v58 }
 0x1d2   : > { %4314 = vmatprep.subr.bf16.mxu1 %v4988_v62  ;;  %v1383_v14 = vmul.f32 %v8129_v27, %v8128_v16  ;;  %v8131_v62 = vld [vmem:[#allocation46_spill] sm:$0xff] }
 0x1d3   : > { %2385 = vmatmul.mubr.bf16.gmra.mrb[100].mxu0 %v8124_v21  ;;  %v1382_v34 = vmul.f32 %v8132_v28, %v8131_v62  ;;  %v8134_v21 = vld [vmem:[#allocation54_spill] sm:$0xff] }
 0x1d4   : > { %4596 = vmatprep.mubr.bf16.mxu0 %v1442_v12  ;;  %v5000_v12 = vld [vmem:[#allocation4 + $0x208] sm:$0xff]  }
 0x1d5   : > { %4315 = vmatpush3.bf16.msra.mxu1 %v4990_v36  ;;  %v4995_v36 = vld [vmem:[#allocation4 + $0x1f0] sm:$0xff]   ;;  %v1444_v51 = vpack.c.bf16 %v1383_v14, %v1382_v34  ;;  %v8141_v14 = vld [vmem:[#allocation153_spill] sm:$0xff] }
 0x1d6   : > { %4316 = vmatprep.subr.bf16.mxu1 %v4991_v52  ;;  %v8133_v52 = vld [vmem:[#allocation55_spill] sm:$0xff] }
 0x1d7   : > { %v8135_v54 = vpack.c.bf16 %v8133_v52, %v8134_v21  ;;  %v8144_v52 = vld [vmem:[#allocation28_spill] sm:$0xff]  ;;  %v8146_v21 = vld [vmem:[#allocation29_spill] sm:$0xff] }
 0x1d8   : > { %2409 = vmatmul.mubr.bf16.gmra.mrb[72].mxu1 %v8127_v20  ;;  %v8136_v20 = vld [vmem:[#allocation58_spill] sm:$0xff] }
 0x1d9   : > { %2416 = vmatprep.mubr.bf16.mxu1 %v8130_v7  ;;  %4317 = vmatpush3.bf16.msra.mxu1 %v4992_v39  ;;  %v8137_v7 = vld [vmem:[#allocation27_spill] sm:$0xff] }
 0x1da   : > { %4318 = vmatprep.subr.bf16.mxu1 %v4993_v24  ;;  %v1384_v39 = vmul.f32 %v8137_v7, %v8136_v20  ;;  %v8140_v24 = vld [vmem:[#allocation154_spill] sm:$0xff] }
 0x1db   : > { %4597 = vmatmul.mubr.bf16.vlgmr.msra.gmra.mrb[32].mxu0 %v8135_v54  ;;  %v8142_v34 = vpack.c.bf16 %v8140_v24, %v8141_v14  ;;  %v1387_v54 = vmul.f32 %v8144_v52, %v8143_v26  ;;  %v8147_v24 = vld [vmem:[#allocation70_spill] sm:$0xff]  ;;  %v8148_v14 = vld [vmem:[#allocation31_spill] sm:$0xff] }
 0x1dc   : > { %4600 = vmatprep.mubr.bf16.mxu0 %v1444_v51  ;;  %4629 = vmatpush3.bf16.msra.mxu0 %v6675_v3  ;;  %v8145_v51 = vld [vmem:[#allocation64_spill] sm:$0xff]  ;;  %v1445_v2 = vpack.c.bf16 %v1385_v13, %v1384_v39  ;;  %v8157_v39 = vld [vmem:[#allocation33_spill] sm:$0xff] }
 0x1dd   : > { %4319 = vmatpush3.bf16.msra.mxu1 %v4994_v32  ;;  %4630 = vmatprep.subr.bf16.mxu0 %v5000_v12  ;;  %v5001_v32 = vld [vmem:[#allocation4 + $0x210] sm:$0xff]   ;;  %v1386_v5 = vmul.f32 %v8146_v21, %v8145_v51 }
 0x1de   : > { %4320 = vmatprep.subr.bf16.mxu1 %v4995_v36  ;;  %v4998_v36 = vld [vmem:[#allocation4 + $0x1b8] sm:$0xff]   ;;  %v8155_v13 = vld [vmem:[#allocation32_spill] sm:$0xff] }
 0x1df   : > { %v1446_v3 = vpack.c.bf16 %v1387_v54, %v1386_v5  ;;  %v5003_v5 = vld [vmem:[#allocation4 + $0x220] sm:$0xff]  }
 0x1e0   : > { %2417 = vmatmul.mubr.bf16.gmra.mrb[76].mxu1 %v8142_v34  ;;  %4631 = vmatpush3.bf16.msra.mxu0 %v5000_v12  ;;  %v1388_v34 = vmul.f32 %v8148_v14, %v8147_v24 }
 0x1e1   : > { %2424 = vmatprep.mubr.bf16.mxu1 %v8021_v56  ;;  %4321 = vmatpush3.bf16.msra.mxu1 %v4996_v9  ;;  %v1389_v56 = vmul.f32 %v8150_v47, %v8149_v41  ;;  %v8151_v9 = vld [vmem:[#allocation155_spill] sm:$0xff] }
 0x1e2   : > { %4322 = vmatprep.subr.bf16.mxu1 %v4997_v46  ;;  %4632 = vmatprep.subr.bf16.mxu0 %v5001_v32  ;;  %v8153_v18 = vpack.c.bf16 %v8151_v9, %v8152_v40  ;;  %v8154_v46 = vld [vmem:[#allocation75_spill] sm:$0xff]  ;;  %v8160_v9 = vld [vmem:[#allocation81_spill] sm:$0xff] }
 0x1e3   : > { %4601 = vmatmul.mubr.bf16.gmra.mrb[36].mxu0 %v1445_v2  ;;  %v1391_v12 = vmul.f32 %v8155_v13, %v8154_v46  ;;  %v8156_v2 = vld [vmem:[#allocation74_spill] sm:$0xff]  ;;  %v8159_v40 = vld [vmem:[#allocation35_spill] sm:$0xff]  ;;  %v1393_v49 = vmul.f32 %v8161_v11, %v8160_v9  ;;  %v8165_v13 = vld [vmem:[#allocation84_spill] sm:$0xff] }
 0x1e4   : > { %4604 = vmatprep.mubr.bf16.mxu0 %v1446_v3  ;;  %4633 = vmatpush3.bf16.msra.mxu0 %v5001_v32  ;;  %v1390_v54 = vmul.f32 %v8157_v39, %v8156_v2  ;;  %v8158_v32 = vld [vmem:[#allocation80_spill] sm:$0xff]  ;;  %v8166_v39 = vld [vmem:[#allocation38_spill] sm:$0xff]  ;;  %v5006_v11 = vld [vmem:[#allocation4 + $0x238] sm:$0xff]  }
 0x1e5   : > { %4323 = vmatpush3.bf16.msra.mxu1 %v4998_v36  ;;  %4634 = vmatprep.subr.bf16.mxu0 %v5002_v45  ;;  %v1447_v36 = vpack.c.bf16 %v1389_v56, %v1388_v34  ;;  %v1395_v56 = vmul.f32 %v8166_v39, %v8165_v13  ;;  %v8167_v34 = vld [vmem:[#allocation47_spill] sm:$0xff]  ;;  %v8172_v39 = vld [vmem:[#allocation13_spill] sm:$0xff] }
 0x1e6   : > { %v1448_v3 = vpack.c.bf16 %v1391_v12, %v1390_v54  ;;  %v8168_v12 = vld [vmem:[#allocation83_spill] sm:$0xff] }
 0x1e7   : > { %v8169_v54 = vld [vmem:[#allocation39_spill] sm:$0xff] }
 0x1e8   : > { %2425 = vmatmul.mubr.bf16.gmra.mrb[80].mxu1 %v8153_v18  ;;  %4635 = vmatpush3.bf16.msra.mxu0 %v5002_v45  ;;  %v1392_v18 = vmul.f32 %v8159_v40, %v8158_v32  ;;  %v5005_v45 = vld [vmem:[#allocation4 + $0x230] sm:$0xff]   ;;  %v8173_v13 = vld [vmem:[#allocation11_spill] sm:$0xff] }
 0x1e9   : > { %2432 = vmatprep.mubr.bf16.mxu1 %v8053_v23  ;;  %4636 = vmatprep.subr.bf16.mxu0 %v5003_v5  ;;  %v8164_v23 = vpack.c.bf16 %v8162_v55, %v8163_v38 }
 0x1eb   : > { %4605 = vmatmul.mubr.bf16.gmra.mrb[40].mxu0 %v1447_v36  ;;  %v1394_v36 = vmul.f32 %v8169_v54, %v8168_v12  ;;  %v8181_v54 = vld [vmem:[#allocation10_spill] sm:$0xff] }
 0x1ec   : > { %4608 = vmatprep.mubr.bf16.mxu0 %v1448_v3  ;;  %4637 = vmatpush3.bf16.msra.mxu0 %v5003_v5  ;;  %v1449_v3 = vpack.c.bf16 %v1393_v49, %v1392_v18  ;;  %v8170_v5 = vld [vmem:[#allocation87_spill] sm:$0xff]  ;;  %v1399_v49 = vmul.f32 %v8036_v37, %v8175_v0 }
 0x1ed   : > { %4638 = vmatprep.subr.bf16.mxu0 %v5004_v31  ;;  %v1450_v40 = vpack.c.bf16 %v1395_v56, %v1394_v36  ;;  %v1396_v55 = vmul.f32 %v8028_v61, %v8170_v5  ;;  %v8177_v18 = vld [vmem:[#allocation91_spill] sm:$0xff]  ;;  %v8178_v56 = vld [vmem:[#allocation68_spill] sm:$0xff] }
 0x1ee   : > { %v8179_v36 = vld [vmem:[#allocation12_spill] sm:$0xff]  ;;  %v8182_v37 = vld [vmem:[#allocation15_spill] sm:$0xff] }
 0x1ef   : > { %v2609_v61 = vmul.f32 %v8179_v36, %v8178_v56  ;;  %v8185_v56 = vld [vmem:[#allocation94_spill] sm:$0xff] }
 0x1f0   : > { %2433 = vmatmul.mubr.bf16.gmra.mrb[84].mxu1 %v8164_v23  ;;  %4639 = vmatpush3.bf16.msra.mxu0 %v5004_v31  ;;  %v8171_v23 = vld [vmem:[#allocation88_spill] sm:$0xff]  ;;  %v8176_v31 = vld [vmem:[#allocation63_spill] sm:$0xff] }
 0x1f1   : > { %2931 = vmatprep.mubr.bf16.mxu1 %v8167_v34  ;;  %4640 = vmatprep.subr.bf16.mxu0 %v5005_v45  ;;  %v1397_v38 = vmul.f32 %v8030_v60, %v8171_v23  ;;  %v8174_v34 = vpack.c.bf16 %v8172_v39, %v8173_v13  ;;  %v2610_v39 = vmul.f32 %v8182_v37, %v8016_v50  ;;  %v8204_v37 = vld [vmem:[#allocation33_spill] sm:$0xff] }
 0x1f2   : > { %v8192_v50 = vpack.c.bf16 %v6626_v19, %v6622_v44  ;;  %v8195_v19 = vld [vmem:[#allocation23_spill] sm:$0xff] }
 0x1f3   : > { %4609 = vmatmul.mubr.bf16.gmra.mrb[44].mxu0 %v1449_v3  ;;  %v1451_v3 = vpack.c.bf16 %v1397_v38, %v1396_v55  ;;  %v8188_v38 = vld [vmem:[#allocation122_spill] sm:$0xff]  ;;  %v2644_v44 = vmul.f32 %v8195_v19, %v8136_v20 }
 0x1f4   : > { %4612 = vmatprep.mubr.bf16.mxu0 %v1450_v40  ;;  %4641 = vmatpush3.bf16.msra.mxu0 %v5005_v45  ;;  %v1398_v40 = vmul.f32 %v8034_v53, %v8177_v18  ;;  %v8180_v45 = vld [vmem:[#allocation67_spill] sm:$0xff]  ;;  %v8183_v53 = vld [vmem:[#allocation14_spill] sm:$0xff] }
 0x1f5   : > { %4642 = vmatprep.subr.bf16.mxu0 %v5006_v11  ;;  %v2608_v23 = vmul.f32 %v8181_v54, %v8180_v45 }
 0x1f6   : > { %v1452_v60 = vpack.c.bf16 %v1399_v49, %v1398_v40  ;;  %v2643_v40 = vmul.f32 %v8119_v59, %v8128_v16  ;;  %v8197_v59 = vpack.c.bf16 %v6658_v6, %v6650_v43  ;;  %v2648_v43 = vmul.f32 %v8137_v7, %v8147_v24 }
 0x1f7   : > { %v2675_v13 = vpack.c.bf16 %v2609_v61, %v2608_v23  ;;  %v2649_v6 = vmul.f32 %v8139_v4, %v8149_v41 }
 0x1f8   : > { %2932 = vmatmul.mubr.bf16.vlgmr.msra.gmra.mrb[88].mxu1 %v8174_v34  ;;  %4643 = vmatpush3.bf16.msra.mxu0 %v5006_v11  ;;  %v2611_v34 = vmul.f32 %v8183_v53, %v8017_v57  ;;  %v8187_v11 = vld [vmem:[#allocation95_spill] sm:$0xff]  ;;  %v8193_v57 = vpack.c.bf16 %v6637_v15, %v6630_v25  ;;  %v8196_v25 = vld [vmem:[#allocation22_spill] sm:$0xff] }
 0x1f9   : > { %2939 = vmatprep.mubr.bf16.mxu1 %v8176_v31  ;;  %v8184_v31 = vld [vmem:[#allocation65_spill] sm:$0xff]  ;;  %v8189_v49 = vpack.c.bf16 %v8187_v11, %v8188_v38  ;;  %v2645_v15 = vmul.f32 %v8196_v25, %v8138_v58  ;;  %v2693_v24 = vpack.c.bf16 %v2649_v6, %v2648_v43  ;;  %v8206_v11 = vld [vmem:[#allocation88_spill] sm:$0xff]  ;;  %v8207_v38 = vld [vmem:[#allocation34_spill] sm:$0xff] }
 0x1fa   : > { %v8186_v55 = vpack.c.bf16 %v8184_v31, %v8185_v56  ;;  %v2676_v54 = vpack.c.bf16 %v2611_v34, %v2610_v39  ;;  %v2654_v39 = vmul.f32 %v8204_v37, %v8168_v12  ;;  %v8209_v12 = vld [vmem:[#allocation79_spill] sm:$0xff]  ;;  %v8232_v37 = vld [vmem:[#allocation96_spill] sm:$0xff] }
 0x1fb   : > { %4613 = vmatmul.mubr.bf16.gmra.mrb[48].mxu0 %v1451_v3  ;;  %v2691_v20 = vpack.c.bf16 %v2645_v15, %v2644_v44 }
 0x1fc   : > { %4616 = vmatprep.mubr.bf16.mxu0 %v1452_v60 }
 0x200   : > { %2940 = vmatmul.mubr.bf16.gmra.mrb[92].mxu1 %v2675_v13  ;;  %v8203_v13 = vld [vmem:[#allocation114_spill] sm:$0xff] }
 0x201   : > { %2947 = vmatprep.mubr.bf16.mxu1 %v8015_v29  ;;  %v8190_v29 = vld [vmem:[#allocation62_spill] sm:$0xff] }
 0x202   : > { %v8191_v23 = vpack.c.bf16 %v6613_v22, %v8190_v29  ;;  %v8194_v22 = vpack.c.bf16 %v6644_v30, %v6641_v42  ;;  %v2646_v30 = vmul.f32 %v8132_v28, %v8145_v51  ;;  %v2650_v51 = vmul.f32 %v8146_v21, %v8156_v2  ;;  %v8201_v21 = vld [vmem:[#allocation84_spill] sm:$0xff] }
 0x203   : > { %4617 = vmatmul.mubr.bf16.gmra.mrb[52].mxu0 %v8186_v55 }
 0x204   : > { %4620 = vmatprep.mubr.bf16.mxu0 %v8189_v49  ;;  %v2657_v49 = vmul.f32 %v8207_v38, %v8206_v11  ;;  %v8238_v11 = vld [vmem:[#allocation86_spill] sm:$0xff] }
 0x205   : > { %v2641_v38 = vsel %vm1122_vm1, %v8238_v11, 0.0 }
 0x208   : > { %2948 = vmatmul.mubr.bf16.gmra.mrb[96].mxu1 %v2676_v54  ;;  %v8208_v54 = vld [vmem:[#allocation99_spill] sm:$0xff] }
 0x209   : > { %2955 = vmatprep.mubr.bf16.mxu1 %v8039_v35  ;;  %v2642_v35 = vmul.f32 %v8121_v8, %v8131_v62  ;;  %v8210_v29 = vpack.c.bf16 %v8208_v54, %v8209_v12 }
 0x20b   : > { %4621 = vmatmul.mubr.bf16.gmra.mrb[56].mxu0 %v8191_v23  ;;  %v2690_v36 = vpack.c.bf16 %v2643_v40, %v2642_v35  ;;  %v8211_v23 = vld [vmem:[#allocation38_spill] sm:$0xff]  ;;  %v8213_v40 = vld [vmem:[#allocation39_spill] sm:$0xff] }
 0x20c   : > { %4624 = vmatprep.mubr.bf16.mxu0 %v8192_v50  ;;  %v2659_v50 = vmul.f32 %v8211_v23, %v8175_v0  ;;  %v2658_v35 = vmul.f32 %v8213_v40, %v8177_v18  ;;  %v8240_v23 = vld [vmem:[#allocation19_spill] sm:$0xff]  ;;  %v8242_v40 = vld [vmem:[#allocation76_spill] sm:$0xff] }
 0x20e   : > { %v4052_v8 = vpop.f32.mrb[0].mxu1  ;;  %v2698_v44 = vpack.c.bf16 %v2659_v50, %v2658_v35  ;;  %v8243_v35 = vld [vmem:[#allocation73_spill] sm:$0xff] }
 0x20f   : > { %v4053_v16 = vpop.f32.mrb[1].mxu1 }
 0x210   : > { %2956 = vmatmul.mubr.bf16.gmra.mrb[100].mxu1 %v8193_v57  ;;  %v6998_v42 = vadd.f32 %v4053_v16, %v4052_v8  ;;  %v4055_v62 = vpop.f32.mrb[2].mxu1  ;;  %v8212_v57 = vld [vmem:[#allocation37_spill] sm:$0xff]  ;;  %v8215_v8 = vld [vmem:[#allocation78_spill] sm:$0xff] }
 0x211   : > { %2963 = vmatprep.mubr.bf16.mxu1 %v8087_v1  ;;  %v2647_v1 = vmul.f32 %v8129_v27, %v8143_v26  ;;  %v4056_v61 = vpop.f32.mrb[3].mxu1  ;;  %v8198_v26 = vpack.c.bf16 %v6668_v33, %v6664_v63  ;;  %v2651_v27 = vmul.f32 %v8144_v52, %v8154_v46  ;;  %v2652_v63 = vmul.f32 %v8148_v14, %v8158_v32  ;;  %v8202_v46 = vld [vmem:[#allocation32_spill] sm:$0xff]  ;;  %v8217_v16 = vld [vmem:[#allocation118_spill] sm:$0xff] }
 0x212   : > { %v7000_v3 = vadd.f32 %v4056_v61, %v4055_v62  ;;  %v2653_v33 = vmul.f32 %v8150_v47, %v8160_v9  ;;  %v2655_v2 = vmul.f32 %v8202_v46, %v8201_v21  ;;  %v8205_v9 = vld [vmem:[#allocation35_spill] sm:$0xff]  ;;  %v8229_v21 = vld [vmem:[#allocation17_spill] sm:$0xff] }
 0x213   : > { %4625 = vmatmul.mubr.bf16.gmra.mrb[60].mxu0 %v8194_v22  ;;  %v2692_v58 = vpack.c.bf16 %v2647_v1, %v2646_v30  ;;  %v2694_v41 = vpack.c.bf16 %v2651_v27, %v2650_v51  ;;  %v2656_v55 = vmul.f32 %v8205_v9, %v8170_v5  ;;  %v8214_v1 = vld [vmem:[#allocation16_spill] sm:$0xff]  ;;  %v8218_v61 = vld [vmem:[#allocation103_spill] sm:$0xff]  ;;  %v5008_v9 = vld [vmem:[%s7454_s7] sm:$0xff]  }
 0x214   : > { %4644 = vmatprep.mubr.bf16.mxu0 %v2690_v36  ;;  %v2695_v34 = vpack.c.bf16 %v2653_v33, %v2652_v63  ;;  %v2696_v56 = vpack.c.bf16 %v2655_v2, %v2654_v39  ;;  %v8216_v0 = vpack.c.bf16 %v8214_v1, %v8215_v8  ;;  %v8222_v27 = vld [vmem:[#allocation104_spill] sm:$0xff]  ;;  %v8224_v51 = vld [vmem:[#allocation123_spill] sm:$0xff]  ;;  %v8248_v8 = vld [vmem:[#allocation77_spill] sm:$0xff] }
 0x215   : > { %v2697_v22 = vpack.c.bf16 %v2657_v49, %v2656_v55  ;;  %v8247_v1 = vld [vmem:[#allocation127_spill] sm:$0xff] }
 0x218   : > { %2964 = vmatmul.mubr.bf16.gmra.mrb[104].mxu1 %v8197_v59 }
 0x219   : > { %2971 = vmatprep.mubr.bf16.mxu1 %v8097_v17  ;;  %v4058_v17 = vpop.f32.mrb[4].mxu1 }
 0x21a   : > { %v4059_v28 = vpop.f32.mrb[5].mxu1 }
 0x21b   : > { %4645 = vmatmul.mubr.bf16.vlgmr.msra.gmra.mrb[32].mxu0 %v2691_v20  ;;  %v7014_v60 = vadd.f32 %v4059_v28, %v4058_v17  ;;  %v4061_v7 = vpop.f32.mrb[6].mxu1 }
 0x21c   : > { %4648 = vmatprep.mubr.bf16.mxu0 %v2692_v58  ;;  %v4062_v45 = vpop.f32.mrb[7].mxu1  ;;  %v8219_v58 = vld [vmem:[#allocation106_spill] sm:$0xff] }
 0x21d   : > { %v7016_v4 = vadd.f32 %v4062_v45, %v4061_v7  ;;  %v8220_v43 = vpack.c.bf16 %v8218_v61, %v8219_v58  ;;  %v8225_v7 = vld [vmem:[#allocation124_spill] sm:$0xff]  ;;  %v8227_v45 = vld [vmem:[#allocation121_spill] sm:$0xff] }
 0x220   : > { %2972 = vmatmul.mubr.bf16.gmra.mrb[108].mxu1 %v8198_v26  ;;  %v4064_v53 = vpop.f32.mrb[8].mxu1  ;;  %v8221_v26 = vld [vmem:[#allocation85_spill] sm:$0xff] }
 0x221   : > { %2979 = vmatprep.mubr.bf16.mxu1 %v8105_v10  ;;  %v8199_v10 = vld [vmem:[#allocation98_spill] sm:$0xff]  ;;  %v4065_v31 = vpop.f32.mrb[9].mxu1  ;;  %v8223_v17 = vpack.c.bf16 %v8221_v26, %v8222_v27  ;;  %v5009_v26 = vld [vmem:[%s7454_s7 + $0x48] sm:$0xff]  }
 0x222   : > { %v8200_v52 = vpack.c.bf16 %v6685_v48, %v8199_v10  ;;  %v7030_v14 = vadd.f32 %v4065_v31, %v4064_v53  ;;  %v4067_v32 = vpop.f32.mrb[10].mxu1  ;;  %v8235_v31 = vld [vmem:[#allocation93_spill] sm:$0xff]  ;;  %v5010_v27 = vld [vmem:[%s7454_s7 + $0x8] sm:$0xff]  }
 0x223   : > { %4649 = vmatmul.mubr.bf16.gmra.mrb[36].mxu0 %v2693_v24  ;;  %v4068_v47 = vpop.f32.mrb[11].mxu1  ;;  %v8226_v24 = vpack.c.bf16 %v8224_v51, %v8225_v7  ;;  %v8252_v51 = vld [vmem:[#allocation36_spill] sm:$0xff] }
 0x224   : > { %4652 = vmatprep.mubr.bf16.mxu0 %v2694_v41  ;;  %v7032_v48 = vadd.f32 %v4068_v47, %v4067_v32  ;;  %v8237_v32 = vld [vmem:[#allocation57_spill] sm:$0xff]  ;;  %v5007_v47 = vld [vmem:[%s7454_s7 + $0x40] sm:$0xff]  }
 0x225   : > { %4444 = vmatprep.subr.bf16.mxu1 %v5007_v47 }
 0x226   : > { %4445 = vmatpush3.bf16.msra.mxu1 %v5008_v9 }
 0x227   : > { %4446 = vmatprep.subr.bf16.mxu1 %v5009_v26 }
 0x228   : > { %2980 = vmatmul.mubr.bf16.gmra.mrb[112].mxu1 %v8200_v52  ;;  %v8228_v52 = vld [vmem:[#allocation108_spill] sm:$0xff] }
 0x229   : > { %2987 = vmatprep.mubr.bf16.mxu1 %v8203_v13  ;;  %v4070_v36 = vpop.f32.mrb[12].mxu1  ;;  %v8230_v46 = vpack.c.bf16 %v8228_v52, %v8229_v21  ;;  %v8231_v13 = vld [vmem:[#allocation109_spill] sm:$0xff] }
 0x22a   : > { %v4071_v19 = vpop.f32.mrb[13].mxu1  ;;  %v8233_v39 = vpack.c.bf16 %v8231_v13, %v8232_v37  ;;  %4447 = vmatpush3.bf16.msra.mxu1 %v5010_v27 }
 0x22b   : > { %4653 = vmatmul.mubr.bf16.gmra.mrb[40].mxu0 %v2695_v34  ;;  %v7046_v5 = vadd.f32 %v4071_v19, %v4070_v36  ;;  %v4073_v25 = vpop.f32.mrb[14].mxu1  ;;  %v8234_v34 = vld [vmem:[#allocation110_spill] sm:$0xff]  ;;  %v8244_v36 = vpack.c.bf16 %v8242_v40, %v8243_v35  ;;  %v8260_v40 = vld [vmem:[#allocation60_spill] sm:$0xff] }
 0x22c   : > { %4656 = vmatprep.mubr.bf16.mxu0 %v2696_v56  ;;  %v4074_v15 = vpop.f32.mrb[15].mxu1  ;;  %v8236_v56 = vpack.c.bf16 %v8234_v34, %v8235_v31 }
 0x22d   : > { %v7048_v59 = vadd.f32 %v4074_v15, %v4073_v25 }
 0x230   : > { %2988 = vmatmul.mubr.bf16.gmra.mrb[116].mxu1 %v8210_v29  ;;  %v8239_v29 = vld [vmem:[#allocation18_spill] sm:$0xff] }
 0x231   : > { %2995 = vmatprep.mubr.bf16.mxu1 %v8212_v57  ;;  %v8241_v50 = vpack.c.bf16 %v8239_v29, %v8240_v23 }
 0x233   : > { %4657 = vmatmul.mubr.bf16.gmra.mrb[44].mxu0 %v2697_v22  ;;  %v4076_v30 = vpop.f32.mrb[16].mxu1  ;;  %v8245_v22 = vld [vmem:[#allocation101_spill] sm:$0xff] }
 0x234   : > { %4660 = vmatprep.mubr.bf16.mxu0 %v2698_v44  ;;  %v4077_v18 = vpop.f32.mrb[17].mxu1  ;;  %v2673_v19 = vmul.f32 %v2641_v38, %v8245_v22  ;;  %v8246_v44 = vld [vmem:[#allocation102_spill] sm:$0xff] }
 0x235   : > { %v7054_v62 = vadd.f32 %v4077_v18, %v4076_v30  ;;  %v4079_v20 = vpop.f32.mrb[18].mxu1  ;;  %v2672_v25 = vmul.f32 %v8246_v44, %v8238_v11 }
 0x236   : > { %v4080_v6 = vpop.f32.mrb[19].mxu1 }
 0x237   : > { %v7062_v28 = vadd.f32 %v4080_v6, %v4079_v20  ;;  %v2705_v18 = vpack.c.bf16 %v2673_v19, %v2672_v25  ;;  %v8262_v19 = vmov 0.0|0.0  }
 0x238   : > { %2996 = vmatmul.mubr.bf16.gmra.mrb[120].mxu1 %v8216_v0  ;;  %v8249_v0 = vpack.c.bf16 %v8247_v1, %v8248_v8  ;;  %v8263_v8 = vld [vmem:[#allocation40_spill] sm:$0xff] }
 0x239   : > { %3003 = vmatprep.mubr.bf16.mxu1 %v8217_v16  ;;  %v8250_v16 = vld [vmem:[#allocation128_spill] sm:$0xff] }
 0x23b   : > { %4661 = vmatmul.mubr.bf16.gmra.mrb[48].mxu0 %v8220_v43  ;;  %v4082_v41 = vpop.f32.mrb[20].mxu1 }
 0x23c   : > { %4664 = vmatprep.mubr.bf16.mxu0 %v8223_v17  ;;  %v4083_v63 = vpop.f32.mrb[21].mxu1  ;;  %v8251_v17 = vld [vmem:[#allocation117_spill] sm:$0xff] }
 0x23d   : > { %v7068_v33 = vadd.f32 %v4083_v63, %v4082_v41  ;;  %v4085_v10 = vpop.f32.mrb[22].mxu1  ;;  %v8253_v7 = vpack.c.bf16 %v8251_v17, %v8252_v51  ;;  %v8265_v17 = vld [vmem:[#allocation82_spill] sm:$0xff] }
 0x23e   : > { %v4086_v2 = vpop.f32.mrb[23].mxu1 }
 0x23f   : > { %v7076_v53 = vadd.f32 %v4086_v2, %v4085_v10  ;;  %v8256_v2 = vld [vmem:[#allocation44_spill] sm:$0xff] }
 0x240   : > { %3004 = vmatmul.mubr.bf16.gmra.mrb[124].mxu1 %v8226_v24  ;;  %v8254_v24 = vld [vmem:[#allocation134_spill] sm:$0xff] }
 0x241   : > { %3011 = vmatprep.mubr.bf16.mxu1 %v8227_v45 }
 0x243   : > { %4665 = vmatmul.mubr.bf16.gmra.mrb[52].mxu0 %v8230_v46  ;;  %v8255_v46 = vld [vmem:[#allocation43_spill] sm:$0xff] }
 0x244   : > { %4668 = vmatprep.mubr.bf16.mxu0 %v8233_v39  ;;  %v4088_v55 = vpop.f32.mrb[24].mxu1  ;;  %v8257_v13 = vpack.c.bf16 %v8255_v46, %v8256_v2  ;;  %v8258_v39 = vld [vmem:[#allocation139_spill] sm:$0xff] }
 0x245   : > { %v4089_v49 = vpop.f32.mrb[25].mxu1 }
 0x246   : > { %v7090_v54 = vadd.f32 %v4089_v49, %v4088_v55  ;;  %v4091_v12 = vpop.f32.mrb[26].mxu1 }
 0x247   : > { %v4092_v57 = vpop.f32.mrb[27].mxu1 }
 0x248   : > { %3012 = vmatmul.mubr.bf16.gmra.mrb[128].mxu1 %v8236_v56  ;;  %v7101_v15 = vadd.f32 %v4092_v57, %v4091_v12  ;;  %v8259_v57 = vld [vmem:[#allocation59_spill] sm:$0xff] }
 0x249   : > { %3019 = vmatprep.mubr.bf16.mxu1 %v8237_v32  ;;  %v8261_v35 = vpack.c.bf16 %v8259_v57, %v8260_v40 }
 0x24b   : > { %4669 = vmatmul.mubr.bf16.gmra.mrb[56].mxu0 %v8241_v50  ;;  %v5011_v50 = vld [vmem:[%s7454_s7 + $0x50] sm:$0xff]  }
 0x24c   : > { %4672 = vmatprep.mubr.bf16.mxu0 %v8244_v36  ;;  %v4094_v30 = vpop.f32.mrb[28].mxu1  ;;  %4448 = vmatprep.subr.bf16.mxu1 %v5011_v50 }
 0x24d   : > { %v4095_v20 = vpop.f32.mrb[29].mxu1 }
 0x24e   : > { %v7107_v61 = vadd.f32 %v4095_v20, %v4094_v30  ;;  %v4097_v58 = vpop.f32.mrb[30].mxu1 }
 0x24f   : > { %v4098_v43 = vpop.f32.mrb[31].mxu1 }
 0x250   : > { %3020 = vmatmul.mubr.bf16.gmra.mrb[132].mxu1 %v8249_v0  ;;  %v7109_v6 = vadd.f32 %v4098_v43, %v4097_v58  ;;  %v8264_v0 = vld [vmem:[#allocation143_spill] sm:$0xff] }
 0x251   : > { %3027 = vmatprep.mubr.bf16.mxu1 %v8250_v16  ;;  %v2637_v16 = vmul.f32 %v8264_v0, %v8263_v8 }
 0x253   : > { %4673 = vmatmul.mubr.bf16.gmra.mrb[60].mxu0 %v2705_v18  ;;  %v2689_v51 = vpack.c.bf16 %v2637_v16, %v8265_v17 }
 0x254   : > { %v4100_v45 = vpop.f32.mrb[32].mxu1 }
 0x255   : > { %v4101_v41 = vpop.f32.mrb[33].mxu1 }
 0x256   : > { %v7121_v63 = vadd.f32 %v4101_v41, %v4100_v45  ;;  %v4103_v10 = vpop.f32.mrb[34].mxu1 }
 0x257   : > { %v4104_v52 = vpop.f32.mrb[35].mxu1 }
 0x258   : > { %3028 = vmatmul.mubr.bf16.gmra.mrb[136].mxu1 %v8253_v7  ;;  %v7123_v21 = vadd.f32 %v4104_v52, %v4103_v10 }
 0x259   : > { %3035 = vmatprep.mubr.bf16.mxu1 %v8254_v24 }
 0x25e   : > { %v4188_v37 = vpop.f32.mrb[64].mxu0 }
 0x25f   : > { %v4189_v34 = vpop.f32.mrb[65].mxu0 }
 0x260   : > { %3036 = vmatmul.mubr.bf16.gmra.mrb[140].mxu1 %v8257_v13  ;;  %v4190_v31 = vadd.f32 %v4189_v34, %v4188_v37  ;;  %v4191_v56 = vpop.f32.mrb[66].mxu0  ;;  %v4106_v32 = vpop.f32.mrb[36].mxu1 }
 0x261   : > { %3043 = vmatprep.mubr.bf16.mxu1 %v8258_v39  ;;  %v4192_v47 = vpop.f32.mrb[67].mxu0  ;;  %v4107_v55 = vpop.f32.mrb[37].mxu1 }
 0x262   : > { %v7130_v9 = vadd.f32 %v4190_v31, %v6998_v42  ;;  %v4193_v11 = vadd.f32 %v4192_v47, %v4191_v56  ;;  %v7132_v38 = vadd.f32 %v4107_v55, %v4106_v32  ;;  %v4109_v49 = vpop.f32.mrb[38].mxu1  ;;  %v5012_v42 = vld [vmem:[%s7454_s7 + $0x10] sm:$0xff]  }
 0x263   : > { %v4110_v29 = vpop.f32.mrb[39].mxu1  ;;  %4449 = vmatpush3.bf16.msra.mxu1 %v5012_v42  ;;  %v5013_v42 = vld [vmem:[%s7454_s7 + $0x58] sm:$0xff]  }
 0x264   : > { %v7135_v12 = vadd.f32 %v4193_v11, %v7000_v3  ;;  %v7137_v23 = vadd.f32 %v4110_v29, %v4109_v49  ;;  %4450 = vmatprep.subr.bf16.mxu1 %v5013_v42  ;;  %v5020_v42 = vld [vmem:[%s7454_s7 + $0x30] sm:$0xff]  }
 0x266   : > { %v4194_v36 = vpop.f32.mrb[68].mxu0 }
 0x267   : > { %v4195_v22 = vpop.f32.mrb[69].mxu0 }
 0x268   : > { %3044 = vmatmul.mubr.bf16.gmra.mrb[144].mxu1 %v8261_v35  ;;  %v4196_v3 = vadd.f32 %v4195_v22, %v4194_v36  ;;  %v4197_v44 = vpop.f32.mrb[70].mxu0 }
 0x269   : > { %3051 = vmatprep.mubr.bf16.mxu1 %v8262_v19  ;;  %v4198_v1 = vpop.f32.mrb[71].mxu0 }
 0x26a   : > { %v4112_v25 = vpop.f32.mrb[40].mxu1  ;;  %v7152_v30 = vadd.f32 %v4196_v3, %v7014_v60  ;;  %v4199_v20 = vadd.f32 %v4198_v1, %v4197_v44 }
 0x26b   : > { %v4113_v18 = vpop.f32.mrb[41].mxu1 }
 0x26c   : > { %v7154_v58 = vadd.f32 %v4113_v18, %v4112_v25  ;;  %v4115_v43 = vpop.f32.mrb[42].mxu1  ;;  %v7157_v26 = vadd.f32 %v4199_v20, %v7016_v4  ;;  %v5015_v20 = vld [vmem:[%s7454_s7 + $0x60] sm:$0xff]  }
 0x26d   : > { %v4116_v27 = vpop.f32.mrb[43].mxu1 }
 0x26e   : > { %v7160_v7 = vadd.f32 %v4116_v27, %v4115_v43  ;;  %v4200_v24 = vpop.f32.mrb[72].mxu0 }
 0x26f   : > { %v4201_v45 = vpop.f32.mrb[73].mxu0 }
 0x270   : > { %3052 = vmatmul.mubr.bf16.gmra.mrb[148].mxu1 %v2689_v51  ;;  %v4202_v41 = vadd.f32 %v4201_v45, %v4200_v24  ;;  %v4203_v10 = vpop.f32.mrb[74].mxu0 }
 0x271   : > { %v4204_v52 = vpop.f32.mrb[75].mxu0 }
 0x272   : > { %v7163_v46 = vadd.f32 %v4202_v41, %v7030_v14  ;;  %v4205_v13 = vadd.f32 %v4204_v52, %v4203_v10  ;;  %v5016_v41 = vld [vmem:[%s7454_s7 + $0x20] sm:$0xff]  }
 0x273   : > { %v4118_v60 = vpop.f32.mrb[44].mxu1 }
 0x274   : > { %v4119_v2 = vpop.f32.mrb[45].mxu1  ;;  %v7168_v39 = vadd.f32 %v4205_v13, %v7032_v48  ;;  %v5014_v48 = vld [vmem:[%s7454_s7 + $0x18] sm:$0xff]   ;;  %v5017_v13 = vld [vmem:[%s7454_s7 + $0x68] sm:$0xff]  }
 0x275   : > { %v7165_v37 = vadd.f32 %v4119_v2, %v4118_v60  ;;  %v4121_v4 = vpop.f32.mrb[46].mxu1  ;;  %4451 = vmatpush3.bf16.msra.mxu1 %v5014_v48 }
 0x276   : > { %v4122_v34 = vpop.f32.mrb[47].mxu1  ;;  %v4206_v56 = vpop.f32.mrb[76].mxu0  ;;  %4452 = vmatprep.subr.bf16.mxu1 %v5015_v20  ;;  %v3477_v20 = vld [vmem:[#allocation3 + $0x11] ss:$2 sm:$0xff] }
 0x277   : > { %v7170_v31 = vadd.f32 %v4122_v34, %v4121_v4  ;;  %v4207_v32 = vpop.f32.mrb[77].mxu0  ;;  %v5018_v4 = vld [vmem:[%s7454_s7 + $0x28] sm:$0xff]  }
 0x278   : > { %v4208_v47 = vadd.f32 %v4207_v32, %v4206_v56  ;;  %v4209_v55 = vpop.f32.mrb[78].mxu0  ;;  %v5019_v32 = vld [vmem:[%s7454_s7 + $0x70] sm:$0xff]  }
 0x279   : > { %v4210_v49 = vpop.f32.mrb[79].mxu0  ;;  %4453 = vmatpush3.bf16.msra.mxu1 %v5016_v41 }
 0x27a   : > { %v7173_v14 = vadd.f32 %v4208_v47, %v7046_v5  ;;  %v4211_v50 = vadd.f32 %v4210_v49, %v4209_v55  ;;  %4454 = vmatprep.subr.bf16.mxu1 %v5017_v13 }
 0x27b   : > { %v4124_v11 = vpop.f32.mrb[48].mxu1 }
 0x27c   : > { %v4125_v29 = vpop.f32.mrb[49].mxu1  ;;  %v7184_v35 = vadd.f32 %v4211_v50, %v7048_v59 }
 0x27d   : > { %v7181_v57 = vadd.f32 %v4125_v29, %v4124_v11  ;;  %v4127_v40 = vpop.f32.mrb[50].mxu1  ;;  %4455 = vmatpush3.bf16.msra.mxu1 %v5018_v4 }
 0x27e   : > { %v4128_v36 = vpop.f32.mrb[51].mxu1  ;;  %v4212_v22 = vpop.f32.mrb[80].mxu0  ;;  %4456 = vmatprep.subr.bf16.mxu1 %v5019_v32 }
 0x27f   : > { %v7186_v5 = vadd.f32 %v4128_v36, %v4127_v40  ;;  %v4213_v19 = vpop.f32.mrb[81].mxu0 }
 0x280   : > { %v4214_v3 = vadd.f32 %v4213_v19, %v4212_v22  ;;  %v4215_v44 = vpop.f32.mrb[82].mxu0  ;;  %v5021_v19 = vld [vmem:[%s7454_s7 + $0x78] sm:$0xff]  }
 0x281   : > { %v4216_v1 = vpop.f32.mrb[83].mxu0  ;;  %4457 = vmatpush3.bf16.msra.mxu1 %v5020_v42 }
 0x282   : > { %v7189_v8 = vadd.f32 %v4214_v3, %v7054_v62  ;;  %v4217_v16 = vadd.f32 %v4216_v1, %v4215_v44  ;;  %v5022_v3 = vld [vmem:[%s7454_s7 + $0x38] sm:$0xff]   ;;  %v3459_v44 = vld [vmem:[#allocation3] ss:$2 sm:$0xff]  ;;  %4458 = vmatprep.subr.bf16.mxu1 %v5021_v19 }
 0x283   : > { %v4130_v25 = vpop.f32.mrb[52].mxu1 }
 0x284   : > { %v4131_v0 = vpop.f32.mrb[53].mxu1  ;;  %v7197_v43 = vadd.f32 %v4217_v16, %v7062_v28  ;;  %v3475_v16 = vld [vmem:[#allocation3 + $0x1] ss:$2 sm:$0xff] }
 0x285   : > { %v7191_v18 = vadd.f32 %v4131_v0, %v4130_v25  ;;  %v4133_v59 = vpop.f32.mrb[54].mxu1  ;;  %v3461_v0 = vld [vmem:[#allocation3 + $0x10] ss:$2 sm:$0xff]  ;;  %4459 = vmatpush3.bf16.msra.mxu1 %v5022_v3 }
 0x286   : > { %v4134_v27 = vpop.f32.mrb[55].mxu1  ;;  %v4218_v51 = vpop.f32.mrb[84].mxu0 }
 0x287   : > { %v7199_v17 = vadd.f32 %v4134_v27, %v4133_v59  ;;  %v4219_v24 = vpop.f32.mrb[85].mxu0  ;;  %v3490_v27 = vadd.f32 %v3475_v16, %v3459_v44 }
 0x288   : > { %v4220_v62 = vadd.f32 %v4219_v24, %v4218_v51  ;;  %v4221_v45 = vpop.f32.mrb[86].mxu0  ;;  %v3491_v24 = vadd.f32 %v3477_v20, %v3461_v0 }
 0x289   : > { %v4222_v60 = vpop.f32.mrb[87].mxu0 }
 0x28a   : > { %v7205_v52 = vadd.f32 %v4220_v62, %v7068_v33  ;;  %v4223_v28 = vadd.f32 %v4222_v60, %v4221_v45  ;;  %v3498_v41 = vpack.c.bf16 %v3491_v24, %v3490_v27 }
 0x28b   : > { %v4136_v10 = vpop.f32.mrb[56].mxu1 }
 0x28c   : > { %v4137_v2 = vpop.f32.mrb[57].mxu1  ;;  %v7219_v33 = vadd.f32 %v4223_v28, %v7076_v53  ;;  %3673 = vmatprep.mubr.bf16.mxu1 %v3498_v41 }
 0x28d   : > { %v7213_v34 = vadd.f32 %v4137_v2, %v4136_v10  ;;  %v4139_v56 = vpop.f32.mrb[58].mxu1 }
 0x28e   : > { %v4140_v47 = vpop.f32.mrb[59].mxu1  ;;  %v4224_v11 = vpop.f32.mrb[88].mxu0 }
 0x28f   : > { %v7221_v55 = vadd.f32 %v4140_v47, %v4139_v56  ;;  %v4225_v49 = vpop.f32.mrb[89].mxu0 }
 0x290   : > { %v4226_v29 = vadd.f32 %v4225_v49, %v4224_v11  ;;  %v4227_v50 = vpop.f32.mrb[90].mxu0 }
 0x291   : > { %v4228_v40 = vpop.f32.mrb[91].mxu0 }
 0x292   : > { %v7227_v36 = vadd.f32 %v4226_v29, %v7090_v54  ;;  %v4229_v22 = vadd.f32 %v4228_v40, %v4227_v50 }
 0x293   : > { %v4142_v48 = vpop.f32.mrb[60].mxu1 }
 0x294   : > { %v4143_v53 = vpop.f32.mrb[61].mxu1  ;;  %v7238_v54 = vadd.f32 %v4229_v22, %v7101_v15 }
 0x295   : > { %v7235_v25 = vadd.f32 %v4143_v53, %v4142_v48  ;;  %v4145_v1 = vpop.f32.mrb[62].mxu1 }
 0x296   : > { %v4146_v59 = vpop.f32.mrb[63].mxu1  ;;  %v4230_v62 = vpop.f32.mrb[92].mxu0 }
 0x297   : > { %v7240_v51 = vadd.f32 %v4146_v59, %v4145_v1  ;;  %v4231_v45 = vpop.f32.mrb[93].mxu0 }
 0x298   : > { %v4232_v10 = vadd.f32 %v4231_v45, %v4230_v62  ;;  %v4233_v60 = vpop.f32.mrb[94].mxu0 }
 0x299   : > { %v4234_v28 = vpop.f32.mrb[95].mxu0 }
 0x29a   : > { %v7243_v13 = vadd.f32 %v4232_v10, %v7107_v61  ;;  %v4235_v15 = vadd.f32 %v4234_v28, %v4233_v60 }
 0x29b   : > { %v4248_v2 = vpop.f32.mrb[64].mxu1 }
 0x29c   : > { %v4249_v4 = vpop.f32.mrb[65].mxu1  ;;  %v7246_v47 = vadd.f32 %v4235_v15, %v7109_v6 }
 0x29d   : > { %v4250_v56 = vadd.f32 %v4249_v4, %v4248_v2  ;;  %v4251_v32 = vpop.f32.mrb[66].mxu1 }
 0x29e   : > { %v4252_v11 = vpop.f32.mrb[67].mxu1  ;;  %v4236_v50 = vpop.f32.mrb[96].mxu0 }
 0x29f   : > { %v7249_v49 = vadd.f32 %v4250_v56, %v7154_v58  ;;  %v4253_v29 = vadd.f32 %v4252_v11, %v4251_v32  ;;  %v4237_v48 = vpop.f32.mrb[97].mxu0 }
 0x2a0   : > { %v4238_v40 = vadd.f32 %v4237_v48, %v4236_v50  ;;  %v4239_v61 = vpop.f32.mrb[98].mxu0 }
 0x2a1   : > { %v7252_v42 = vadd.f32 %v4253_v29, %v7160_v7  ;;  %v4240_v22 = vpop.f32.mrb[99].mxu0 }
 0x2a2   : > { %v7255_v19 = vadd.f32 %v4238_v40, %v7121_v63  ;;  %v4241_v3 = vadd.f32 %v4240_v22, %v4239_v61 }
 0x2a3   : > { %v4254_v53 = vpop.f32.mrb[68].mxu1 }
 0x2a4   : > { %v4255_v6 = vpop.f32.mrb[69].mxu1  ;;  %v7258_v58 = vadd.f32 %v4241_v3, %v7123_v21 }
 0x2a5   : > { %v4256_v44 = vadd.f32 %v4255_v6, %v4254_v53  ;;  %v4257_v1 = vpop.f32.mrb[70].mxu1 }
 0x2a6   : > { %v4258_v0 = vpop.f32.mrb[71].mxu1  ;;  %v4242_v59 = vpop.f32.mrb[100].mxu0 }
 0x2a7   : > { %v7261_v16 = vadd.f32 %v4256_v44, %v7165_v37  ;;  %v4259_v7 = vadd.f32 %v4258_v0, %v4257_v1  ;;  %v4243_v27 = vpop.f32.mrb[101].mxu0 }
 0x2a8   : > { %v4244_v24 = vadd.f32 %v4243_v27, %v4242_v59  ;;  %v4245_v63 = vpop.f32.mrb[102].mxu0 }
 0x2a9   : > { %v7264_v20 = vadd.f32 %v4259_v7, %v7170_v31  ;;  %v4246_v45 = vpop.f32.mrb[103].mxu0 }
 0x2aa   : > { %v7267_v41 = vadd.f32 %v4244_v24, %v7132_v38  ;;  %v4247_v10 = vadd.f32 %v4246_v45, %v4245_v63 }
 0x2ab   : > { %v4260_v62 = vpop.f32.mrb[72].mxu1 }
 0x2ac   : > { %v4261_v21 = vpop.f32.mrb[73].mxu1  ;;  %v7270_v37 = vadd.f32 %v4247_v10, %v7137_v23 }
 0x2ad   : > { %v4262_v60 = vadd.f32 %v4261_v21, %v4260_v62  ;;  %v4263_v2 = vpop.f32.mrb[74].mxu1 }
 0x2ae   : > { %v4264_v28 = vpop.f32.mrb[75].mxu1 }
 0x2af   : > { %v7273_v15 = vadd.f32 %v4262_v60, %v7181_v57  ;;  %v4265_v31 = vadd.f32 %v4264_v28, %v4263_v2 }
 0x2b1   : > { %v7276_v4 = vadd.f32 %v4265_v31, %v7186_v5 }
 0x2b3   : > { %v4266_v56 = vpop.f32.mrb[76].mxu1 }
 0x2b4   : > { %v4267_v32 = vpop.f32.mrb[77].mxu1 }
 0x2b5   : > { %v4268_v11 = vadd.f32 %v4267_v32, %v4266_v56  ;;  %v4269_v38 = vpop.f32.mrb[78].mxu1 }
 0x2b6   : > { %v4270_v29 = vpop.f32.mrb[79].mxu1 }
 0x2b7   : > { %v7279_v50 = vadd.f32 %v4268_v11, %v7191_v18  ;;  %v4271_v48 = vadd.f32 %v4270_v29, %v4269_v38 }
 0x2b9   : > { %v7282_v23 = vadd.f32 %v4271_v48, %v7199_v17 }
 0x2bb   : > { %v4272_v40 = vpop.f32.mrb[80].mxu1 }
 0x2bc   : > { %v4273_v61 = vpop.f32.mrb[81].mxu1 }
 0x2bd   : > { %v4274_v57 = vadd.f32 %v4273_v61, %v4272_v40  ;;  %v4275_v53 = vpop.f32.mrb[82].mxu1 }
 0x2be   : > { %v4276_v22 = vpop.f32.mrb[83].mxu1 }
 0x2bf   : > { %v7285_v5 = vadd.f32 %v4274_v57, %v7213_v34  ;;  %v4277_v3 = vadd.f32 %v4276_v22, %v4275_v53 }
 0x2c1   : > { %v7288_v6 = vadd.f32 %v4277_v3, %v7221_v55 }
 0x2c3   : > { %v4278_v44 = vpop.f32.mrb[84].mxu1 }
 0x2c4   : > { %v4279_v1 = vpop.f32.mrb[85].mxu1 }
 0x2c5   : > { %v4280_v18 = vadd.f32 %v4279_v1, %v4278_v44  ;;  %v4281_v0 = vpop.f32.mrb[86].mxu1 }
 0x2c6   : > { %v4282_v7 = vpop.f32.mrb[87].mxu1 }
 0x2c7   : > { %v7291_v17 = vadd.f32 %v4280_v18, %v7235_v25  ;;  %v4283_v59 = vadd.f32 %v4282_v7, %v4281_v0 }
 0x2c9   : > { %v7294_v27 = vadd.f32 %v4283_v59, %v7240_v51 }
 0x2cb   : > { %v4324_v24 = vpop.f32.mrb[88].mxu1 }
 0x2cc   : > { %v4325_v63 = vpop.f32.mrb[89].mxu1 }
 0x2cd   : > { %v4326_v34 = vadd.f32 %v4325_v63, %v4324_v24  ;;  %v4327_v62 = vpop.f32.mrb[90].mxu1 }
 0x2ce   : > { %v4328_v45 = vpop.f32.mrb[91].mxu1 }
 0x2cf   : > { %v4329_v10 = vadd.f32 %v4328_v45, %v4327_v62  ;;  %v4696_v55 = vadd.f32 %v7130_v9, %v4326_v34 }
 0x2d1   : > { %v4702_v21 = vadd.f32 %v7135_v12, %v4329_v10 }
 0x2d3   : > { %v4330_v60 = vpop.f32.mrb[92].mxu1 }
 0x2d4   : > { %v4331_v2 = vpop.f32.mrb[93].mxu1 }
 0x2d5   : > { %v4332_v28 = vadd.f32 %v4331_v2, %v4330_v60  ;;  %v4333_v31 = vpop.f32.mrb[94].mxu1 }
 0x2d6   : > { %v4334_v25 = vpop.f32.mrb[95].mxu1 }
 0x2d7   : > { %v4335_v56 = vadd.f32 %v4334_v25, %v4333_v31  ;;  %v4693_v32 = vadd.f32 %v7152_v30, %v4332_v28 }
 0x2d9   : > { %v4699_v51 = vadd.f32 %v7157_v26, %v4335_v56 }
 0x2db   : > { %v4336_v11 = vpop.f32.mrb[96].mxu1 }
 0x2dc   : > { %v4337_v38 = vpop.f32.mrb[97].mxu1 }
 0x2dd   : > { %v4338_v29 = vadd.f32 %v4337_v38, %v4336_v11  ;;  %v4339_v48 = vpop.f32.mrb[98].mxu1 }
 0x2de   : > { %v4340_v40 = vpop.f32.mrb[99].mxu1 }
 0x2df   : > { %v4341_v61 = vadd.f32 %v4340_v40, %v4339_v48  ;;  %v4708_v9 = vadd.f32 %v7163_v46, %v4338_v29 }
 0x2e1   : > { %v4714_v12 = vadd.f32 %v7168_v39, %v4341_v61  ;;  %v7308_v39 = vld [vmem:[%s7451_s4] ss:$0 sm:$0xff] }
 0x2e3   : > { %v4342_v57 = vpop.f32.mrb[100].mxu1 }
 0x2e4   : > { %v4343_v53 = vpop.f32.mrb[101].mxu1 }
 0x2e5   : > { %v4344_v22 = vadd.f32 %v4343_v53, %v4342_v57  ;;  %v4345_v3 = vpop.f32.mrb[102].mxu1 }
 0x2e6   : > { %v4346_v44 = vpop.f32.mrb[103].mxu1 }
 0x2e7   : > { %v4347_v1 = vadd.f32 %v4346_v44, %v4345_v3  ;;  %v4705_v30 = vadd.f32 %v7173_v14, %v4344_v22 }
 0x2e9   : > { %v4711_v26 = vadd.f32 %v7184_v35, %v4347_v1 }
 0x2eb   : > { %v4348_v18 = vpop.f32.mrb[104].mxu1 }
 0x2ec   : > { %v4349_v0 = vpop.f32.mrb[105].mxu1 }
 0x2ed   : > { %v4350_v7 = vadd.f32 %v4349_v0, %v4348_v18  ;;  %v4351_v59 = vpop.f32.mrb[106].mxu1 }
 0x2ee   : > { %v4352_v24 = vpop.f32.mrb[107].mxu1  ;;  %v4646_v34 = vpop.f32.mrb[32].mxu0 }
 0x2ef   : > { %v4353_v63 = vadd.f32 %v4352_v24, %v4351_v59  ;;  %v4720_v46 = vadd.f32 %v7189_v8, %v4350_v7  ;;  %v4694_v62 = vadd.f32 %v4693_v32, %v4646_v34  ;;  %v3094_v45 = vpop.f32.mrb[33].mxu0 }
 0x2f0   : > { %v4697_v35 = vadd.f32 %v4696_v55, %v3094_v45  ;;  %v4647_v10 = vpop.f32.mrb[34].mxu0 }
 0x2f1   : > { %v7311_v14 = vadd.f32 %v7197_v43, %v4353_v63  ;;  %v3262_v60 = vadd.f32 %v4694_v62, %v7308_v39  ;;  %v4700_v28 = vadd.f32 %v4699_v51, %v4647_v10  ;;  %v3097_v31 = vpop.f32.mrb[35].mxu0 }
 0x2f2   : > { %v3260_v8 = vadd.f32 %v4697_v35, %v7308_v39  ;;  %v4703_v56 = vadd.f32 %v4702_v21, %v3097_v31 }
 0x2f3   : > { %v4354_v2 = vpop.f32.mrb[108].mxu1  ;;  %v3294_v11 = vmax.f32 %v3262_v60, 0.0  ;;  %v3263_v38 = vadd.f32 %v4700_v28, %v7308_v39 }
 0x2f4   : > { %v4355_v25 = vpop.f32.mrb[109].mxu1  ;;  %v3292_v48 = vmax.f32 %v3260_v8, 0.0  ;;  %v3261_v43 = vadd.f32 %v4703_v56, %v7308_v39 }
 0x2f5   : > { %v4356_v29 = vadd.f32 %v4355_v25, %v4354_v2  ;;  %v4357_v32 = vpop.f32.mrb[110].mxu1  ;;  %v3295_v55 = vmax.f32 %v3263_v38, 0.0 }
 0x2f6   : > { %v4358_v40 = vpop.f32.mrb[111].mxu1  ;;  %v3324_v53 = vadd.f32 %v3294_v11, %v3292_v48  ;;  %v3293_v51 = vmax.f32 %v3261_v43, 0.0  ;;  %v4650_v22 = vpop.f32.mrb[36].mxu0 }
 0x2f7   : > { %v4359_v61 = vadd.f32 %v4358_v40, %v4357_v32  ;;  %v4717_v57 = vadd.f32 %v7205_v52, %v4356_v29  ;;  %v4706_v3 = vadd.f32 %v4705_v30, %v4650_v22  ;;  %v3110_v44 = vpop.f32.mrb[37].mxu0 }
 0x2f8   : > { %3340 = vst [vmem:[#allocation2] sm:$0xff] %v3324_v53  ;;  %v3325_v1 = vadd.f32 %v3295_v55, %v3293_v51  ;;  %v4709_v18 = vadd.f32 %v4708_v9, %v3110_v44  ;;  %v4651_v0 = vpop.f32.mrb[38].mxu0  ;;  %v3465_v44 = vld [vmem:[#allocation3 + $0x30] ss:$2 sm:$0xff] }
 0x2f9   : > { %v4723_v21 = vadd.f32 %v7219_v33, %v4359_v61  ;;  %v3266_v7 = vadd.f32 %v4706_v3, %v7308_v39  ;;  %v4712_v24 = vadd.f32 %v4711_v26, %v4651_v0  ;;  %v3113_v63 = vpop.f32.mrb[39].mxu0  ;;  %v3463_v3 = vld [vmem:[#allocation3 + $0x20] ss:$2 sm:$0xff]  ;;  %v3479_v0 = vld [vmem:[#allocation3 + $0x21] ss:$2 sm:$0xff] }
 0x2fa   : > { %3341 = vst [vmem:[#allocation2 + $0x8] sm:$0xff] %v3325_v1  ;;  %v3264_v34 = vadd.f32 %v4709_v18, %v7308_v39  ;;  %v4715_v62 = vadd.f32 %v4714_v12, %v3113_v63 }
 0x2fb   : > { %v4360_v59 = vpop.f32.mrb[112].mxu1  ;;  %v3298_v45 = vmax.f32 %v3266_v7, 0.0  ;;  %v3267_v30 = vadd.f32 %v4712_v24, %v7308_v39 }
 0x2fc   : > { %v4361_v52 = vpop.f32.mrb[113].mxu1  ;;  %v3296_v33 = vmax.f32 %v3264_v34, 0.0  ;;  %v3265_v60 = vadd.f32 %v4715_v62, %v7308_v39 }
 0x2fd   : > { %v4362_v35 = vadd.f32 %v4361_v52, %v4360_v59  ;;  %v4363_v10 = vpop.f32.mrb[114].mxu1  ;;  %v3299_v2 = vmax.f32 %v3267_v30, 0.0 }
 0x2fe   : > { %v4364_v9 = vpop.f32.mrb[115].mxu1  ;;  %v3326_v26 = vadd.f32 %v3298_v45, %v3296_v33  ;;  %v3297_v8 = vmax.f32 %v3265_v60, 0.0  ;;  %v4654_v25 = vpop.f32.mrb[40].mxu0 }
 0x2ff   : > { %v4365_v28 = vadd.f32 %v4364_v9, %v4363_v10  ;;  %v4732_v31 = vadd.f32 %v7227_v36, %v4362_v35  ;;  %v4718_v56 = vadd.f32 %v4717_v57, %v4654_v25  ;;  %v3126_v11 = vpop.f32.mrb[41].mxu0  ;;  %v3492_v10 = vadd.f32 %v3479_v0, %v3463_v3 }
 0x300   : > { %3342 = vst [vmem:[#allocation2 + $0x10] sm:$0xff] %v3326_v26  ;;  %v3327_v38 = vadd.f32 %v3299_v2, %v3297_v8  ;;  %v4721_v29 = vadd.f32 %v4720_v46, %v3126_v11  ;;  %v4655_v32 = vpop.f32.mrb[42].mxu0 }
 0x301   : > { %v4738_v12 = vadd.f32 %v7238_v54, %v4365_v28  ;;  %v3270_v48 = vadd.f32 %v4718_v56, %v7308_v39  ;;  %v4724_v40 = vadd.f32 %v4723_v21, %v4655_v32  ;;  %v3129_v55 = vpop.f32.mrb[43].mxu0  ;;  %v3481_v21 = vld [vmem:[#allocation3 + $0x31] ss:$2 sm:$0xff]  ;;  %v3356_v30 = vld [vmem:[#allocation2] ss:$2 sm:$0xff] }
 0x302   : > { %3343 = vst [vmem:[#allocation2 + $0x18] sm:$0xff] %v3327_v38  ;;  %v3268_v61 = vadd.f32 %v4721_v29, %v7308_v39  ;;  %v4727_v53 = vadd.f32 %v7311_v14, %v3129_v55  ;;  %v3372_v35 = vld [vmem:[#allocation2 + $0x1] ss:$2 sm:$0xff]  ;;  %v3493_v33 = vadd.f32 %v3481_v21, %v3465_v44 }
 0x303   : > { %v4366_v43 = vpop.f32.mrb[116].mxu1  ;;  %v3302_v51 = vmax.f32 %v3270_v48, 0.0  ;;  %v3271_v57 = vadd.f32 %v4724_v40, %v7308_v39  ;;  %v3387_v29 = vadd.f32 %v3372_v35, %v3356_v30 }
 0x304   : > { %v4367_v36 = vpop.f32.mrb[117].mxu1  ;;  %v3300_v46 = vmax.f32 %v3268_v61, 0.0  ;;  %v3269_v1 = vadd.f32 %v4727_v53, %v7308_v39  ;;  %v3499_v55 = vpack.c.bf16 %v3493_v33, %v3492_v10 }
 0x305   : > { %v4368_v22 = vadd.f32 %v4367_v36, %v4366_v43  ;;  %v4369_v54 = vpop.f32.mrb[118].mxu1  ;;  %v3303_v7 = vmax.f32 %v3271_v57, 0.0 }
 0x306   : > { %v4370_v18 = vpop.f32.mrb[119].mxu1  ;;  %v3328_v63 = vadd.f32 %v3302_v51, %v3300_v46  ;;  %v3301_v34 = vmax.f32 %v3269_v1, 0.0  ;;  %v4658_v14 = vpop.f32.mrb[44].mxu0 }
 0x307   : > { %v4371_v59 = vadd.f32 %v4370_v18, %v4369_v54  ;;  %v4729_v24 = vadd.f32 %v7243_v13, %v4368_v22  ;;  %v3142_v62 = vpop.f32.mrb[45].mxu0 }
 0x308   : > { %3344 = vst [vmem:[#allocation2 + $0x20] sm:$0xff] %v3328_v63  ;;  %v3329_v60 = vadd.f32 %v3303_v7, %v3301_v34  ;;  %v4733_v9 = vadd.f32 %v4732_v31, %v3142_v62  ;;  %v4659_v2 = vpop.f32.mrb[46].mxu0  ;;  %v3467_v34 = vld [vmem:[#allocation3 + $0x40] ss:$2 sm:$0xff]  ;;  %v3483_v62 = vld [vmem:[#allocation3 + $0x41] ss:$2 sm:$0xff] }
 0x309   : > { %v4730_v52 = vadd.f32 %v4729_v24, %v4658_v14  ;;  %v4735_v45 = vadd.f32 %v7246_v47, %v4371_v59  ;;  %v3145_v13 = vpop.f32.mrb[47].mxu0  ;;  %v3358_v25 = vld [vmem:[#allocation2 + $0x10] ss:$2 sm:$0xff]  ;;  %v3374_v56 = vld [vmem:[#allocation2 + $0x11] ss:$2 sm:$0xff]  ;;  %v3494_v33 = vadd.f32 %v3483_v62, %v3467_v34 }
 0x30a   : > { %3345 = vst [vmem:[#allocation2 + $0x28] sm:$0xff] %v3329_v60  ;;  %v3272_v11 = vadd.f32 %v4733_v9, %v7308_v39  ;;  %v4739_v47 = vadd.f32 %v4738_v12, %v3145_v13  ;;  %v3388_v32 = vadd.f32 %v3374_v56, %v3358_v25  ;;  %v3469_v14 = vld [vmem:[#allocation3 + $0x50] ss:$2 sm:$0xff] }
 0x30b   : > { %v3274_v28 = vadd.f32 %v4730_v52, %v7308_v39  ;;  %v4372_v26 = vpop.f32.mrb[120].mxu1  ;;  %v4736_v8 = vadd.f32 %v4735_v45, %v4659_v2  ;;  %v3485_v45 = vld [vmem:[#allocation3 + $0x51] ss:$2 sm:$0xff] }
 0x30c   : > { %v4373_v38 = vpop.f32.mrb[121].mxu1  ;;  %v3304_v61 = vmax.f32 %v3272_v11, 0.0  ;;  %v3273_v36 = vadd.f32 %v4739_v47, %v7308_v39  ;;  %v3502_v51 = vpack.c.bf16 %v3388_v32, %v3387_v29  ;;  %v3495_v60 = vadd.f32 %v3485_v45, %v3469_v14 }
 0x30d   : > { %v3306_v48 = vmax.f32 %v3274_v28, 0.0  ;;  %v3275_v43 = vadd.f32 %v4736_v8, %v7308_v39  ;;  %v4374_v40 = vadd.f32 %v4373_v38, %v4372_v26  ;;  %v4375_v31 = vpop.f32.mrb[122].mxu1 }
 0x30e   : > { %v4376_v53 = vpop.f32.mrb[123].mxu1  ;;  %v3305_v44 = vmax.f32 %v3273_v36, 0.0  ;;  %v4662_v12 = vpop.f32.mrb[48].mxu0  ;;  %3674 = vmatmul.mubr.bf16.vlgmr.msra.gmra.mrb[152].mxu1 %v3502_v51 }
 0x30f   : > { %v3307_v57 = vmax.f32 %v3275_v43, 0.0  ;;  %v4377_v22 = vadd.f32 %v4376_v53, %v4375_v31  ;;  %v4744_v54 = vadd.f32 %v7255_v19, %v4374_v40  ;;  %v3330_v3 = vadd.f32 %v3306_v48, %v3304_v61  ;;  %v3158_v46 = vpop.f32.mrb[49].mxu0  ;;  %3681 = vmatprep.mubr.bf16.mxu1 %v3499_v55 }
 0x310   : > { %v4663_v21 = vpop.f32.mrb[50].mxu0  ;;  %v3500_v31 = vpack.c.bf16 %v3495_v60, %v3494_v33 }
 0x311   : > { %v4750_v1 = vadd.f32 %v7258_v58, %v4377_v22  ;;  %3346 = vst [vmem:[#allocation2 + $0x30] sm:$0xff] %v3330_v3  ;;  %v3331_v18 = vadd.f32 %v3307_v57, %v3305_v44  ;;  %v4745_v0 = vadd.f32 %v4744_v54, %v3158_v46  ;;  %v3161_v59 = vpop.f32.mrb[51].mxu0  ;;  %v3360_v8 = vld [vmem:[#allocation2 + $0x20] ss:$2 sm:$0xff]  ;;  %v3376_v13 = vld [vmem:[#allocation2 + $0x21] ss:$2 sm:$0xff] }
 0x312   : > { %v3389_v43 = vadd.f32 %v3376_v13, %v3360_v8 }
 0x313   : > { %v4378_v7 = vpop.f32.mrb[124].mxu1  ;;  %3347 = vst [vmem:[#allocation2 + $0x38] sm:$0xff] %v3331_v18  ;;  %v4751_v63 = vadd.f32 %v4750_v1, %v3161_v59  ;;  %v3276_v9 = vadd.f32 %v4745_v0, %v7308_v39 }
 0x314   : > { %v4379_v24 = vpop.f32.mrb[125].mxu1 }
 0x315   : > { %v4380_v19 = vadd.f32 %v4379_v24, %v4378_v7  ;;  %v4381_v52 = vpop.f32.mrb[126].mxu1  ;;  %v3277_v25 = vadd.f32 %v4751_v63, %v7308_v39  ;;  %v3308_v55 = vmax.f32 %v3276_v9, 0.0 }
 0x316   : > { %v4382_v30 = vpop.f32.mrb[127].mxu1  ;;  %v4666_v10 = vpop.f32.mrb[52].mxu0 }
 0x317   : > { %v4741_v35 = vadd.f32 %v7267_v41, %v4380_v19  ;;  %v4383_v58 = vadd.f32 %v4382_v30, %v4381_v52  ;;  %v3174_v26 = vpop.f32.mrb[53].mxu0  ;;  %v3309_v51 = vmax.f32 %v3277_v25, 0.0 }
 0x318   : > { %v4667_v56 = vpop.f32.mrb[54].mxu0 }
 0x319   : > { %v4742_v2 = vadd.f32 %v4741_v35, %v4662_v12  ;;  %v4747_v28 = vadd.f32 %v7270_v37, %v4383_v58  ;;  %v3177_v41 = vpop.f32.mrb[55].mxu0 }
 0x31a   : > { %v3362_v29 = vld [vmem:[#allocation2 + $0x30] ss:$2 sm:$0xff]  ;;  %v3378_v32 = vld [vmem:[#allocation2 + $0x31] ss:$2 sm:$0xff] }
 0x31b   : > { %v3278_v11 = vadd.f32 %v4742_v2, %v7308_v39  ;;  %v4748_v38 = vadd.f32 %v4747_v28, %v4663_v21  ;;  %v4384_v47 = vpop.f32.mrb[128].mxu1  ;;  %v3390_v40 = vadd.f32 %v3378_v32, %v3362_v29 }
 0x31c   : > { %v4385_v48 = vpop.f32.mrb[129].mxu1 }
 0x31d   : > { %v3310_v61 = vmax.f32 %v3278_v11, 0.0  ;;  %v3279_v37 = vadd.f32 %v4748_v38, %v7308_v39  ;;  %v4386_v36 = vadd.f32 %v4385_v48, %v4384_v47  ;;  %v4387_v53 = vpop.f32.mrb[130].mxu1  ;;  %v3503_v22 = vpack.c.bf16 %v3390_v40, %v3389_v43 }
 0x31e   : > { %v4388_v57 = vpop.f32.mrb[131].mxu1  ;;  %v7345_v46 = vpop.f32.mrb[56].mxu0 }
 0x31f   : > { %v3332_v54 = vadd.f32 %v3310_v61, %v3308_v55  ;;  %v3311_v3 = vmax.f32 %v3279_v37, 0.0  ;;  %v4756_v44 = vadd.f32 %v7249_v49, %v4386_v36  ;;  %v4389_v12 = vadd.f32 %v4388_v57, %v4387_v53  ;;  %3682 = vmatmul.mubr.bf16.gmra.mrb[156].mxu1 %v3503_v22  ;;  %v3190_v21 = vpop.f32.mrb[57].mxu0  ;;  %v3471_v61 = vld [vmem:[#allocation3 + $0x60] ss:$2 sm:$0xff]  ;;  %v3473_v37 = vld [vmem:[#allocation3 + $0x70] ss:$2 sm:$0xff] }
 0x320   : > { %3689 = vmatprep.mubr.bf16.mxu1 %v3500_v31  ;;  %v4671_v7 = vpop.f32.mrb[58].mxu0  ;;  %v3489_v57 = vld [vmem:[#allocation3 + $0x71] ss:$2 sm:$0xff] }
 0x321   : > { %3348 = vst [vmem:[#allocation2 + $0x40] sm:$0xff] %v3332_v54  ;;  %v3333_v1 = vadd.f32 %v3311_v3, %v3309_v51  ;;  %v4757_v18 = vadd.f32 %v4756_v44, %v3174_v26  ;;  %v4762_v0 = vadd.f32 %v7252_v42, %v4389_v12  ;;  %v3193_v63 = vpop.f32.mrb[59].mxu0  ;;  %v3487_v51 = vld [vmem:[#allocation3 + $0x61] ss:$2 sm:$0xff] }
 0x323   : > { %3349 = vst [vmem:[#allocation2 + $0x48] sm:$0xff] %v3333_v1  ;;  %v4763_v59 = vadd.f32 %v4762_v0, %v3177_v41  ;;  %v4390_v24 = vpop.f32.mrb[132].mxu1  ;;  %v3280_v30 = vadd.f32 %v4757_v18, %v7308_v39  ;;  %v3496_v1 = vadd.f32 %v3487_v51, %v3471_v61 }
 0x324   : > { %v4391_v34 = vpop.f32.mrb[133].mxu1 }
 0x325   : > { %v4392_v14 = vadd.f32 %v4391_v34, %v4390_v24  ;;  %v4393_v19 = vpop.f32.mrb[134].mxu1  ;;  %v3281_v33 = vadd.f32 %v4763_v59, %v7308_v39  ;;  %v3312_v8 = vmax.f32 %v3280_v30, 0.0 }
 0x326   : > { %v4394_v49 = vpop.f32.mrb[135].mxu1  ;;  %v7349_v45 = vpop.f32.mrb[60].mxu0 }
 0x327   : > { %v4753_v52 = vadd.f32 %v7261_v16, %v4392_v14  ;;  %v4395_v62 = vadd.f32 %v4394_v49, %v4393_v19  ;;  %v7353_v58 = vpop.f32.mrb[61].mxu0 }
 0x328   : > { %v7356_v60 = vpop.f32.mrb[62].mxu0 }
 0x329   : > { %v4754_v35 = vadd.f32 %v4753_v52, %v4666_v10  ;;  %v4759_v42 = vadd.f32 %v7264_v20, %v4395_v62  ;;  %v7359_v26 = vpop.f32.mrb[63].mxu0  ;;  %v3313_v20 = vmax.f32 %v3281_v33, 0.0 }
 0x32a   : > { %v3364_v44 = vld [vmem:[#allocation2 + $0x40] ss:$2 sm:$0xff]  ;;  %v3380_v12 = vld [vmem:[#allocation2 + $0x41] ss:$2 sm:$0xff] }
 0x32b   : > { %v3282_v9 = vadd.f32 %v4754_v35, %v7308_v39  ;;  %v4760_v2 = vadd.f32 %v4759_v42, %v4667_v56  ;;  %v4396_v28 = vpop.f32.mrb[136].mxu1 }
 0x32c   : > { %v4397_v16 = vpop.f32.mrb[137].mxu1 }
 0x32d   : > { %v3314_v13 = vmax.f32 %v3282_v9, 0.0  ;;  %v3283_v25 = vadd.f32 %v4760_v2, %v7308_v39  ;;  %v4398_v10 = vadd.f32 %v4397_v16, %v4396_v28  ;;  %v4399_v11 = vpop.f32.mrb[138].mxu1 }
 0x32e   : > { %v4400_v38 = vpop.f32.mrb[139].mxu1 }
 0x32f   : > { %v3334_v47 = vadd.f32 %v3314_v13, %v3312_v8  ;;  %v3315_v41 = vmax.f32 %v3283_v25, 0.0  ;;  %v4768_v29 = vadd.f32 %v7273_v15, %v4398_v10  ;;  %v4401_v32 = vadd.f32 %v4400_v38, %v4399_v11 }
 0x331   : > { %3350 = vst [vmem:[#allocation2 + $0x50] sm:$0xff] %v3334_v47  ;;  %v3335_v48 = vadd.f32 %v3315_v41, %v3313_v20  ;;  %v4769_v56 = vadd.f32 %v4768_v29, %v3190_v21  ;;  %v4774_v43 = vadd.f32 %v7276_v4, %v4401_v32  ;;  %v3497_v4 = vadd.f32 %v3489_v57, %v3473_v37 }
 0x333   : > { %3351 = vst [vmem:[#allocation2 + $0x58] sm:$0xff] %v3335_v48  ;;  %v4775_v40 = vadd.f32 %v4774_v43, %v3193_v63  ;;  %v4402_v31 = vpop.f32.mrb[140].mxu1  ;;  %v3284_v3 = vadd.f32 %v4769_v56, %v7308_v39  ;;  %v3501_v62 = vpack.c.bf16 %v3497_v4, %v3496_v1 }
 0x334   : > { %v4403_v55 = vpop.f32.mrb[141].mxu1 }
 0x335   : > { %v4404_v36 = vadd.f32 %v4403_v55, %v4402_v31  ;;  %v4405_v53 = vpop.f32.mrb[142].mxu1  ;;  %v3285_v21 = vadd.f32 %v4775_v40, %v7308_v39  ;;  %v3316_v49 = vmax.f32 %v3284_v3, 0.0 }
 0x336   : > { %v4406_v22 = vpop.f32.mrb[143].mxu1 }
 0x337   : > { %v4765_v54 = vadd.f32 %v7279_v50, %v4404_v36  ;;  %v4407_v15 = vadd.f32 %v4406_v22, %v4405_v53  ;;  %v3391_v50 = vadd.f32 %v3380_v12, %v3364_v44 }
 0x339   : > { %v4766_v18 = vadd.f32 %v4765_v54, %v7345_v46  ;;  %v4771_v0 = vadd.f32 %v7282_v23, %v4407_v15  ;;  %v3317_v23 = vmax.f32 %v3285_v21, 0.0 }
 0x33a   : > { %v3366_v59 = vld [vmem:[#allocation2 + $0x50] ss:$2 sm:$0xff]  ;;  %v3382_v24 = vld [vmem:[#allocation2 + $0x51] ss:$2 sm:$0xff] }
 0x33b   : > { %v3286_v63 = vadd.f32 %v4766_v18, %v7308_v39  ;;  %v4772_v34 = vadd.f32 %v4771_v0, %v4671_v7  ;;  %v4408_v14 = vpop.f32.mrb[144].mxu1  ;;  %v3392_v19 = vadd.f32 %v3382_v24, %v3366_v59 }
 0x33c   : > { %v4409_v52 = vpop.f32.mrb[145].mxu1 }
 0x33d   : > { %v3318_v30 = vmax.f32 %v3286_v63, 0.0  ;;  %v3287_v35 = vadd.f32 %v4772_v34, %v7308_v39  ;;  %v4410_v42 = vadd.f32 %v4409_v52, %v4408_v14  ;;  %v4411_v46 = vpop.f32.mrb[146].mxu1  ;;  %v3504_v33 = vpack.c.bf16 %v3392_v19, %v3391_v50 }
 0x33e   : > { %v4412_v9 = vpop.f32.mrb[147].mxu1 }
 0x33f   : > { %v3336_v2 = vadd.f32 %v3318_v30, %v3316_v49  ;;  %v3319_v28 = vmax.f32 %v3287_v35, 0.0  ;;  %v4780_v16 = vadd.f32 %v7285_v5, %v4410_v42  ;;  %v4413_v8 = vadd.f32 %v4412_v9, %v4411_v46  ;;  %3690 = vmatmul.mubr.bf16.gmra.mrb[160].mxu1 %v3504_v33 }
 0x340   : > { %3697 = vmatprep.mubr.bf16.mxu1 %v3501_v62 }
 0x341   : > { %3352 = vst [vmem:[#allocation2 + $0x60] sm:$0xff] %v3336_v2  ;;  %v3337_v7 = vadd.f32 %v3319_v28, %v3317_v23  ;;  %v4781_v13 = vadd.f32 %v4780_v16, %v7353_v58  ;;  %v4786_v25 = vadd.f32 %v7288_v6, %v4413_v8 }
 0x343   : > { %3353 = vst [vmem:[#allocation2 + $0x68] sm:$0xff] %v3337_v7  ;;  %v4787_v10 = vadd.f32 %v4786_v25, %v7359_v26  ;;  %v4414_v11 = vpop.f32.mrb[148].mxu1  ;;  %v3288_v32 = vadd.f32 %v4781_v13, %v7308_v39 }
 0x344   : > { %v4415_v20 = vpop.f32.mrb[149].mxu1 }
 0x345   : > { %v4416_v38 = vadd.f32 %v4415_v20, %v4414_v11  ;;  %v4417_v47 = vpop.f32.mrb[150].mxu1  ;;  %v3289_v58 = vadd.f32 %v4787_v10, %v7308_v39  ;;  %v3320_v43 = vmax.f32 %v3288_v32, 0.0 }
 0x346   : > { %v4418_v41 = vpop.f32.mrb[151].mxu1 }
 0x347   : > { %v4777_v29 = vadd.f32 %v7291_v17, %v4416_v38  ;;  %v4419_v5 = vadd.f32 %v4418_v41, %v4417_v47  ;;  %v3321_v55 = vmax.f32 %v3289_v58, 0.0 }
 0x349   : > { %v4778_v48 = vadd.f32 %v4777_v29, %v7349_v45  ;;  %v4783_v56 = vadd.f32 %v7294_v27, %v4419_v5 }
 0x34a   : > { %v3368_v45 = vld [vmem:[#allocation2 + $0x60] ss:$2 sm:$0xff]  ;;  %v3384_v36 = vld [vmem:[#allocation2 + $0x61] ss:$2 sm:$0xff] }
 0x34b   : > { %v3290_v6 = vadd.f32 %v4778_v48, %v7308_v39  ;;  %v4784_v26 = vadd.f32 %v4783_v56, %v7356_v60  ;;  %v3393_v51 = vadd.f32 %v3384_v36, %v3368_v45 }
 0x34d   : > { %v3322_v40 = vmax.f32 %v3290_v6, 0.0  ;;  %v3291_v31 = vadd.f32 %v4784_v26, %v7308_v39  ;;  %v3949_v39 = vld [vmem:[%s7455_s8] ss:$0 sm:$0xff] }
 0x34f   : > { %v3338_v61 = vadd.f32 %v3322_v40, %v3320_v43  ;;  %v3323_v17 = vmax.f32 %v3291_v31, 0.0 }
 0x351   : > { %3354 = vst [vmem:[#allocation2 + $0x70] sm:$0xff] %v3338_v61  ;;  %v3339_v37 = vadd.f32 %v3323_v17, %v3321_v55 }
 0x353   : > { %3355 = vst [vmem:[#allocation2 + $0x78] sm:$0xff] %v3339_v37 }
 0x35a   : > { %v3370_v27 = vld [vmem:[#allocation2 + $0x70] ss:$2 sm:$0xff]  ;;  %v3386_v53 = vld [vmem:[#allocation2 + $0x71] ss:$2 sm:$0xff] }
 0x35b   : > { %v3394_v57 = vadd.f32 %v3386_v53, %v3370_v27 }
 0x35d   : > { %v3505_v22 = vpack.c.bf16 %v3394_v57, %v3393_v51 }
 0x35f   : > { %3698 = vmatmul.mubr.bf16.gmra.mrb[164].mxu1 %v3505_v22 }
 0x3e1   : > { %v4460_v60 = vpop.f32.mrb[152].mxu1 }
 0x3e2   : > { %v4461_v54 = vpop.f32.mrb[153].mxu1 }
 0x3e3   : > { %v4462_v15 = vadd.f32 %v4461_v54, %v4460_v60  ;;  %v4463_v3 = vpop.f32.mrb[154].mxu1 }
 0x3e4   : > { %v4464_v44 = vpop.f32.mrb[155].mxu1 }
 0x3e5   : > { %v3676_v12 = vadd.f32 %v4462_v15, %v3949_v39  ;;  %v4465_v1 = vadd.f32 %v4464_v44, %v4463_v3 }
 0x3e7   : > { %v3679_v4 = vadd.f32 %v4465_v1, %v3949_v39  ;;  %v3706_v18 = vmax.f32 %v3676_v12, 0.0 }
 0x3e9   : > { %v3707_v0 = vmax.f32 %v3679_v4, 0.0 }
 0x3eb   : > { %v3992_v21 = vpack.c.bf16 %v3707_v0, %v3706_v18 }
 0x3ed   : > { %3993 = vst [vmem:[%s7389_s14] sm:$0xff] %v3992_v21  }
 0x3f2   : > { %v4466_v59 = vpop.f32.mrb[156].mxu1 }
 0x3f3   : > { %v4467_v24 = vpop.f32.mrb[157].mxu1 }
 0x3f4   : > { %v4468_v63 = vadd.f32 %v4467_v24, %v4466_v59  ;;  %v4469_v34 = vpop.f32.mrb[158].mxu1 }
 0x3f5   : > { %v4470_v14 = vpop.f32.mrb[159].mxu1 }
 0x3f6   : > { %v3684_v50 = vadd.f32 %v4468_v63, %v3949_v39  ;;  %v4471_v19 = vadd.f32 %v4470_v14, %v4469_v34 }
 0x3f8   : > { %v3687_v49 = vadd.f32 %v4471_v19, %v3949_v39  ;;  %v3708_v52 = vmax.f32 %v3684_v50, 0.0 }
 0x3fa   : > { %v3709_v62 = vmax.f32 %v3687_v49, 0.0 }
 0x3fc   : > { %v3997_v30 = vpack.c.bf16 %v3709_v62, %v3708_v52 }
 0x3fe   : > { %4009 = vst [vmem:[%s7389_s14 + $0x8] sm:$0xff] %v3997_v30  }
 0x412   : > { %v4472_v35 = vpop.f32.mrb[160].mxu1 }
 0x413   : > { %v4473_v42 = vpop.f32.mrb[161].mxu1 }
 0x414   : > { %v4474_v46 = vadd.f32 %v4473_v42, %v4472_v35  ;;  %v4475_v33 = vpop.f32.mrb[162].mxu1 }
 0x415   : > { %v4476_v23 = vpop.f32.mrb[163].mxu1 }
 0x416   : > { %v3692_v9 = vadd.f32 %v4474_v46, %v3949_v39  ;;  %v4477_v2 = vadd.f32 %v4476_v23, %v4475_v33 }
 0x418   : > { %v3695_v28 = vadd.f32 %v4477_v2, %v3949_v39  ;;  %v3710_v16 = vmax.f32 %v3692_v9, 0.0 }
 0x41a   : > { %v3711_v8 = vmax.f32 %v3695_v28, 0.0 }
 0x41c   : > { %v4002_v7 = vpack.c.bf16 %v3711_v8, %v3710_v16 }
 0x41e   : > { %4010 = vst [vmem:[%s7389_s14 + $0x10] sm:$0xff] %v4002_v7  }
 0x432   : > { %v4478_v13 = vpop.f32.mrb[164].mxu1 }
 0x433   : > { %v4479_v25 = vpop.f32.mrb[165].mxu1 }
 0x434   : > { %v4480_v10 = vadd.f32 %v4479_v25, %v4478_v13  ;;  %v4481_v11 = vpop.f32.mrb[166].mxu1 }
 0x435   : > { %v4482_v20 = vpop.f32.mrb[167].mxu1 }
 0x436   : > { %v3700_v38 = vadd.f32 %v4480_v10, %v3949_v39  ;;  %v4483_v47 = vadd.f32 %v4482_v20, %v4481_v11 }
 0x438   : > { %v3703_v41 = vadd.f32 %v4483_v47, %v3949_v39  ;;  %v3712_v29 = vmax.f32 %v3700_v38, 0.0 }
 0x43a   : > { %v3713_v5 = vmax.f32 %v3703_v41, 0.0 }
 0x43c   : > { %v4007_v32 = vpack.c.bf16 %v3713_v5, %v3712_v29 }
 0x43e   : > { %4011 = vst [vmem:[%s7389_s14 + $0x18] sm:$0xff] %v4007_v32  }
 0x43f   : > { %5080 = shalt.err (!%p5077_p7)
}
 0x440   : > { %s5081_s26 = scalar_lea.hbm %s7401_s21, 512  ;;  %s5085_s24 = scalar_lea.hbm %s7456_s9, 1024 }
 0x441   : > { %p5082_p8 = scmp.ne.s32.totalorder %s7401_s21, %s5081_s26  ;;  %p5086_p1 = scmp.lt.u32.totalorder %s7401_s21, %s7456_s9 }
 0x442   : > { %p5087_p0 = scmp.lt.u32.totalorder %s5085_s24, %s5081_s26  ;;  %p5089_p6 = scmp.lt.u32.totalorder %s5081_s26, %s7401_s21 }
 0x443   : > { %p5083_p11 = pnand %p5082_p8, %p8266_p9 }
 0x444   : > { %p5088_p5 = por %p5087_p0, %p5086_p1 }
 0x445   : > { %p5084_p13 = pneg %p5083_p11 }
 0x446   : > { %p5090_p10 = por %p5089_p6, %p5088_p5 }
 0x448   : > { %p5091_p12 = pnand %p5090_p10, %p5084_p13 }
 0x44a   : > { %5094 = shalt.err (!%p5091_p12)
}
 0x44b   : > { %s5142_s16 = smov 64   ;;  %s5143_s13 = smov 4  }
 0x44c   : > { %4856 = dma.vmem_to_hbm [thread:$0]  (%p8266_p9), %s7396_s17, 512, %s7401_s21, %s7406_s27, %s5142_s16, %s5142_s16, %s5143_s13  }
 0x44d PF: > { %p4868_p2 = scmp.ge.s32.totalorder %s5133_s12, 2  ;;  %s3783_s22 = sand.u32 1, %s5121_s30  }
 0x44e   : > { %p8267_p3 = scmp.ne.s32.totalorder %s7742_s20, 0  ;;  %s3784_s25 = scalar_lea.sflag [#allocation6], %s3783_s22 }
 0x450   : > { %p4863_p4 = pnand %p4868_p2, %p8267_p3 }
 0x452   : > { %5116 = dma.done.wait (!%p4863_p4), %s3784_s25, 512  }
 0x453   : > { %5118 = vsyncadd (!%p4863_p4), %s3784_s25, 4294966784  ;;  %p20_p7 = scmp.ge.s32.totalorder %s5219_s15, 4   ;;  %s8268_s30 = smov %s5125_s10 }
 0x454   : > { %s8269_s10 = smov %s5129_s11  ;;  %s8270_s11 = smov %s5230_s18 }
 0x455   : > { %s8271_s12 = smov %s5219_s15  ;;  %22 = sbr.rel (!%p20_p7) target bundleno = 4 (0x4), region = 128 }
 0x45c   :  { %3789 = vsyncpa [#allocation5], 1 }
 0x45d   :  { %3791 = vsyncpa [#allocation5 + $0x1], 1 }
 0x45e   :  { %3792 = vsyncpa [#allocation6], 1 }
 0x45f   :  { %3794 = vsyncpa [#allocation6 + $0x1], 1 }

</bundles_post_ra>
